<compile_context>
chip_gen: v7x
topology: tpu7x:2x2x1
jax: 0.10.0
libtpu: 0.0.40
codegen_flags: <defaults>
</compile_context>

<pallas_src>
import jax
import jax.numpy as jnp
from jax.experimental import pallas as pl
from jax.experimental.pallas import tpu as pltpu


STATE_DIM = 999 + 8          # environment_dim + robot_dim = 1007
STATE_DIM_PADDED = 1024      # zero-padded contraction dim for layer 1
HIDDEN_1 = 800
HIDDEN_2 = 600


# -----------------------------------------------------------------------------
# Kernel: fused 3-layer MLP forward, full-array blocks, no grid.
# -----------------------------------------------------------------------------
def actor_kernel(s_ref, w1_ref, b1_ref, w2_ref, b2_ref, w3_ref, b3_ref, out_ref):
    # layer 1: (B, 1024)bf16 @ (1024, 800)bf16 -> f32 acc, +b1, ReLU
    h1 = jnp.dot(s_ref[...], w1_ref[...], preferred_element_type=jnp.float32)
    h1 = jnp.maximum(h1 + b1_ref[...], 0.0)

    # layer 2: cast activation to bf16 only right before the dot; f32 epilogue
    h2 = jnp.dot(h1.astype(jnp.bfloat16), w2_ref[...],
                 preferred_element_type=jnp.float32)
    h2 = jnp.maximum(h2 + b2_ref[...], 0.0)

    # layer 3: (B, 600)bf16 @ (600, A)bf16 -> f32 acc, +b3, tanh (EUP, f32)
    h3 = jnp.dot(h2.astype(jnp.bfloat16), w3_ref[...],
                 preferred_element_type=jnp.float32)
    out_ref[...] = jnp.tanh(h3 + b3_ref[...])


# -----------------------------------------------------------------------------
# Wrapper
# -----------------------------------------------------------------------------
def actor_forward(s, params):
    """s: (batch, STATE_DIM) or (batch, STATE_DIM_PADDED) float32/bfloat16."""
    w1, b1, w2, b2, w3, b3 = params
    batch = s.shape[0]
    action_dim = w3.shape[1]

    # Pad the ragged K=1007 contraction to 1024 and stream the input as bf16.
    if s.shape[1] < STATE_DIM_PADDED:
        s = jnp.pad(s, ((0, 0), (0, STATE_DIM_PADDED - s.shape[1])))
    s = s.astype(jnp.bfloat16)

    # Advisory cost hint: lets XLA overlap this short DMA-bound call.
    flops = 2 * batch * (STATE_DIM_PADDED * HIDDEN_1
                         + HIDDEN_1 * HIDDEN_2
                         + HIDDEN_2 * action_dim)
    bytes_accessed = (
        s.size * s.dtype.itemsize
        + sum(int(p.size) * p.dtype.itemsize for p in params)
        + batch * action_dim * 4
    )
    cost = pl.CostEstimate(flops=flops,
                           transcendentals=batch * action_dim,
                           bytes_accessed=bytes_accessed)

    vmem = pl.BlockSpec(memory_space=pltpu.MemorySpace.VMEM)
    return pl.pallas_call(
        actor_kernel,
        out_shape=jax.ShapeDtypeStruct((batch, action_dim), jnp.float32),
        in_specs=[vmem] * 7,
        out_specs=vmem,
        cost_estimate=cost,
    )(s, w1, b1, w2, b2, w3, b3)


# -----------------------------------------------------------------------------
# Deterministic parameter init (PyTorch nn.Linear default: U(-1/sqrt(fan_in), +))
# Weights are returned in bf16 (K of layer 1 zero-padded to 1024); biases in f32.
# -----------------------------------------------------------------------------
def init_actor_params(key, state_dim, action_dim):
    dims = [(state_dim, HIDDEN_1), (HIDDEN_1, HIDDEN_2), (HIDDEN_2, action_dim)]
    params = []
    for layer_idx, (fan_in, fan_out) in enumerate(dims):
        key, kw, kb = jax.random.split(key, 3)
        bound = 1.0 / jnp.sqrt(jnp.float32(fan_in))
        w = jax.random.uniform(kw, (fan_in, fan_out), jnp.float32, -bound, bound)
        b = jax.random.uniform(kb, (1, fan_out), jnp.float32, -bound, bound)
        if layer_idx == 0 and fan_in < STATE_DIM_PADDED:
            w = jnp.pad(w, ((0, STATE_DIM_PADDED - fan_in), (0, 0)))
        params.extend([w.astype(jnp.bfloat16), b])
    return tuple(params)


# -----------------------------------------------------------------------------
# Pure-JAX reference mirroring the kernel's bf16 weight/activation rounding.
# -----------------------------------------------------------------------------
def actor_reference(s, params):
    w1, b1, w2, b2, w3, b3 = params
    if s.shape[1] < STATE_DIM_PADDED:
        s = jnp.pad(s, ((0, 0), (0, STATE_DIM_PADDED - s.shape[1])))
    s = s.astype(jnp.bfloat16).astype(jnp.float32)
    h1 = jnp.maximum(s @ w1.astype(jnp.float32) + b1, 0.0)
    h1 = h1.astype(jnp.bfloat16).astype(jnp.float32)
    h2 = jnp.maximum(h1 @ w2.astype(jnp.float32) + b2, 0.0)
    h2 = h2.astype(jnp.bfloat16).astype(jnp.float32)
    return jnp.tanh(h2 @ w3.astype(jnp.float32) + b3)


if __name__ == "__main__":
    environment_dim = 999
    robot_dim = 8
    state_dim = environment_dim + robot_dim  # 1007
    action_dim = 2
    batch = 2

    key = jax.random.PRNGKey(0)
    key, ks = jax.random.split(key)
    s = jax.random.normal(ks, (batch, state_dim), jnp.float32)
    params = init_actor_params(key, state_dim, action_dim)

    out = actor_forward(s, params)
    out = jax.block_until_ready(out)

    ref = actor_reference(s, params)
    assert out.shape == (batch, action_dim)
    assert jnp.allclose(out, ref, atol=1e-2, rtol=1e-2), "mismatch vs reference"

    print("KERNEL_OK")
</pallas_src>

<mosaic_0001>
module attributes {stable_mosaic.version = 11 : i64} {
  func.func @actor_kernel(%arg0: memref<2x1024xbf16, #tpu.memory_space<vmem>>, %arg1: memref<1024x800xbf16, #tpu.memory_space<vmem>>, %arg2: memref<1x800xf32, #tpu.memory_space<vmem>>, %arg3: memref<800x600xbf16, #tpu.memory_space<vmem>>, %arg4: memref<1x600xf32, #tpu.memory_space<vmem>>, %arg5: memref<600x2xbf16, #tpu.memory_space<vmem>>, %arg6: memref<1x2xf32, #tpu.memory_space<vmem>>, %arg7: memref<2x2xf32, #tpu.memory_space<vmem>>) attributes {dimension_semantics = [], scalar_prefetch = 0 : i64, scratch_operands = 0 : i64, tpu.core_type = #tpu.core_type<tc>} {
    %c0 = arith.constant 0 : index
    %c0_0 = arith.constant 0 : index
    %0 = vector.load %arg0[%c0, %c0_0] : memref<2x1024xbf16, #tpu.memory_space<vmem>>, vector<2x1024xbf16>
    %c0_1 = arith.constant 0 : index
    %c0_2 = arith.constant 0 : index
    %1 = vector.load %arg1[%c0_1, %c0_2] : memref<1024x800xbf16, #tpu.memory_space<vmem>>, vector<1024x800xbf16>
    %cst = arith.constant dense<0.000000e+00> : vector<2x800xf32>
    %2 = tpu.matmul %0, %1, %cst {dimension_numbers = #tpu.dot_dimension_numbers<[1], [0], [0], [1], [0, 0, 1, 1], [], []>} : vector<2x1024xbf16>, vector<1024x800xbf16>, vector<2x800xf32> -> vector<2x800xf32>
    %c0_3 = arith.constant 0 : index
    %c0_4 = arith.constant 0 : index
    %3 = vector.load %arg2[%c0_3, %c0_4] : memref<1x800xf32, #tpu.memory_space<vmem>>, vector<1x800xf32>
    %4 = vector.broadcast %3 : vector<1x800xf32> to vector<2x800xf32>
    %5 = arith.addf %2, %4 : vector<2x800xf32>
    %cst_5 = arith.constant 0.000000e+00 : f32
    %6 = vector.broadcast %cst_5 : f32 to vector<2x800xf32>
    %7 = arith.maximumf %5, %6 : vector<2x800xf32>
    %8 = arith.truncf %7 : vector<2x800xf32> to vector<2x800xbf16>
    %c0_6 = arith.constant 0 : index
    %c0_7 = arith.constant 0 : index
    %9 = vector.load %arg3[%c0_6, %c0_7] : memref<800x600xbf16, #tpu.memory_space<vmem>>, vector<800x600xbf16>
    %cst_8 = arith.constant dense<0.000000e+00> : vector<2x600xf32>
    %10 = tpu.matmul %8, %9, %cst_8 {dimension_numbers = #tpu.dot_dimension_numbers<[1], [0], [0], [1], [0, 0, 1, 1], [], []>} : vector<2x800xbf16>, vector<800x600xbf16>, vector<2x600xf32> -> vector<2x600xf32>
    %c0_9 = arith.constant 0 : index
    %c0_10 = arith.constant 0 : index
    %11 = vector.load %arg4[%c0_9, %c0_10] : memref<1x600xf32, #tpu.memory_space<vmem>>, vector<1x600xf32>
    %12 = vector.broadcast %11 : vector<1x600xf32> to vector<2x600xf32>
    %13 = arith.addf %10, %12 : vector<2x600xf32>
    %cst_11 = arith.constant 0.000000e+00 : f32
    %14 = vector.broadcast %cst_11 : f32 to vector<2x600xf32>
    %15 = arith.maximumf %13, %14 : vector<2x600xf32>
    %16 = arith.truncf %15 : vector<2x600xf32> to vector<2x600xbf16>
    %c0_12 = arith.constant 0 : index
    %c0_13 = arith.constant 0 : index
    %17 = vector.load %arg5[%c0_12, %c0_13] : memref<600x2xbf16, #tpu.memory_space<vmem>>, vector<600x2xbf16>
    %cst_14 = arith.constant dense<0.000000e+00> : vector<2x2xf32>
    %18 = tpu.matmul %16, %17, %cst_14 {dimension_numbers = #tpu.dot_dimension_numbers<[1], [0], [0], [1], [0, 0, 1, 1], [], []>} : vector<2x600xbf16>, vector<600x2xbf16>, vector<2x2xf32> -> vector<2x2xf32>
    %c0_15 = arith.constant 0 : index
    %c0_16 = arith.constant 0 : index
    %19 = vector.load %arg6[%c0_15, %c0_16] : memref<1x2xf32, #tpu.memory_space<vmem>>, vector<1x2xf32>
    %20 = vector.broadcast %19 : vector<1x2xf32> to vector<2x2xf32>
    %21 = arith.addf %18, %20 : vector<2x2xf32>
    %22 = math.tanh %21 : vector<2x2xf32>
    %c0_17 = arith.constant 0 : index
    %c0_18 = arith.constant 0 : index
    %23 = vector.load %arg7[%c0_17, %c0_18] : memref<2x2xf32, #tpu.memory_space<vmem>>, vector<2x2xf32>
    tpu.vector_store %arg7[%c0_17, %c0_18], %22 {strides = array<i32>} : memref<2x2xf32, #tpu.memory_space<vmem>>, vector<2x2xf32>,
    return
  }
}

</mosaic_0001>

<bundles_post_ra>
// kernel: tpu_custom_call.1
= control target key start
LH: loop header
LB: loop body
LE: loop exit
PB: predicated region body
PF: predicated region fallthrough
CT: control target
= control target key end

     0   :  { %v543_v36 = vlaneseq  ;;  %v8290_v37 = vmov 1966171168   ;;  %s10735_s0 = inlined_call_operand.vmem [shape: bf16[2,1024], index: 0, kind: input, shape index: {}]   ;;  %s10736_s1 = inlined_call_operand.vmem [shape: bf16[1024,800], index: 1, kind: input, shape index: {}]   ;;  %s10737_s2 = inlined_call_operand.vmem [shape: f32[1,800], index: 2, kind: input, shape index: {}]   ;;  %s10738_s3 = inlined_call_operand.vmem [shape: bf16[800,600], index: 3, kind: input, shape index: {}]   ;;  %s10739_s4 = inlined_call_operand.vmem [shape: f32[1,600], index: 4, kind: input, shape index: {}]   ;;  %s10740_s5 = inlined_call_operand.vmem [shape: bf16[600,2], index: 5, kind: input, shape index: {}]   ;;  %s10741_s6 = inlined_call_operand.vmem [shape: f32[1,2], index: 6, kind: input, shape index: {}]   ;;  %s10742_s7 = inlined_call_operand.hbm [shape: f32[2,2], index: 7, kind: output, shape index: {}]  }
   0x1   :  { %v7235_v0 = vld [vmem:[%s10736_s1 + $0x4] ss:$28 sps:$4 sm:$0xff]   ;;  %v7237_v1 = vld [vmem:[%s10736_s1 + $0xc] ss:$28 sps:$4 sm:$0xff]   ;;  %v7241_v4 = vld [vmem:[%s10736_s1 + $0x3c] ss:$28 sps:$4 sm:$0xff]   ;;  %v581_v38 = vunpack.c.l.s4 %v8290_v37 }
   0x2   :  { %2940 = vmatprep.subr.bf16.mxu0 %v7235_v0  ;;  %v7239_v2 = vld [vmem:[%s10736_s1] ss:$28 sps:$4 sm:$0xff]   ;;  %v7240_v3 = vld [vmem:[%s10736_s1 + $0x8] ss:$28 sps:$4 sm:$0xff]   ;;  %3104 = vmatprep.subr.bf16.mxu1 %v7237_v1  ;;  %v7245_v6 = vld [vmem:[%s10736_s1 + $0x38] ss:$28 sps:$4 sm:$0xff]  }
   0x3   :  { %2941 = vmatpush1.bf16.msra.mxu0 %v7239_v2  ;;  %3105 = vmatpush1.bf16.msra.mxu1 %v7240_v3  ;;  %v7243_v5 = vld [vmem:[%s10736_s1 + $0x44] ss:$28 sps:$4 sm:$0xff]   ;;  %v7247_v8 = vld [vmem:[%s10736_s1 + $0x74] ss:$28 sps:$4 sm:$0xff]   ;;  %v7249_v9 = vld [vmem:[%s10736_s1 + $0x7c] ss:$28 sps:$4 sm:$0xff]   ;;  %v582_v43 = vunpack.c.0.s8 %v581_v38 }
   0x4   :  { %2942 = vmatprep.subr.bf16.mxu0 %v7241_v4  ;;  %v7246_v7 = vld [vmem:[%s10736_s1 + $0x40] ss:$28 sps:$4 sm:$0xff]   ;;  %3106 = vmatprep.subr.bf16.mxu1 %v7243_v5  ;;  %v7251_v10 = vld [vmem:[%s10736_s1 + $0x70] ss:$28 sps:$4 sm:$0xff]   ;;  %v7252_v11 = vld [vmem:[%s10736_s1 + $0x78] ss:$28 sps:$4 sm:$0xff]  }
   0x5   :  { %v7253_v12 = vld [vmem:[%s10736_s1 + $0xac] ss:$28 sps:$4 sm:$0xff]   ;;  %v7255_v13 = vld [vmem:[%s10736_s1 + $0xb4] ss:$28 sps:$4 sm:$0xff]   ;;  %v7259_v16 = vld [vmem:[%s10736_s1 + $0xe4] ss:$28 sps:$4 sm:$0xff]  }
   0x6   :  { %v7257_v14 = vld [vmem:[%s10736_s1 + $0xa8] ss:$28 sps:$4 sm:$0xff]   ;;  %v7258_v15 = vld [vmem:[%s10736_s1 + $0xb0] ss:$28 sps:$4 sm:$0xff]   ;;  %v7263_v18 = vld [vmem:[%s10736_s1 + $0xe0] ss:$28 sps:$4 sm:$0xff]  }
   0x7   :  { %2943 = vmatpush1.bf16.msra.mxu0 %v7245_v6  ;;  %3107 = vmatpush1.bf16.msra.mxu1 %v7246_v7  ;;  %v7261_v17 = vld [vmem:[%s10736_s1 + $0xec] ss:$28 sps:$4 sm:$0xff]   ;;  %v7265_v20 = vld [vmem:[%s10736_s1 + $0x11c] ss:$28 sps:$4 sm:$0xff]   ;;  %v7267_v21 = vld [vmem:[%s10736_s1 + $0x124] ss:$28 sps:$4 sm:$0xff]  }
   0x8   :  { %2944 = vmatprep.subr.bf16.mxu0 %v7247_v8  ;;  %3108 = vmatprep.subr.bf16.mxu1 %v7249_v9  ;;  %v7264_v19 = vld [vmem:[%s10736_s1 + $0xe8] ss:$28 sps:$4 sm:$0xff]   ;;  %v7269_v22 = vld [vmem:[%s10736_s1 + $0x118] ss:$28 sps:$4 sm:$0xff]   ;;  %v7270_v23 = vld [vmem:[%s10736_s1 + $0x120] ss:$28 sps:$4 sm:$0xff]  }
   0x9   :  { %v7271_v24 = vld [vmem:[%s10736_s1 + $0x154] ss:$28 sps:$4 sm:$0xff]   ;;  %v7273_v25 = vld [vmem:[%s10736_s1 + $0x15c] ss:$28 sps:$4 sm:$0xff]   ;;  %v7277_v28 = vld [vmem:[%s10736_s1 + $0x18c] ss:$28 sps:$4 sm:$0xff]  }
   0xa   :  { %v7275_v26 = vld [vmem:[%s10736_s1 + $0x150] ss:$28 sps:$4 sm:$0xff]   ;;  %v7276_v27 = vld [vmem:[%s10736_s1 + $0x158] ss:$28 sps:$4 sm:$0xff]   ;;  %v7281_v30 = vld [vmem:[%s10736_s1 + $0x188] ss:$28 sps:$4 sm:$0xff]  }
   0xb   :  { %2945 = vmatpush1.bf16.msra.mxu0 %v7251_v10  ;;  %3109 = vmatpush1.bf16.msra.mxu1 %v7252_v11  ;;  %v7279_v29 = vld [vmem:[%s10736_s1 + $0x194] ss:$28 sps:$4 sm:$0xff]   ;;  %v7283_v32 = vld [vmem:[%s10736_s1 + $0x1c4] ss:$28 sps:$4 sm:$0xff]   ;;  %v7285_v33 = vld [vmem:[%s10736_s1 + $0x1cc] ss:$28 sps:$4 sm:$0xff]  }
   0xc   :  { %2946 = vmatprep.subr.bf16.mxu0 %v7253_v12  ;;  %3110 = vmatprep.subr.bf16.mxu1 %v7255_v13  ;;  %v7282_v31 = vld [vmem:[%s10736_s1 + $0x190] ss:$28 sps:$4 sm:$0xff]   ;;  %v7287_v34 = vld [vmem:[%s10736_s1 + $0x1c0] ss:$28 sps:$4 sm:$0xff]   ;;  %v7288_v35 = vld [vmem:[%s10736_s1 + $0x1c8] ss:$28 sps:$4 sm:$0xff]  }
   0xd   :  { %v7289_v39 = vld [vmem:[%s10736_s1 + $0x1fc] ss:$28 sps:$4 sm:$0xff]   ;;  %v7291_v40 = vld [vmem:[%s10736_s1 + $0x204] ss:$28 sps:$4 sm:$0xff]   ;;  %v8452_v42 = vshrl.u32 %v543_v36, 7 }
   0xe   :  { %v7293_v41 = vld [vmem:[%s10736_s1 + $0x1f8] ss:$28 sps:$4 sm:$0xff]   ;;  %v7294_v44 = vld [vmem:[%s10736_s1 + $0x200] ss:$28 sps:$4 sm:$0xff]   ;;  %v7299_v47 = vld [vmem:[%s10736_s1 + $0x230] ss:$28 sps:$4 sm:$0xff]  }
   0xf   :  { %2947 = vmatpush1.bf16.msra.mxu0 %v7257_v14  ;;  %3111 = vmatpush1.bf16.msra.mxu1 %v7258_v15  ;;  %v7295_v45 = vld [vmem:[%s10736_s1 + $0x234] ss:$28 sps:$4 sm:$0xff]   ;;  %v7297_v46 = vld [vmem:[%s10736_s1 + $0x23c] ss:$28 sps:$4 sm:$0xff]   ;;  %v8470_v49 = vsub.s32 %v582_v43, %v8452_v42  ;;  %v7301_v50 = vld [vmem:[%s10736_s1 + $0x26c] ss:$28 sps:$4 sm:$0xff]  }
  0x10   :  { %2948 = vmatprep.subr.bf16.mxu0 %v7259_v16  ;;  %3112 = vmatprep.subr.bf16.mxu1 %v7261_v17  ;;  %v7300_v48 = vld [vmem:[%s10736_s1 + $0x238] ss:$28 sps:$4 sm:$0xff]   ;;  %v28_v52 = vld [vmem:[%s10735_s0] sm:$0xff]  ;;  %v7306_v55 = vld [vmem:[%s10736_s1 + $0x270] ss:$28 sps:$4 sm:$0xff]  }
  0x11   :  { %v7303_v51 = vld [vmem:[%s10736_s1 + $0x274] ss:$28 sps:$4 sm:$0xff]   ;;  %v7305_v53 = vld [vmem:[%s10736_s1 + $0x268] ss:$28 sps:$4 sm:$0xff]   ;;  %v586_v54 = vrot.slane %v28_v52, %v8470_v49  ;;  %v7311_v59 = vld [vmem:[%s10736_s1 + $0x2a0] ss:$28 sps:$4 sm:$0xff]   ;;  %v579_v9 = vcombine.high %v28_v52, %v28_v52 }
  0x12   :  { %v7307_v56 = vld [vmem:[%s10736_s1 + $0x2a4] ss:$28 sps:$4 sm:$0xff]   ;;  %v7309_v57 = vld [vmem:[%s10736_s1 + $0x2ac] ss:$28 sps:$4 sm:$0xff]   ;;  %v7313_v62 = vld [vmem:[%s10736_s1 + $0x2dc] ss:$28 sps:$4 sm:$0xff]  }
  0x13   :  { %2949 = vmatpush1.bf16.msra.mxu0 %v7263_v18  ;;  %3113 = vmatpush1.bf16.msra.mxu1 %v7264_v19  ;;  %v594_v58 = vcombine.high %v586_v54, %v586_v54  ;;  %v7312_v61 = vld [vmem:[%s10736_s1 + $0x2a8] ss:$28 sps:$4 sm:$0xff]   ;;  %v7317_v0 = vld [vmem:[%s10736_s1 + $0x2d8] ss:$28 sps:$4 sm:$0xff]   ;;  %v7318_v1 = vld [vmem:[%s10736_s1 + $0x2e0] ss:$28 sps:$4 sm:$0xff]   ;;  %v593_v13 = vrot.slane %v579_v9, %v8470_v49  ;;  %v8552_v15 = vrot.slane %v586_v54, %v8470_v49 }
  0x14   :  { %2950 = vmatprep.subr.bf16.mxu0 %v7265_v20  ;;  %3114 = vmatprep.subr.bf16.mxu1 %v7267_v21  ;;  %v7315_v63 = vld [vmem:[%s10736_s1 + $0x2e4] ss:$28 sps:$4 sm:$0xff]   ;;  %v7319_v2 = vld [vmem:[%s10736_s1 + $0x314] ss:$28 sps:$4 sm:$0xff]   ;;  %v7321_v3 = vld [vmem:[%s10736_s1 + $0x31c] ss:$28 sps:$4 sm:$0xff]  }
  0x15   :  { %v8498_v60 = vrot.slane %v594_v58, %v8470_v49  ;;  %v7323_v4 = vld [vmem:[%s10736_s1 + $0x310] ss:$28 sps:$4 sm:$0xff]   ;;  %v7324_v5 = vld [vmem:[%s10736_s1 + $0x318] ss:$28 sps:$4 sm:$0xff]   ;;  %v7329_v8 = vld [vmem:[%s10736_s1 + $0x348] ss:$28 sps:$4 sm:$0xff]   ;;  %v595_v16 = vcombine.high %v593_v13, %v593_v13  ;;  %v8567_v21 = vrot.slane %v593_v13, %v8470_v49 }
  0x16   :  { %v7325_v6 = vld [vmem:[%s10736_s1 + $0x34c] ss:$28 sps:$4 sm:$0xff]   ;;  %v7327_v7 = vld [vmem:[%s10736_s1 + $0x354] ss:$28 sps:$4 sm:$0xff]   ;;  %v7333_v11 = vld [vmem:[%s10736_s1 + $0x384] ss:$28 sps:$4 sm:$0xff]  }
  0x17   :  { %2951 = vmatpush1.bf16.msra.mxu0 %v7269_v22  ;;  %3115 = vmatpush1.bf16.msra.mxu1 %v7270_v23  ;;  %v7330_v10 = vld [vmem:[%s10736_s1 + $0x350] ss:$28 sps:$4 sm:$0xff]   ;;  %v7331_v14 = vld [vmem:[%s10736_s1 + $0x380] ss:$28 sps:$4 sm:$0xff]   ;;  %v7334_v17 = vld [vmem:[%s10736_s1 + $0x388] ss:$28 sps:$4 sm:$0xff]   ;;  %v8564_v20 = vrot.slane %v595_v16, %v8470_v49  ;;  %v8571_v22 = vcombine.high %v8498_v60, %v8498_v60 }
  0x18   :  { %2952 = vmatprep.subr.bf16.mxu0 %v7271_v24  ;;  %3116 = vmatprep.subr.bf16.mxu1 %v7273_v25  ;;  %v7336_v12 = vld [vmem:[%s10736_s1 + $0x38c] ss:$28 sps:$4 sm:$0xff]   ;;  %v7339_v18 = vld [vmem:[%s10736_s1 + $0x3bc] ss:$28 sps:$4 sm:$0xff]   ;;  %v7342_v19 = vld [vmem:[%s10736_s1 + $0x3c4] ss:$28 sps:$4 sm:$0xff]  }
  0x19   :  { %2972 = vmatprep.mubr.bf16.mxu0 %v8498_v60  ;;  %3136 = vmatprep.mubr.bf16.mxu1 %v8498_v60  ;;  %v7337_v23 = vld [vmem:[%s10736_s1 + $0x3b8] ss:$28 sps:$4 sm:$0xff]   ;;  %v7340_v24 = vld [vmem:[%s10736_s1 + $0x3c0] ss:$28 sps:$4 sm:$0xff]   ;;  %v7358_v36 = vld [vmem:[%s10736_s1 + $0x468] ss:$28 sps:$4 sm:$0xff]  }
  0x1a   :  { %v7345_v25 = vld [vmem:[%s10736_s1 + $0x3f4] ss:$28 sps:$4 sm:$0xff]   ;;  %v7363_v37 = vld [vmem:[%s10736_s1 + $0x49c] ss:$28 sps:$4 sm:$0xff]   ;;  %v7366_v38 = vld [vmem:[%s10736_s1 + $0x4a4] ss:$28 sps:$4 sm:$0xff]  }
  0x1b   :  { %2953 = vmatpush1.bf16.msra.mxu0 %v7275_v26  ;;  %3117 = vmatpush1.bf16.msra.mxu1 %v7276_v27  ;;  %v7348_v26 = vld [vmem:[%s10736_s1 + $0x3fc] ss:$28 sps:$4 sm:$0xff]   ;;  %v7343_v27 = vld [vmem:[%s10736_s1 + $0x3f0] ss:$28 sps:$4 sm:$0xff]  }
  0x1c   :  { %2954 = vmatprep.subr.bf16.mxu0 %v7277_v28  ;;  %3118 = vmatprep.subr.bf16.mxu1 %v7279_v29  ;;  %v7346_v28 = vld [vmem:[%s10736_s1 + $0x3f8] ss:$28 sps:$4 sm:$0xff]   ;;  %v7351_v29 = vld [vmem:[%s10736_s1 + $0x42c] ss:$28 sps:$4 sm:$0xff]   ;;  %v7379_v52 = vld [vmem:[%s10736_s1 + $0x540] ss:$28 sps:$4 sm:$0xff]  }
  0x1d   :  { %v7372_v43 = vld [vmem:[%s10736_s1 + $0x4dc] ss:$28 sps:$4 sm:$0xff]   ;;  %v7376_v49 = vld [vmem:[%s10736_s1 + $0x510] ss:$28 sps:$4 sm:$0xff]  }
  0x1e   :  { %v7387_v54 = vld [vmem:[%s10736_s1 + $0x57c] ss:$28 sps:$4 sm:$0xff]   ;;  %v7393_v58 = vld [vmem:[%s10736_s1 + $0x5b4] ss:$28 sps:$4 sm:$0xff]   ;;  %v7423_v16 = vld [vmem:[%s10736_s1 + $0x6cc] ss:$28 sps:$4 sm:$0xff]  }
  0x1f   :  { %2955 = vmatpush1.bf16.msra.mxu0 %v7281_v30  ;;  %3119 = vmatpush1.bf16.msra.mxu1 %v7282_v31  ;;  %v7354_v30 = vld [vmem:[%s10736_s1 + $0x434] ss:$28 sps:$4 sm:$0xff]   ;;  %v7349_v31 = vld [vmem:[%s10736_s1 + $0x428] ss:$28 sps:$4 sm:$0xff]  }
  0x20   :  { %2956 = vmatprep.subr.bf16.mxu0 %v7283_v32  ;;  %3120 = vmatprep.subr.bf16.mxu1 %v7285_v33  ;;  %v7352_v32 = vld [vmem:[%s10736_s1 + $0x430] ss:$28 sps:$4 sm:$0xff]   ;;  %v7357_v33 = vld [vmem:[%s10736_s1 + $0x464] ss:$28 sps:$4 sm:$0xff]   ;;  %v7409_v9 = vld [vmem:[%s10736_s1 + $0x658] ss:$28 sps:$4 sm:$0xff]  }
  0x21   :  { %v7415_v13 = vld [vmem:[%s10736_s1 + $0x690] ss:$28 sps:$4 sm:$0xff]  }
  0x23   :  { %2957 = vmatpush1.bf16.msra.mxu0 %v7287_v34  ;;  %3121 = vmatpush1.bf16.msra.mxu1 %v7288_v35  ;;  %v7360_v34 = vld [vmem:[%s10736_s1 + $0x46c] ss:$28 sps:$4 sm:$0xff]   ;;  %v7355_v35 = vld [vmem:[%s10736_s1 + $0x460] ss:$28 sps:$4 sm:$0xff]  }
  0x24   :  { %2958 = vmatprep.subr.bf16.mxu0 %v7289_v39  ;;  %3122 = vmatprep.subr.bf16.mxu1 %v7291_v40  ;;  %v7361_v39 = vld [vmem:[%s10736_s1 + $0x498] ss:$28 sps:$4 sm:$0xff]   ;;  %v7364_v40 = vld [vmem:[%s10736_s1 + $0x4a0] ss:$28 sps:$4 sm:$0xff]  }
  0x27   :  { %2959 = vmatpush1.bf16.msra.mxu0 %v7293_v41  ;;  %3123 = vmatpush1.bf16.msra.mxu1 %v7294_v44  ;;  %v7369_v41 = vld [vmem:[%s10736_s1 + $0x4d4] ss:$28 sps:$4 sm:$0xff]  }
  0x28   :  { %2960 = vmatprep.subr.bf16.mxu0 %v7295_v45  ;;  %3124 = vmatprep.subr.bf16.mxu1 %v7297_v46  ;;  %v7367_v44 = vld [vmem:[%s10736_s1 + $0x4d0] ss:$28 sps:$4 sm:$0xff]   ;;  %v7370_v45 = vld [vmem:[%s10736_s1 + $0x4d8] ss:$28 sps:$4 sm:$0xff]  }
  0x29   :  { %v7375_v46 = vld [vmem:[%s10736_s1 + $0x50c] ss:$28 sps:$4 sm:$0xff]  }
  0x2b   :  { %2961 = vmatpush1.bf16.msra.mxu0 %v7299_v47  ;;  %3125 = vmatpush1.bf16.msra.mxu1 %v7300_v48  ;;  %v7378_v47 = vld [vmem:[%s10736_s1 + $0x514] ss:$28 sps:$4 sm:$0xff]   ;;  %v7373_v48 = vld [vmem:[%s10736_s1 + $0x508] ss:$28 sps:$4 sm:$0xff]  }
  0x2c   :  { %2962 = vmatprep.subr.bf16.mxu0 %v7301_v50  ;;  %3126 = vmatprep.subr.bf16.mxu1 %v7303_v51  ;;  %v7381_v50 = vld [vmem:[%s10736_s1 + $0x544] ss:$28 sps:$4 sm:$0xff]   ;;  %v7384_v51 = vld [vmem:[%s10736_s1 + $0x54c] ss:$28 sps:$4 sm:$0xff]  }
  0x2f   :  { %2963 = vmatpush1.bf16.msra.mxu0 %v7305_v53  ;;  %3127 = vmatpush1.bf16.msra.mxu1 %v7306_v55  ;;  %v7382_v53 = vld [vmem:[%s10736_s1 + $0x548] ss:$28 sps:$4 sm:$0xff]  }
  0x30   :  { %2964 = vmatprep.subr.bf16.mxu0 %v7307_v56  ;;  %3128 = vmatprep.subr.bf16.mxu1 %v7309_v57  ;;  %v7390_v55 = vld [vmem:[%s10736_s1 + $0x584] ss:$28 sps:$4 sm:$0xff]   ;;  %v7385_v56 = vld [vmem:[%s10736_s1 + $0x578] ss:$28 sps:$4 sm:$0xff]  }
  0x31   :  { %v7388_v57 = vld [vmem:[%s10736_s1 + $0x580] ss:$28 sps:$4 sm:$0xff]  }
  0x33   :  { %2965 = vmatpush1.bf16.msra.mxu0 %v7311_v59  ;;  %3129 = vmatpush1.bf16.msra.mxu1 %v7312_v61  ;;  %v7396_v59 = vld [vmem:[%s10736_s1 + $0x5bc] ss:$28 sps:$4 sm:$0xff]   ;;  %v7391_v61 = vld [vmem:[%s10736_s1 + $0x5b0] ss:$28 sps:$4 sm:$0xff]  }
  0x34   :  { %2966 = vmatprep.subr.bf16.mxu0 %v7313_v62  ;;  %3130 = vmatprep.subr.bf16.mxu1 %v7315_v63  ;;  %v7394_v62 = vld [vmem:[%s10736_s1 + $0x5b8] ss:$28 sps:$4 sm:$0xff]   ;;  %v7399_v63 = vld [vmem:[%s10736_s1 + $0x5ec] ss:$28 sps:$4 sm:$0xff]  }
  0x37   :  { %2967 = vmatpush1.bf16.msra.mxu0 %v7317_v0  ;;  %3131 = vmatpush1.bf16.msra.mxu1 %v7318_v1  ;;  %v7402_v0 = vld [vmem:[%s10736_s1 + $0x5f4] ss:$28 sps:$4 sm:$0xff]   ;;  %v7397_v1 = vld [vmem:[%s10736_s1 + $0x5e8] ss:$28 sps:$4 sm:$0xff]  }
  0x38   :  { %2968 = vmatprep.subr.bf16.mxu0 %v7319_v2  ;;  %3132 = vmatprep.subr.bf16.mxu1 %v7321_v3  ;;  %v7400_v2 = vld [vmem:[%s10736_s1 + $0x5f0] ss:$28 sps:$4 sm:$0xff]   ;;  %v7405_v3 = vld [vmem:[%s10736_s1 + $0x624] ss:$28 sps:$4 sm:$0xff]  }
  0x3b   :  { %2969 = vmatpush1.bf16.msra.mxu0 %v7323_v4  ;;  %3133 = vmatpush1.bf16.msra.mxu1 %v7324_v5  ;;  %v7408_v4 = vld [vmem:[%s10736_s1 + $0x62c] ss:$28 sps:$4 sm:$0xff]   ;;  %v7403_v5 = vld [vmem:[%s10736_s1 + $0x620] ss:$28 sps:$4 sm:$0xff]  }
  0x3c   :  { %2970 = vmatprep.subr.bf16.mxu0 %v7325_v6  ;;  %3134 = vmatprep.subr.bf16.mxu1 %v7327_v7  ;;  %v7406_v6 = vld [vmem:[%s10736_s1 + $0x628] ss:$28 sps:$4 sm:$0xff]   ;;  %v7411_v7 = vld [vmem:[%s10736_s1 + $0x65c] ss:$28 sps:$4 sm:$0xff]  }
  0x3f   :  { %2971 = vmatpush1.bf16.msra.mxu0 %v7329_v8  ;;  %3135 = vmatpush1.bf16.msra.mxu1 %v7330_v10  ;;  %v7414_v8 = vld [vmem:[%s10736_s1 + $0x664] ss:$28 sps:$4 sm:$0xff]  }
  0x40   :  { %2981 = vmatprep.subr.bf16.mxu0 %v7333_v11  ;;  %3145 = vmatprep.subr.bf16.mxu1 %v7336_v12  ;;  %v7412_v10 = vld [vmem:[%s10736_s1 + $0x660] ss:$28 sps:$4 sm:$0xff]   ;;  %v7417_v11 = vld [vmem:[%s10736_s1 + $0x694] ss:$28 sps:$4 sm:$0xff]  }
  0x41   :  { %v7420_v12 = vld [vmem:[%s10736_s1 + $0x69c] ss:$28 sps:$4 sm:$0xff]  }
  0x42   :  { %2973 = vmatmul.mubr.bf16.vlgmr.msra.gmra.mrb[0].mxu0 %v8552_v15  ;;  %3137 = vmatmul.mubr.bf16.vlgmr.msra.gmra.mrb[0].mxu1 %v8552_v15 }
  0x43   :  { %2982 = vmatpush1.bf16.msra.mxu0 %v7331_v14  ;;  %3146 = vmatpush1.bf16.msra.mxu1 %v7334_v17  ;;  %v7418_v14 = vld [vmem:[%s10736_s1 + $0x698] ss:$28 sps:$4 sm:$0xff]  }
  0x44   :  { %2983 = vmatprep.subr.bf16.mxu0 %v7339_v18  ;;  %3147 = vmatprep.subr.bf16.mxu1 %v7342_v19  ;;  %v7426_v17 = vld [vmem:[%s10736_s1 + $0x6d4] ss:$28 sps:$4 sm:$0xff]   ;;  %v7421_v18 = vld [vmem:[%s10736_s1 + $0x6c8] ss:$28 sps:$4 sm:$0xff]  }
  0x45   :  { %3013 = vmatprep.mubr.bf16.mxu0 %v8571_v22  ;;  %3177 = vmatprep.mubr.bf16.mxu1 %v8571_v22  ;;  %v7424_v19 = vld [vmem:[%s10736_s1 + $0x6d0] ss:$28 sps:$4 sm:$0xff]  }
  0x47   :  { %2984 = vmatpush1.bf16.msra.mxu0 %v7337_v23  ;;  %3148 = vmatpush1.bf16.msra.mxu1 %v7340_v24  ;;  %v7429_v23 = vld [vmem:[%s10736_s1 + $0x704] ss:$28 sps:$4 sm:$0xff]   ;;  %v7432_v24 = vld [vmem:[%s10736_s1 + $0x70c] ss:$28 sps:$4 sm:$0xff]  }
  0x48   :  { %2985 = vmatprep.subr.bf16.mxu0 %v7345_v25  ;;  %3149 = vmatprep.subr.bf16.mxu1 %v7348_v26  ;;  %v7427_v25 = vld [vmem:[%s10736_s1 + $0x700] ss:$28 sps:$4 sm:$0xff]   ;;  %v8762_v26 = vcombine.high %v8552_v15, %v8552_v15 }
  0x4b   :  { %2986 = vmatpush1.bf16.msra.mxu0 %v7343_v27  ;;  %3150 = vmatpush1.bf16.msra.mxu1 %v7346_v28  ;;  %v7430_v27 = vld [vmem:[%s10736_s1 + $0x708] ss:$28 sps:$4 sm:$0xff]   ;;  %v7435_v28 = vld [vmem:[%s10736_s1 + $0x73c] ss:$28 sps:$4 sm:$0xff]  }
  0x4c   :  { %2987 = vmatprep.subr.bf16.mxu0 %v7351_v29  ;;  %3151 = vmatprep.subr.bf16.mxu1 %v7354_v30  ;;  %v7438_v29 = vld [vmem:[%s10736_s1 + $0x744] ss:$28 sps:$4 sm:$0xff]   ;;  %v7433_v30 = vld [vmem:[%s10736_s1 + $0x738] ss:$28 sps:$4 sm:$0xff]  }
  0x4f   :  { %2988 = vmatpush1.bf16.msra.mxu0 %v7349_v31  ;;  %3152 = vmatpush1.bf16.msra.mxu1 %v7352_v32  ;;  %v7436_v31 = vld [vmem:[%s10736_s1 + $0x740] ss:$28 sps:$4 sm:$0xff]   ;;  %v7441_v32 = vld [vmem:[%s10736_s1 + $0x774] ss:$28 sps:$4 sm:$0xff]  }
  0x50   :  { %2989 = vmatprep.subr.bf16.mxu0 %v7357_v33  ;;  %3153 = vmatprep.subr.bf16.mxu1 %v7360_v34  ;;  %v7444_v33 = vld [vmem:[%s10736_s1 + $0x77c] ss:$28 sps:$4 sm:$0xff]   ;;  %v7439_v34 = vld [vmem:[%s10736_s1 + $0x770] ss:$28 sps:$4 sm:$0xff]  }
  0x53   :  { %2990 = vmatpush1.bf16.msra.mxu0 %v7355_v35  ;;  %3154 = vmatpush1.bf16.msra.mxu1 %v7358_v36  ;;  %v7442_v35 = vld [vmem:[%s10736_s1 + $0x778] ss:$28 sps:$4 sm:$0xff]   ;;  %v7447_v36 = vld [vmem:[%s10736_s1 + $0x7ac] ss:$28 sps:$4 sm:$0xff]  }
  0x54   :  { %2991 = vmatprep.subr.bf16.mxu0 %v7363_v37  ;;  %3155 = vmatprep.subr.bf16.mxu1 %v7366_v38  ;;  %v7450_v37 = vld [vmem:[%s10736_s1 + $0x7b4] ss:$28 sps:$4 sm:$0xff]   ;;  %v7445_v38 = vld [vmem:[%s10736_s1 + $0x7a8] ss:$28 sps:$4 sm:$0xff]  }
  0x57   :  { %2992 = vmatpush1.bf16.msra.mxu0 %v7361_v39  ;;  %3156 = vmatpush1.bf16.msra.mxu1 %v7364_v40  ;;  %v7448_v39 = vld [vmem:[%s10736_s1 + $0x7b0] ss:$28 sps:$4 sm:$0xff]   ;;  %v7453_v40 = vld [vmem:[%s10736_s1 + $0x7e4] ss:$28 sps:$4 sm:$0xff]  }
  0x58   :  { %2993 = vmatprep.subr.bf16.mxu0 %v7369_v41  ;;  %3157 = vmatprep.subr.bf16.mxu1 %v7372_v43  ;;  %v7456_v41 = vld [vmem:[%s10736_s1 + $0x7ec] ss:$28 sps:$4 sm:$0xff]   ;;  %v7451_v43 = vld [vmem:[%s10736_s1 + $0x7e0] ss:$28 sps:$4 sm:$0xff]  }
  0x5b   :  { %2994 = vmatpush1.bf16.msra.mxu0 %v7367_v44  ;;  %3158 = vmatpush1.bf16.msra.mxu1 %v7370_v45  ;;  %v7454_v44 = vld [vmem:[%s10736_s1 + $0x7e8] ss:$28 sps:$4 sm:$0xff]   ;;  %v7459_v45 = vld [vmem:[%s10736_s1 + $0x81c] ss:$28 sps:$4 sm:$0xff]  }
  0x5c   :  { %2995 = vmatprep.subr.bf16.mxu0 %v7375_v46  ;;  %3159 = vmatprep.subr.bf16.mxu1 %v7378_v47  ;;  %v7462_v46 = vld [vmem:[%s10736_s1 + $0x824] ss:$28 sps:$4 sm:$0xff]   ;;  %v7457_v47 = vld [vmem:[%s10736_s1 + $0x818] ss:$28 sps:$4 sm:$0xff]  }
  0x5f   :  { %2996 = vmatpush1.bf16.msra.mxu0 %v7373_v48  ;;  %3160 = vmatpush1.bf16.msra.mxu1 %v7376_v49  ;;  %v7460_v48 = vld [vmem:[%s10736_s1 + $0x820] ss:$28 sps:$4 sm:$0xff]   ;;  %v7465_v49 = vld [vmem:[%s10736_s1 + $0x854] ss:$28 sps:$4 sm:$0xff]  }
  0x60   :  { %2997 = vmatprep.subr.bf16.mxu0 %v7381_v50  ;;  %3161 = vmatprep.subr.bf16.mxu1 %v7384_v51  ;;  %v7468_v50 = vld [vmem:[%s10736_s1 + $0x85c] ss:$28 sps:$4 sm:$0xff]   ;;  %v7463_v51 = vld [vmem:[%s10736_s1 + $0x850] ss:$28 sps:$4 sm:$0xff]  }
  0x63   :  { %2998 = vmatpush1.bf16.msra.mxu0 %v7379_v52  ;;  %3162 = vmatpush1.bf16.msra.mxu1 %v7382_v53  ;;  %v7466_v52 = vld [vmem:[%s10736_s1 + $0x858] ss:$28 sps:$4 sm:$0xff]   ;;  %v7471_v53 = vld [vmem:[%s10736_s1 + $0x88c] ss:$28 sps:$4 sm:$0xff]  }
  0x64   :  { %2999 = vmatprep.subr.bf16.mxu0 %v7387_v54  ;;  %3163 = vmatprep.subr.bf16.mxu1 %v7390_v55  ;;  %v7474_v54 = vld [vmem:[%s10736_s1 + $0x894] ss:$28 sps:$4 sm:$0xff]   ;;  %v7469_v55 = vld [vmem:[%s10736_s1 + $0x888] ss:$28 sps:$4 sm:$0xff]  }
  0x67   :  { %3000 = vmatpush1.bf16.msra.mxu0 %v7385_v56  ;;  %3164 = vmatpush1.bf16.msra.mxu1 %v7388_v57  ;;  %v7472_v56 = vld [vmem:[%s10736_s1 + $0x890] ss:$28 sps:$4 sm:$0xff]   ;;  %v7477_v57 = vld [vmem:[%s10736_s1 + $0x8c4] ss:$28 sps:$4 sm:$0xff]  }
  0x68   :  { %3001 = vmatprep.subr.bf16.mxu0 %v7393_v58  ;;  %3165 = vmatprep.subr.bf16.mxu1 %v7396_v59  ;;  %v7480_v58 = vld [vmem:[%s10736_s1 + $0x8cc] ss:$28 sps:$4 sm:$0xff]   ;;  %v7475_v59 = vld [vmem:[%s10736_s1 + $0x8c0] ss:$28 sps:$4 sm:$0xff]  }
  0x6b   :  { %3002 = vmatpush1.bf16.msra.mxu0 %v7391_v61  ;;  %3166 = vmatpush1.bf16.msra.mxu1 %v7394_v62  ;;  %v7478_v61 = vld [vmem:[%s10736_s1 + $0x8c8] ss:$28 sps:$4 sm:$0xff]   ;;  %v7483_v62 = vld [vmem:[%s10736_s1 + $0x8fc] ss:$28 sps:$4 sm:$0xff]  }
  0x6c   :  { %3003 = vmatprep.subr.bf16.mxu0 %v7399_v63  ;;  %3167 = vmatprep.subr.bf16.mxu1 %v7402_v0  ;;  %v7486_v63 = vld [vmem:[%s10736_s1 + $0x904] ss:$28 sps:$4 sm:$0xff]   ;;  %v7481_v0 = vld [vmem:[%s10736_s1 + $0x8f8] ss:$28 sps:$4 sm:$0xff]  }
  0x6f   :  { %3004 = vmatpush1.bf16.msra.mxu0 %v7397_v1  ;;  %3168 = vmatpush1.bf16.msra.mxu1 %v7400_v2  ;;  %v7484_v1 = vld [vmem:[%s10736_s1 + $0x900] ss:$28 sps:$4 sm:$0xff]   ;;  %v7489_v2 = vld [vmem:[%s10736_s1 + $0x934] ss:$28 sps:$4 sm:$0xff]  }
  0x70   :  { %3005 = vmatprep.subr.bf16.mxu0 %v7405_v3  ;;  %3169 = vmatprep.subr.bf16.mxu1 %v7408_v4  ;;  %v7492_v3 = vld [vmem:[%s10736_s1 + $0x93c] ss:$28 sps:$4 sm:$0xff]   ;;  %v7487_v4 = vld [vmem:[%s10736_s1 + $0x930] ss:$28 sps:$4 sm:$0xff]  }
  0x73   :  { %3006 = vmatpush1.bf16.msra.mxu0 %v7403_v5  ;;  %3170 = vmatpush1.bf16.msra.mxu1 %v7406_v6  ;;  %v7490_v5 = vld [vmem:[%s10736_s1 + $0x938] ss:$28 sps:$4 sm:$0xff]   ;;  %v7495_v6 = vld [vmem:[%s10736_s1 + $0x96c] ss:$28 sps:$4 sm:$0xff]  }
  0x74   :  { %3007 = vmatprep.subr.bf16.mxu0 %v7411_v7  ;;  %3171 = vmatprep.subr.bf16.mxu1 %v7414_v8  ;;  %v7498_v7 = vld [vmem:[%s10736_s1 + $0x974] ss:$28 sps:$4 sm:$0xff]   ;;  %v7493_v8 = vld [vmem:[%s10736_s1 + $0x968] ss:$28 sps:$4 sm:$0xff]  }
  0x77   :  { %3008 = vmatpush1.bf16.msra.mxu0 %v7409_v9  ;;  %3172 = vmatpush1.bf16.msra.mxu1 %v7412_v10  ;;  %v7496_v9 = vld [vmem:[%s10736_s1 + $0x970] ss:$28 sps:$4 sm:$0xff]   ;;  %v7501_v10 = vld [vmem:[%s10736_s1 + $0x9a4] ss:$28 sps:$4 sm:$0xff]  }
  0x78   :  { %3009 = vmatprep.subr.bf16.mxu0 %v7417_v11  ;;  %3173 = vmatprep.subr.bf16.mxu1 %v7420_v12  ;;  %v7504_v11 = vld [vmem:[%s10736_s1 + $0x9ac] ss:$28 sps:$4 sm:$0xff]   ;;  %v7499_v12 = vld [vmem:[%s10736_s1 + $0x9a0] ss:$28 sps:$4 sm:$0xff]  }
  0x7b   :  { %3010 = vmatpush1.bf16.msra.mxu0 %v7415_v13  ;;  %3174 = vmatpush1.bf16.msra.mxu1 %v7418_v14  ;;  %v7502_v13 = vld [vmem:[%s10736_s1 + $0x9a8] ss:$28 sps:$4 sm:$0xff]   ;;  %v7507_v14 = vld [vmem:[%s10736_s1 + $0x9dc] ss:$28 sps:$4 sm:$0xff]  }
  0x7c   :  { %3011 = vmatprep.subr.bf16.mxu0 %v7423_v16  ;;  %3175 = vmatprep.subr.bf16.mxu1 %v7426_v17  ;;  %v7510_v16 = vld [vmem:[%s10736_s1 + $0x9e4] ss:$28 sps:$4 sm:$0xff]   ;;  %v7505_v17 = vld [vmem:[%s10736_s1 + $0x9d8] ss:$28 sps:$4 sm:$0xff]  }
  0x7f   :  { %3012 = vmatpush1.bf16.msra.mxu0 %v7421_v18  ;;  %3176 = vmatpush1.bf16.msra.mxu1 %v7424_v19  ;;  %v7508_v18 = vld [vmem:[%s10736_s1 + $0x9e0] ss:$28 sps:$4 sm:$0xff]   ;;  %v7513_v19 = vld [vmem:[%s10736_s1 + $0xa14] ss:$28 sps:$4 sm:$0xff]  }
  0x80   :  { %3022 = vmatprep.subr.bf16.mxu0 %v7429_v23  ;;  %3186 = vmatprep.subr.bf16.mxu1 %v7432_v24  ;;  %v7516_v23 = vld [vmem:[%s10736_s1 + $0xa1c] ss:$28 sps:$4 sm:$0xff]   ;;  %v7511_v24 = vld [vmem:[%s10736_s1 + $0xa10] ss:$28 sps:$4 sm:$0xff]  }
  0x82   :  { %3014 = vmatmul.mubr.bf16.vlgmr.msra.gmra.mrb[0].mxu0 %v8762_v26  ;;  %3178 = vmatmul.mubr.bf16.vlgmr.msra.gmra.mrb[0].mxu1 %v8762_v26 }
  0x83   :  { %3023 = vmatpush1.bf16.msra.mxu0 %v7427_v25  ;;  %3187 = vmatpush1.bf16.msra.mxu1 %v7430_v27  ;;  %v7514_v25 = vld [vmem:[%s10736_s1 + $0xa18] ss:$28 sps:$4 sm:$0xff]   ;;  %v7519_v27 = vld [vmem:[%s10736_s1 + $0xa4c] ss:$28 sps:$4 sm:$0xff]  }
  0x84   :  { %3024 = vmatprep.subr.bf16.mxu0 %v7435_v28  ;;  %3188 = vmatprep.subr.bf16.mxu1 %v7438_v29  ;;  %v7522_v28 = vld [vmem:[%s10736_s1 + $0xa54] ss:$28 sps:$4 sm:$0xff]   ;;  %v7517_v29 = vld [vmem:[%s10736_s1 + $0xa48] ss:$28 sps:$4 sm:$0xff]  }
  0x85   :  { %3054 = vmatprep.mubr.bf16.mxu0 %v8564_v20  ;;  %3218 = vmatprep.mubr.bf16.mxu1 %v8564_v20 }
  0x87   :  { %3025 = vmatpush1.bf16.msra.mxu0 %v7433_v30  ;;  %3189 = vmatpush1.bf16.msra.mxu1 %v7436_v31  ;;  %v7520_v30 = vld [vmem:[%s10736_s1 + $0xa50] ss:$28 sps:$4 sm:$0xff]   ;;  %v7526_v31 = vld [vmem:[%s10736_s1 + $0xa84] ss:$28 sps:$4 sm:$0xff]  }
  0x88   :  { %3026 = vmatprep.subr.bf16.mxu0 %v7441_v32  ;;  %3190 = vmatprep.subr.bf16.mxu1 %v7444_v33  ;;  %v7529_v32 = vld [vmem:[%s10736_s1 + $0xa8c] ss:$28 sps:$4 sm:$0xff]   ;;  %v7524_v33 = vld [vmem:[%s10736_s1 + $0xa80] ss:$28 sps:$4 sm:$0xff]  }
  0x8b   :  { %3027 = vmatpush1.bf16.msra.mxu0 %v7439_v34  ;;  %3191 = vmatpush1.bf16.msra.mxu1 %v7442_v35  ;;  %v7527_v34 = vld [vmem:[%s10736_s1 + $0xa88] ss:$28 sps:$4 sm:$0xff]   ;;  %v7532_v35 = vld [vmem:[%s10736_s1 + $0xabc] ss:$28 sps:$4 sm:$0xff]  }
  0x8c   :  { %3028 = vmatprep.subr.bf16.mxu0 %v7447_v36  ;;  %3192 = vmatprep.subr.bf16.mxu1 %v7450_v37  ;;  %v7535_v36 = vld [vmem:[%s10736_s1 + $0xac4] ss:$28 sps:$4 sm:$0xff]   ;;  %v8971_v37 = vcombine.high %v8564_v20, %v8564_v20 }
  0x8f   :  { %3029 = vmatpush1.bf16.msra.mxu0 %v7445_v38  ;;  %3193 = vmatpush1.bf16.msra.mxu1 %v7448_v39  ;;  %v7530_v38 = vld [vmem:[%s10736_s1 + $0xab8] ss:$28 sps:$4 sm:$0xff]   ;;  %v7533_v39 = vld [vmem:[%s10736_s1 + $0xac0] ss:$28 sps:$4 sm:$0xff]  }
  0x90   :  { %3030 = vmatprep.subr.bf16.mxu0 %v7453_v40  ;;  %3194 = vmatprep.subr.bf16.mxu1 %v7456_v41  ;;  %v7538_v40 = vld [vmem:[%s10736_s1 + $0xaf4] ss:$28 sps:$4 sm:$0xff]   ;;  %v7541_v41 = vld [vmem:[%s10736_s1 + $0xafc] ss:$28 sps:$4 sm:$0xff]  }
  0x93   :  { %3031 = vmatpush1.bf16.msra.mxu0 %v7451_v43  ;;  %3195 = vmatpush1.bf16.msra.mxu1 %v7454_v44  ;;  %v7536_v43 = vld [vmem:[%s10736_s1 + $0xaf0] ss:$28 sps:$4 sm:$0xff]   ;;  %v7539_v44 = vld [vmem:[%s10736_s1 + $0xaf8] ss:$28 sps:$4 sm:$0xff]  }
  0x94   :  { %3032 = vmatprep.subr.bf16.mxu0 %v7459_v45  ;;  %3196 = vmatprep.subr.bf16.mxu1 %v7462_v46  ;;  %v7544_v45 = vld [vmem:[%s10736_s1 + $0xb2c] ss:$28 sps:$4 sm:$0xff]   ;;  %v7547_v46 = vld [vmem:[%s10736_s1 + $0xb34] ss:$28 sps:$4 sm:$0xff]  }
  0x97   :  { %3033 = vmatpush1.bf16.msra.mxu0 %v7457_v47  ;;  %3197 = vmatpush1.bf16.msra.mxu1 %v7460_v48  ;;  %v7542_v47 = vld [vmem:[%s10736_s1 + $0xb28] ss:$28 sps:$4 sm:$0xff]   ;;  %v7545_v48 = vld [vmem:[%s10736_s1 + $0xb30] ss:$28 sps:$4 sm:$0xff]  }
  0x98   :  { %3034 = vmatprep.subr.bf16.mxu0 %v7465_v49  ;;  %3198 = vmatprep.subr.bf16.mxu1 %v7468_v50  ;;  %v7550_v49 = vld [vmem:[%s10736_s1 + $0xb64] ss:$28 sps:$4 sm:$0xff]   ;;  %v7553_v50 = vld [vmem:[%s10736_s1 + $0xb6c] ss:$28 sps:$4 sm:$0xff]  }
  0x9b   :  { %3035 = vmatpush1.bf16.msra.mxu0 %v7463_v51  ;;  %3199 = vmatpush1.bf16.msra.mxu1 %v7466_v52  ;;  %v7548_v51 = vld [vmem:[%s10736_s1 + $0xb60] ss:$28 sps:$4 sm:$0xff]   ;;  %v7551_v52 = vld [vmem:[%s10736_s1 + $0xb68] ss:$28 sps:$4 sm:$0xff]  }
  0x9c   :  { %3036 = vmatprep.subr.bf16.mxu0 %v7471_v53  ;;  %3200 = vmatprep.subr.bf16.mxu1 %v7474_v54  ;;  %v7556_v53 = vld [vmem:[%s10736_s1 + $0xb9c] ss:$28 sps:$4 sm:$0xff]   ;;  %v7559_v54 = vld [vmem:[%s10736_s1 + $0xba4] ss:$28 sps:$4 sm:$0xff]  }
  0x9f   :  { %3037 = vmatpush1.bf16.msra.mxu0 %v7469_v55  ;;  %3201 = vmatpush1.bf16.msra.mxu1 %v7472_v56  ;;  %v7554_v55 = vld [vmem:[%s10736_s1 + $0xb98] ss:$28 sps:$4 sm:$0xff]   ;;  %v7557_v56 = vld [vmem:[%s10736_s1 + $0xba0] ss:$28 sps:$4 sm:$0xff]  }
  0xa0   :  { %3038 = vmatprep.subr.bf16.mxu0 %v7477_v57  ;;  %3202 = vmatprep.subr.bf16.mxu1 %v7480_v58  ;;  %v7562_v57 = vld [vmem:[%s10736_s1 + $0xbd4] ss:$28 sps:$4 sm:$0xff]   ;;  %v7565_v58 = vld [vmem:[%s10736_s1 + $0xbdc] ss:$28 sps:$4 sm:$0xff]  }
  0xa3   :  { %3039 = vmatpush1.bf16.msra.mxu0 %v7475_v59  ;;  %3203 = vmatpush1.bf16.msra.mxu1 %v7478_v61  ;;  %v7560_v59 = vld [vmem:[%s10736_s1 + $0xbd0] ss:$28 sps:$4 sm:$0xff]   ;;  %v7563_v61 = vld [vmem:[%s10736_s1 + $0xbd8] ss:$28 sps:$4 sm:$0xff]  }
  0xa4   :  { %3040 = vmatprep.subr.bf16.mxu0 %v7483_v62  ;;  %3204 = vmatprep.subr.bf16.mxu1 %v7486_v63  ;;  %v7568_v62 = vld [vmem:[%s10736_s1 + $0xc0c] ss:$28 sps:$4 sm:$0xff]   ;;  %v7571_v63 = vld [vmem:[%s10736_s1 + $0xc14] ss:$28 sps:$4 sm:$0xff]  }
  0xa7   :  { %3041 = vmatpush1.bf16.msra.mxu0 %v7481_v0  ;;  %3205 = vmatpush1.bf16.msra.mxu1 %v7484_v1  ;;  %v7566_v0 = vld [vmem:[%s10736_s1 + $0xc08] ss:$28 sps:$4 sm:$0xff]   ;;  %v7569_v1 = vld [vmem:[%s10736_s1 + $0xc10] ss:$28 sps:$4 sm:$0xff]  }
  0xa8   :  { %3042 = vmatprep.subr.bf16.mxu0 %v7489_v2  ;;  %3206 = vmatprep.subr.bf16.mxu1 %v7492_v3  ;;  %v7574_v2 = vld [vmem:[%s10736_s1 + $0xc44] ss:$28 sps:$4 sm:$0xff]   ;;  %v7577_v3 = vld [vmem:[%s10736_s1 + $0xc4c] ss:$28 sps:$4 sm:$0xff]  }
  0xab   :  { %3043 = vmatpush1.bf16.msra.mxu0 %v7487_v4  ;;  %3207 = vmatpush1.bf16.msra.mxu1 %v7490_v5  ;;  %v7572_v4 = vld [vmem:[%s10736_s1 + $0xc40] ss:$28 sps:$4 sm:$0xff]   ;;  %v7575_v5 = vld [vmem:[%s10736_s1 + $0xc48] ss:$28 sps:$4 sm:$0xff]  }
  0xac   :  { %3044 = vmatprep.subr.bf16.mxu0 %v7495_v6  ;;  %3208 = vmatprep.subr.bf16.mxu1 %v7498_v7  ;;  %v7580_v6 = vld [vmem:[%s10736_s1 + $0xc7c] ss:$28 sps:$4 sm:$0xff]   ;;  %v7583_v7 = vld [vmem:[%s10736_s1 + $0xc84] ss:$28 sps:$4 sm:$0xff]  }
  0xaf   :  { %3045 = vmatpush1.bf16.msra.mxu0 %v7493_v8  ;;  %3209 = vmatpush1.bf16.msra.mxu1 %v7496_v9  ;;  %v7578_v8 = vld [vmem:[%s10736_s1 + $0xc78] ss:$28 sps:$4 sm:$0xff]   ;;  %v7581_v9 = vld [vmem:[%s10736_s1 + $0xc80] ss:$28 sps:$4 sm:$0xff]  }
  0xb0   :  { %3046 = vmatprep.subr.bf16.mxu0 %v7501_v10  ;;  %3210 = vmatprep.subr.bf16.mxu1 %v7504_v11  ;;  %v7586_v10 = vld [vmem:[%s10736_s1 + $0xcb4] ss:$28 sps:$4 sm:$0xff]   ;;  %v7589_v11 = vld [vmem:[%s10736_s1 + $0xcbc] ss:$28 sps:$4 sm:$0xff]  }
  0xb3   :  { %3047 = vmatpush1.bf16.msra.mxu0 %v7499_v12  ;;  %3211 = vmatpush1.bf16.msra.mxu1 %v7502_v13  ;;  %v7584_v12 = vld [vmem:[%s10736_s1 + $0xcb0] ss:$28 sps:$4 sm:$0xff]   ;;  %v7587_v13 = vld [vmem:[%s10736_s1 + $0xcb8] ss:$28 sps:$4 sm:$0xff]  }
  0xb4   :  { %3048 = vmatprep.subr.bf16.mxu0 %v7507_v14  ;;  %3212 = vmatprep.subr.bf16.mxu1 %v7510_v16  ;;  %v7592_v14 = vld [vmem:[%s10736_s1 + $0xcec] ss:$28 sps:$4 sm:$0xff]   ;;  %v7595_v16 = vld [vmem:[%s10736_s1 + $0xcf4] ss:$28 sps:$4 sm:$0xff]  }
  0xb7   :  { %3049 = vmatpush1.bf16.msra.mxu0 %v7505_v17  ;;  %3213 = vmatpush1.bf16.msra.mxu1 %v7508_v18  ;;  %v7590_v17 = vld [vmem:[%s10736_s1 + $0xce8] ss:$28 sps:$4 sm:$0xff]   ;;  %v7593_v18 = vld [vmem:[%s10736_s1 + $0xcf0] ss:$28 sps:$4 sm:$0xff]  }
  0xb8   :  { %3050 = vmatprep.subr.bf16.mxu0 %v7513_v19  ;;  %3214 = vmatprep.subr.bf16.mxu1 %v7516_v23  ;;  %v7598_v19 = vld [vmem:[%s10736_s1 + $0xd24] ss:$28 sps:$4 sm:$0xff]   ;;  %v7601_v23 = vld [vmem:[%s10736_s1 + $0xd2c] ss:$28 sps:$4 sm:$0xff]  }
  0xbb   :  { %3051 = vmatpush1.bf16.msra.mxu0 %v7511_v24  ;;  %3215 = vmatpush1.bf16.msra.mxu1 %v7514_v25  ;;  %v7596_v24 = vld [vmem:[%s10736_s1 + $0xd20] ss:$28 sps:$4 sm:$0xff]   ;;  %v7599_v25 = vld [vmem:[%s10736_s1 + $0xd28] ss:$28 sps:$4 sm:$0xff]  }
  0xbc   :  { %3052 = vmatprep.subr.bf16.mxu0 %v7519_v27  ;;  %3216 = vmatprep.subr.bf16.mxu1 %v7522_v28  ;;  %v7604_v27 = vld [vmem:[%s10736_s1 + $0xd5c] ss:$28 sps:$4 sm:$0xff]   ;;  %v7607_v28 = vld [vmem:[%s10736_s1 + $0xd64] ss:$28 sps:$4 sm:$0xff]  }
  0xbf   :  { %3053 = vmatpush1.bf16.msra.mxu0 %v7517_v29  ;;  %3217 = vmatpush1.bf16.msra.mxu1 %v7520_v30  ;;  %v7602_v29 = vld [vmem:[%s10736_s1 + $0xd58] ss:$28 sps:$4 sm:$0xff]   ;;  %v7605_v30 = vld [vmem:[%s10736_s1 + $0xd60] ss:$28 sps:$4 sm:$0xff]  }
  0xc0   :  { %3063 = vmatprep.subr.bf16.mxu0 %v7526_v31  ;;  %3227 = vmatprep.subr.bf16.mxu1 %v7529_v32  ;;  %v7610_v31 = vld [vmem:[%s10736_s1 + $0xd94] ss:$28 sps:$4 sm:$0xff]   ;;  %v7613_v32 = vld [vmem:[%s10736_s1 + $0xd9c] ss:$28 sps:$4 sm:$0xff]  }
  0xc2   :  { %3055 = vmatmul.mubr.bf16.vlgmr.msra.gmra.mrb[0].mxu0 %v8567_v21  ;;  %3219 = vmatmul.mubr.bf16.vlgmr.msra.gmra.mrb[0].mxu1 %v8567_v21 }
  0xc3   :  { %3064 = vmatpush1.bf16.msra.mxu0 %v7524_v33  ;;  %3228 = vmatpush1.bf16.msra.mxu1 %v7527_v34  ;;  %v7608_v33 = vld [vmem:[%s10736_s1 + $0xd90] ss:$28 sps:$4 sm:$0xff]   ;;  %v7611_v34 = vld [vmem:[%s10736_s1 + $0xd98] ss:$28 sps:$4 sm:$0xff]  }
  0xc4   :  { %3065 = vmatprep.subr.bf16.mxu0 %v7532_v35  ;;  %3229 = vmatprep.subr.bf16.mxu1 %v7535_v36  ;;  %v7616_v35 = vld [vmem:[%s10736_s1 + $0xdcc] ss:$28 sps:$4 sm:$0xff]   ;;  %v7619_v36 = vld [vmem:[%s10736_s1 + $0xdd4] ss:$28 sps:$4 sm:$0xff]  }
  0xc5   :  { %3095 = vmatprep.mubr.bf16.mxu0 %v8971_v37  ;;  %3259 = vmatprep.mubr.bf16.mxu1 %v8971_v37 }
  0xc7   :  { %3066 = vmatpush1.bf16.msra.mxu0 %v7530_v38  ;;  %3230 = vmatpush1.bf16.msra.mxu1 %v7533_v39  ;;  %v7614_v38 = vld [vmem:[%s10736_s1 + $0xdc8] ss:$28 sps:$4 sm:$0xff]   ;;  %v7617_v39 = vld [vmem:[%s10736_s1 + $0xdd0] ss:$28 sps:$4 sm:$0xff]  }
  0xc8   :  { %3067 = vmatprep.subr.bf16.mxu0 %v7538_v40  ;;  %3231 = vmatprep.subr.bf16.mxu1 %v7541_v41  ;;  %v7622_v40 = vld [vmem:[%s10736_s1 + $0x14] ss:$28 sps:$4 sm:$0xff]  }
  0xc9   :  { %v7641_v41 = vld [vmem:[%s10736_s1 + $0x1d8] ss:$28 sps:$4 sm:$0xff]  }
  0xcb   :  { %3068 = vmatpush1.bf16.msra.mxu0 %v7536_v43  ;;  %3232 = vmatpush1.bf16.msra.mxu1 %v7539_v44  ;;  %v9159_v43 = vcombine.high %v8567_v21, %v8567_v21  ;;  %v7620_v44 = vld [vmem:[%s10736_s1 + $0x10] ss:$28 sps:$4 sm:$0xff]  }
  0xcc   :  { %3069 = vmatprep.subr.bf16.mxu0 %v7544_v45  ;;  %3233 = vmatprep.subr.bf16.mxu1 %v7547_v46  ;;  %v7625_v45 = vld [vmem:[%s10736_s1 + $0x4c] ss:$28 sps:$4 sm:$0xff]   ;;  %v7645_v46 = vld [vmem:[%s10736_s1 + $0x18] ss:$28 sps:$4 sm:$0xff]  }
  0xcf   :  { %3070 = vmatpush1.bf16.msra.mxu0 %v7542_v47  ;;  %3234 = vmatpush1.bf16.msra.mxu1 %v7545_v48  ;;  %v7646_v47 = vld [vmem:[%s10736_s1 + $0x210] ss:$28 sps:$4 sm:$0xff]   ;;  %v7623_v48 = vld [vmem:[%s10736_s1 + $0x48] ss:$28 sps:$4 sm:$0xff]  }
  0xd0   :  { %3071 = vmatprep.subr.bf16.mxu0 %v7550_v49  ;;  %3235 = vmatprep.subr.bf16.mxu1 %v7553_v50  ;;  %v7628_v49 = vld [vmem:[%s10736_s1 + $0x84] ss:$28 sps:$4 sm:$0xff]   ;;  %v7650_v50 = vld [vmem:[%s10736_s1 + $0x50] ss:$28 sps:$4 sm:$0xff]  }
  0xd3   :  { %3072 = vmatpush1.bf16.msra.mxu0 %v7548_v51  ;;  %3236 = vmatpush1.bf16.msra.mxu1 %v7551_v52  ;;  %v7651_v51 = vld [vmem:[%s10736_s1 + $0x248] ss:$28 sps:$4 sm:$0xff]   ;;  %v7626_v52 = vld [vmem:[%s10736_s1 + $0x80] ss:$28 sps:$4 sm:$0xff]  }
  0xd4   :  { %3073 = vmatprep.subr.bf16.mxu0 %v7556_v53  ;;  %3237 = vmatprep.subr.bf16.mxu1 %v7559_v54  ;;  %v7655_v53 = vld [vmem:[%s10736_s1 + $0x88] ss:$28 sps:$4 sm:$0xff]   ;;  %v7631_v54 = vld [vmem:[%s10736_s1 + $0xbc] ss:$28 sps:$4 sm:$0xff]  }
  0xd7   :  { %3074 = vmatpush1.bf16.msra.mxu0 %v7554_v55  ;;  %3238 = vmatpush1.bf16.msra.mxu1 %v7557_v56  ;;  %v7629_v55 = vld [vmem:[%s10736_s1 + $0xb8] ss:$28 sps:$4 sm:$0xff]  }
  0xd8   :  { %3075 = vmatprep.subr.bf16.mxu0 %v7562_v57  ;;  %3239 = vmatprep.subr.bf16.mxu1 %v7565_v58  ;;  %v7634_v56 = vld [vmem:[%s10736_s1 + $0xf4] ss:$28 sps:$4 sm:$0xff]   ;;  %v7660_v57 = vld [vmem:[%s10736_s1 + $0xc0] ss:$28 sps:$4 sm:$0xff]  }
  0xd9   :  { %v7661_v58 = vld [vmem:[%s10736_s1 + $0x2b8] ss:$28 sps:$4 sm:$0xff]  }
  0xdb   :  { %3076 = vmatpush1.bf16.msra.mxu0 %v7560_v59  ;;  %3240 = vmatpush1.bf16.msra.mxu1 %v7563_v61  ;;  %v7632_v59 = vld [vmem:[%s10736_s1 + $0xf0] ss:$28 sps:$4 sm:$0xff]  }
  0xdc   :  { %3077 = vmatprep.subr.bf16.mxu0 %v7568_v62  ;;  %3241 = vmatprep.subr.bf16.mxu1 %v7571_v63  ;;  %v7637_v61 = vld [vmem:[%s10736_s1 + $0x12c] ss:$28 sps:$4 sm:$0xff]   ;;  %v7665_v62 = vld [vmem:[%s10736_s1 + $0xf8] ss:$28 sps:$4 sm:$0xff]  }
  0xdd   :  { %v7666_v63 = vld [vmem:[%s10736_s1 + $0x2f0] ss:$28 sps:$4 sm:$0xff]  }
  0xdf   :  { %3078 = vmatpush1.bf16.msra.mxu0 %v7566_v0  ;;  %3242 = vmatpush1.bf16.msra.mxu1 %v7569_v1  ;;  %v7635_v0 = vld [vmem:[%s10736_s1 + $0x128] ss:$28 sps:$4 sm:$0xff]  }
  0xe0   :  { %3079 = vmatprep.subr.bf16.mxu0 %v7574_v2  ;;  %3243 = vmatprep.subr.bf16.mxu1 %v7577_v3  ;;  %v7640_v1 = vld [vmem:[%s10736_s1 + $0x164] ss:$28 sps:$4 sm:$0xff]   ;;  %v7670_v2 = vld [vmem:[%s10736_s1 + $0x130] ss:$28 sps:$4 sm:$0xff]  }
  0xe1   :  { %v7671_v3 = vld [vmem:[%s10736_s1 + $0x328] ss:$28 sps:$4 sm:$0xff]  }
  0xe3   :  { %3080 = vmatpush1.bf16.msra.mxu0 %v7572_v4  ;;  %3244 = vmatpush1.bf16.msra.mxu1 %v7575_v5  ;;  %v7638_v4 = vld [vmem:[%s10736_s1 + $0x160] ss:$28 sps:$4 sm:$0xff]  }
  0xe4   :  { %3081 = vmatprep.subr.bf16.mxu0 %v7580_v6  ;;  %3245 = vmatprep.subr.bf16.mxu1 %v7583_v7  ;;  %v7644_v5 = vld [vmem:[%s10736_s1 + $0x19c] ss:$28 sps:$4 sm:$0xff]   ;;  %v7675_v6 = vld [vmem:[%s10736_s1 + $0x168] ss:$28 sps:$4 sm:$0xff]  }
  0xe5   :  { %v7676_v7 = vld [vmem:[%s10736_s1 + $0x360] ss:$28 sps:$4 sm:$0xff]  }
  0xe7   :  { %3082 = vmatpush1.bf16.msra.mxu0 %v7578_v8  ;;  %3246 = vmatpush1.bf16.msra.mxu1 %v7581_v9  ;;  %v7642_v8 = vld [vmem:[%s10736_s1 + $0x198] ss:$28 sps:$4 sm:$0xff]   ;;  %v7680_v9 = vld [vmem:[%s10736_s1 + $0x1a0] ss:$28 sps:$4 sm:$0xff]  }
  0xe8   :  { %3083 = vmatprep.subr.bf16.mxu0 %v7586_v10  ;;  %3247 = vmatprep.subr.bf16.mxu1 %v7589_v11  ;;  %v7649_v10 = vld [vmem:[%s10736_s1 + $0x1d4] ss:$28 sps:$4 sm:$0xff]  }
  0xe9   :  { %v7681_v11 = vld [vmem:[%s10736_s1 + $0x558] ss:$28 sps:$4 sm:$0xff]  }
  0xeb   :  { %3084 = vmatpush1.bf16.msra.mxu0 %v7584_v12  ;;  %3248 = vmatpush1.bf16.msra.mxu1 %v7587_v13  ;;  %v7647_v12 = vld [vmem:[%s10736_s1 + $0x1d0] ss:$28 sps:$4 sm:$0xff]   ;;  %v7685_v13 = vld [vmem:[%s10736_s1 + $0x398] ss:$28 sps:$4 sm:$0xff]  }
  0xec   :  { %3085 = vmatprep.subr.bf16.mxu0 %v7592_v14  ;;  %3249 = vmatprep.subr.bf16.mxu1 %v7595_v16  ;;  %v7654_v14 = vld [vmem:[%s10736_s1 + $0x20c] ss:$28 sps:$4 sm:$0xff]  }
  0xed   :  { %v7686_v16 = vld [vmem:[%s10736_s1 + $0x590] ss:$28 sps:$4 sm:$0xff]  }
  0xef   :  { %3086 = vmatpush1.bf16.msra.mxu0 %v7590_v17  ;;  %3250 = vmatpush1.bf16.msra.mxu1 %v7593_v18  ;;  %v7652_v17 = vld [vmem:[%s10736_s1 + $0x208] ss:$28 sps:$4 sm:$0xff]   ;;  %v7690_v18 = vld [vmem:[%s10736_s1 + $0x3d0] ss:$28 sps:$4 sm:$0xff]  }
  0xf0   :  { %3087 = vmatprep.subr.bf16.mxu0 %v7598_v19  ;;  %3251 = vmatprep.subr.bf16.mxu1 %v7601_v23  ;;  %v7659_v19 = vld [vmem:[%s10736_s1 + $0x244] ss:$28 sps:$4 sm:$0xff]  }
  0xf1   :  { %v7691_v23 = vld [vmem:[%s10736_s1 + $0x5c8] ss:$28 sps:$4 sm:$0xff]  }
  0xf3   :  { %3088 = vmatpush1.bf16.msra.mxu0 %v7596_v24  ;;  %3252 = vmatpush1.bf16.msra.mxu1 %v7599_v25  ;;  %v7657_v24 = vld [vmem:[%s10736_s1 + $0x240] ss:$28 sps:$4 sm:$0xff]   ;;  %v7695_v25 = vld [vmem:[%s10736_s1 + $0x408] ss:$28 sps:$4 sm:$0xff]  }
  0xf4   :  { %3089 = vmatprep.subr.bf16.mxu0 %v7604_v27  ;;  %3253 = vmatprep.subr.bf16.mxu1 %v7607_v28  ;;  %v7664_v27 = vld [vmem:[%s10736_s1 + $0x27c] ss:$28 sps:$4 sm:$0xff]  }
  0xf5   :  { %v7696_v28 = vld [vmem:[%s10736_s1 + $0x600] ss:$28 sps:$4 sm:$0xff]  }
  0xf7   :  { %3090 = vmatpush1.bf16.msra.mxu0 %v7602_v29  ;;  %3254 = vmatpush1.bf16.msra.mxu1 %v7605_v30  ;;  %v7662_v29 = vld [vmem:[%s10736_s1 + $0x278] ss:$28 sps:$4 sm:$0xff]  }
  0xf8   :  { %3091 = vmatprep.subr.bf16.mxu0 %v7610_v31  ;;  %3255 = vmatprep.subr.bf16.mxu1 %v7613_v32  ;;  %v7669_v30 = vld [vmem:[%s10736_s1 + $0x2b4] ss:$28 sps:$4 sm:$0xff]   ;;  %v7700_v31 = vld [vmem:[%s10736_s1 + $0x440] ss:$28 sps:$4 sm:$0xff]  }
  0xf9   :  { %v7701_v32 = vld [vmem:[%s10736_s1 + $0x638] ss:$28 sps:$4 sm:$0xff]  }
  0xfb   :  { %3092 = vmatpush1.bf16.msra.mxu0 %v7608_v33  ;;  %3256 = vmatpush1.bf16.msra.mxu1 %v7611_v34  ;;  %v7667_v33 = vld [vmem:[%s10736_s1 + $0x2b0] ss:$28 sps:$4 sm:$0xff]  }
  0xfc   :  { %3093 = vmatprep.subr.bf16.mxu0 %v7616_v35  ;;  %3257 = vmatprep.subr.bf16.mxu1 %v7619_v36  ;;  %v7674_v34 = vld [vmem:[%s10736_s1 + $0x2ec] ss:$28 sps:$4 sm:$0xff]   ;;  %v7705_v35 = vld [vmem:[%s10736_s1 + $0x478] ss:$28 sps:$4 sm:$0xff]  }
  0xfd   :  { %v7706_v36 = vld [vmem:[%s10736_s1 + $0x670] ss:$28 sps:$4 sm:$0xff]  }
  0xff   :  { %3094 = vmatpush1.bf16.msra.mxu0 %v7614_v38  ;;  %3258 = vmatpush1.bf16.msra.mxu1 %v7617_v39  ;;  %v7672_v38 = vld [vmem:[%s10736_s1 + $0x2e8] ss:$28 sps:$4 sm:$0xff]  }
 0x100   :  { %3268 = vmatprep.subr.bf16.mxu0 %v7622_v40  ;;  %6928 = vmatprep.subr.bf16.mxu1 %v7641_v41  ;;  %v7679_v39 = vld [vmem:[%s10736_s1 + $0x324] ss:$28 sps:$4 sm:$0xff]   ;;  %v7710_v40 = vld [vmem:[%s10736_s1 + $0x4b0] ss:$28 sps:$4 sm:$0xff]  }
 0x101   :  { %v7711_v41 = vld [vmem:[%s10736_s1 + $0x6a8] ss:$28 sps:$4 sm:$0xff]  }
 0x102   :  { %3096 = vmatmul.mubr.bf16.vlgmr.msra.gmra.mrb[0].mxu0 %v9159_v43  ;;  %3260 = vmatmul.mubr.bf16.vlgmr.msra.gmra.mrb[0].mxu1 %v9159_v43 }
 0x103   :  { %3269 = vmatpush1.bf16.msra.mxu0 %v7620_v44  ;;  %6929 = vmatpush3.bf16.msra.mxu1 %v7645_v46  ;;  %v7677_v44 = vld [vmem:[%s10736_s1 + $0x320] ss:$28 sps:$4 sm:$0xff]   ;;  %v7715_v46 = vld [vmem:[%s10736_s1 + $0x4e8] ss:$28 sps:$4 sm:$0xff]  }
 0x104   :  { %3270 = vmatprep.subr.bf16.mxu0 %v7625_v45  ;;  %6930 = vmatprep.subr.bf16.mxu1 %v7646_v47  ;;  %v7684_v45 = vld [vmem:[%s10736_s1 + $0x35c] ss:$28 sps:$4 sm:$0xff]  }
 0x105   :  { %3464 = vmatprep.mubr.bf16.mxu1 %v8498_v60  ;;  %3300 = vmatprep.mubr.bf16.mxu0 %v8498_v60  ;;  %v7656_v60 = vld [vmem:[%s10736_s1 + $0x280] ss:$28 sps:$4 sm:$0xff]  }
 0x106   :  { %v7716_v47 = vld [vmem:[%s10736_s1 + $0x6e0] ss:$28 sps:$4 sm:$0xff]  }
 0x107   :  { %3271 = vmatpush1.bf16.msra.mxu0 %v7623_v48  ;;  %6931 = vmatpush3.bf16.msra.mxu1 %v7650_v50  ;;  %v7682_v48 = vld [vmem:[%s10736_s1 + $0x358] ss:$28 sps:$4 sm:$0xff]   ;;  %v7720_v50 = vld [vmem:[%s10736_s1 + $0x520] ss:$28 sps:$4 sm:$0xff]  }
 0x108   :  { %3272 = vmatprep.subr.bf16.mxu0 %v7628_v49  ;;  %6932 = vmatprep.subr.bf16.mxu1 %v7651_v51  ;;  %v7689_v49 = vld [vmem:[%s10736_s1 + $0x394] ss:$28 sps:$4 sm:$0xff]  }
 0x109   :  { %v7721_v51 = vld [vmem:[%s10736_s1 + $0x8d8] ss:$28 sps:$4 sm:$0xff]  }
 0x10b   :  { %3273 = vmatpush1.bf16.msra.mxu0 %v7626_v52  ;;  %6933 = vmatpush3.bf16.msra.mxu1 %v7655_v53  ;;  %v7687_v52 = vld [vmem:[%s10736_s1 + $0x390] ss:$28 sps:$4 sm:$0xff]  }
 0x10c   :  { %3274 = vmatprep.subr.bf16.mxu0 %v7631_v54  ;;  %6934 = vmatprep.subr.bf16.mxu1 %v7656_v60  ;;  %v7694_v53 = vld [vmem:[%s10736_s1 + $0x3cc] ss:$28 sps:$4 sm:$0xff]   ;;  %v7725_v54 = vld [vmem:[%s10736_s1 + $0x718] ss:$28 sps:$4 sm:$0xff]  }
 0x10d   :  { %v7726_v60 = vld [vmem:[%s10736_s1 + $0x910] ss:$28 sps:$4 sm:$0xff]  }
 0x10f   :  { %3275 = vmatpush1.bf16.msra.mxu0 %v7629_v55  ;;  %6935 = vmatpush3.bf16.msra.mxu1 %v7660_v57  ;;  %v7692_v55 = vld [vmem:[%s10736_s1 + $0x3c8] ss:$28 sps:$4 sm:$0xff]   ;;  %v7730_v57 = vld [vmem:[%s10736_s1 + $0x750] ss:$28 sps:$4 sm:$0xff]  }
 0x110   :  { %3276 = vmatprep.subr.bf16.mxu0 %v7634_v56  ;;  %6936 = vmatprep.subr.bf16.mxu1 %v7661_v58  ;;  %v7699_v56 = vld [vmem:[%s10736_s1 + $0x404] ss:$28 sps:$4 sm:$0xff]  }
 0x111   :  { %v7697_v58 = vld [vmem:[%s10736_s1 + $0x400] ss:$28 sps:$4 sm:$0xff]  }
 0x113   :  { %3277 = vmatpush1.bf16.msra.mxu0 %v7632_v59  ;;  %6937 = vmatpush3.bf16.msra.mxu1 %v7665_v62  ;;  %v7704_v59 = vld [vmem:[%s10736_s1 + $0x43c] ss:$28 sps:$4 sm:$0xff]  }
 0x114   :  { %3278 = vmatprep.subr.bf16.mxu0 %v7637_v61  ;;  %6938 = vmatprep.subr.bf16.mxu1 %v7666_v63  ;;  %v7735_v61 = vld [vmem:[%s10736_s1 + $0x788] ss:$28 sps:$4 sm:$0xff]   ;;  %v7702_v62 = vld [vmem:[%s10736_s1 + $0x438] ss:$28 sps:$4 sm:$0xff]  }
 0x115   :  { %v7709_v63 = vld [vmem:[%s10736_s1 + $0x474] ss:$28 sps:$4 sm:$0xff]  }
 0x117   :  { %3279 = vmatpush1.bf16.msra.mxu0 %v7635_v0  ;;  %6939 = vmatpush3.bf16.msra.mxu1 %v7670_v2  ;;  %v7740_v0 = vld [vmem:[%s10736_s1 + $0x7c0] ss:$28 sps:$4 sm:$0xff]   ;;  %v7707_v2 = vld [vmem:[%s10736_s1 + $0x470] ss:$28 sps:$4 sm:$0xff]  }
 0x118   :  { %3280 = vmatprep.subr.bf16.mxu0 %v7640_v1  ;;  %6940 = vmatprep.subr.bf16.mxu1 %v7671_v3  ;;  %v7741_v1 = vld [vmem:[%s10736_s1 + $0x9b8] ss:$28 sps:$4 sm:$0xff]   ;;  %v7714_v3 = vld [vmem:[%s10736_s1 + $0x4ac] ss:$28 sps:$4 sm:$0xff]  }
 0x11b   :  { %3281 = vmatpush1.bf16.msra.mxu0 %v7638_v4  ;;  %6941 = vmatpush3.bf16.msra.mxu1 %v7675_v6  ;;  %v7745_v4 = vld [vmem:[%s10736_s1 + $0x7f8] ss:$28 sps:$4 sm:$0xff]   ;;  %v7712_v6 = vld [vmem:[%s10736_s1 + $0x4a8] ss:$28 sps:$4 sm:$0xff]  }
 0x11c   :  { %3282 = vmatprep.subr.bf16.mxu0 %v7644_v5  ;;  %6942 = vmatprep.subr.bf16.mxu1 %v7676_v7  ;;  %v7746_v5 = vld [vmem:[%s10736_s1 + $0x9f0] ss:$28 sps:$4 sm:$0xff]  }
 0x11d   :  { %v7750_v7 = vld [vmem:[%s10736_s1 + $0x830] ss:$28 sps:$4 sm:$0xff]  }
 0x11f   :  { %3283 = vmatpush1.bf16.msra.mxu0 %v7642_v8  ;;  %6943 = vmatpush3.bf16.msra.mxu1 %v7680_v9  ;;  %v7719_v8 = vld [vmem:[%s10736_s1 + $0x4e4] ss:$28 sps:$4 sm:$0xff]  }
 0x120   :  { %3284 = vmatprep.subr.bf16.mxu0 %v7649_v10  ;;  %6950 = vmatprep.subr.bf16.mxu1 %v7681_v11  ;;  %v7751_v9 = vld [vmem:[%s10736_s1 + $0xa28] ss:$28 sps:$4 sm:$0xff]   ;;  %v7717_v10 = vld [vmem:[%s10736_s1 + $0x4e0] ss:$28 sps:$4 sm:$0xff]  }
 0x121   :  { %v7755_v11 = vld [vmem:[%s10736_s1 + $0x868] ss:$28 sps:$4 sm:$0xff]  }
 0x122   :  { %3465 = vmatmul.mubr.bf16.vlgmr.msra.gmra.mrb[4].mxu1 %v8552_v15 }
 0x123   :  { %3285 = vmatpush1.bf16.msra.mxu0 %v7647_v12  ;;  %6951 = vmatpush3.bf16.msra.mxu1 %v7685_v13  ;;  %v7724_v12 = vld [vmem:[%s10736_s1 + $0x51c] ss:$28 sps:$4 sm:$0xff]  }
 0x124   :  { %3286 = vmatprep.subr.bf16.mxu0 %v7654_v14  ;;  %6952 = vmatprep.subr.bf16.mxu1 %v7686_v16  ;;  %v7756_v13 = vld [vmem:[%s10736_s1 + $0xa60] ss:$28 sps:$4 sm:$0xff]   ;;  %v7722_v14 = vld [vmem:[%s10736_s1 + $0x518] ss:$28 sps:$4 sm:$0xff]  }
 0x125   :  { %3504 = vmatprep.mubr.bf16.mxu1 %v8571_v22  ;;  %v7760_v16 = vld [vmem:[%s10736_s1 + $0x8a0] ss:$28 sps:$4 sm:$0xff]  }
 0x127   :  { %3287 = vmatpush1.bf16.msra.mxu0 %v7652_v17  ;;  %6953 = vmatpush3.bf16.msra.mxu1 %v7690_v18  ;;  %v7729_v17 = vld [vmem:[%s10736_s1 + $0x554] ss:$28 sps:$4 sm:$0xff]  }
 0x128   :  { %3288 = vmatprep.subr.bf16.mxu0 %v7659_v19  ;;  %6954 = vmatprep.subr.bf16.mxu1 %v7691_v23  ;;  %v7761_v18 = vld [vmem:[%s10736_s1 + $0xc58] ss:$28 sps:$4 sm:$0xff]   ;;  %v7727_v19 = vld [vmem:[%s10736_s1 + $0x550] ss:$28 sps:$4 sm:$0xff]  }
 0x129   :  { %v7765_v23 = vld [vmem:[%s10736_s1 + $0xa98] ss:$28 sps:$4 sm:$0xff]  }
 0x12b   :  { %3289 = vmatpush1.bf16.msra.mxu0 %v7657_v24  ;;  %6955 = vmatpush3.bf16.msra.mxu1 %v7695_v25  ;;  %v7734_v24 = vld [vmem:[%s10736_s1 + $0x58c] ss:$28 sps:$4 sm:$0xff]  }
 0x12c   :  { %3290 = vmatprep.subr.bf16.mxu0 %v7664_v27  ;;  %6956 = vmatprep.subr.bf16.mxu1 %v7696_v28  ;;  %v7766_v25 = vld [vmem:[%s10736_s1 + $0xc90] ss:$28 sps:$4 sm:$0xff]   ;;  %v7732_v27 = vld [vmem:[%s10736_s1 + $0x588] ss:$28 sps:$4 sm:$0xff]  }
 0x12d   :  { %v7770_v28 = vld [vmem:[%s10736_s1 + $0xad0] ss:$28 sps:$4 sm:$0xff]  }
 0x12f   :  { %3291 = vmatpush1.bf16.msra.mxu0 %v7662_v29  ;;  %6957 = vmatpush3.bf16.msra.mxu1 %v7700_v31  ;;  %v7739_v29 = vld [vmem:[%s10736_s1 + $0x5c4] ss:$28 sps:$4 sm:$0xff]  }
 0x130   :  { %3292 = vmatprep.subr.bf16.mxu0 %v7669_v30  ;;  %6958 = vmatprep.subr.bf16.mxu1 %v7701_v32  ;;  %v7771_v30 = vld [vmem:[%s10736_s1 + $0xcc8] ss:$28 sps:$4 sm:$0xff]   ;;  %v7737_v31 = vld [vmem:[%s10736_s1 + $0x5c0] ss:$28 sps:$4 sm:$0xff]  }
 0x131   :  { %v7775_v32 = vld [vmem:[%s10736_s1 + $0xb08] ss:$28 sps:$4 sm:$0xff]  }
 0x133   :  { %3293 = vmatpush1.bf16.msra.mxu0 %v7667_v33  ;;  %6959 = vmatpush3.bf16.msra.mxu1 %v7705_v35  ;;  %v7744_v33 = vld [vmem:[%s10736_s1 + $0x5fc] ss:$28 sps:$4 sm:$0xff]  }
 0x134   :  { %3294 = vmatprep.subr.bf16.mxu0 %v7674_v34  ;;  %6960 = vmatprep.subr.bf16.mxu1 %v7706_v36  ;;  %v7776_v34 = vld [vmem:[%s10736_s1 + $0xd00] ss:$28 sps:$4 sm:$0xff]   ;;  %v7742_v35 = vld [vmem:[%s10736_s1 + $0x5f8] ss:$28 sps:$4 sm:$0xff]  }
 0x135   :  { %v7780_v36 = vld [vmem:[%s10736_s1 + $0xb40] ss:$28 sps:$4 sm:$0xff]  }
 0x137   :  { %3295 = vmatpush1.bf16.msra.mxu0 %v7672_v38  ;;  %6961 = vmatpush3.bf16.msra.mxu1 %v7710_v40  ;;  %v7749_v38 = vld [vmem:[%s10736_s1 + $0x634] ss:$28 sps:$4 sm:$0xff]  }
 0x138   :  { %3296 = vmatprep.subr.bf16.mxu0 %v7679_v39  ;;  %6962 = vmatprep.subr.bf16.mxu1 %v7711_v41  ;;  %v7781_v39 = vld [vmem:[%s10736_s1 + $0xd38] ss:$28 sps:$4 sm:$0xff]   ;;  %v7747_v40 = vld [vmem:[%s10736_s1 + $0x630] ss:$28 sps:$4 sm:$0xff]  }
 0x139   :  { %v7785_v41 = vld [vmem:[%s10736_s1 + $0xb78] ss:$28 sps:$4 sm:$0xff]  }
 0x13b   :  { %3297 = vmatpush1.bf16.msra.mxu0 %v7677_v44  ;;  %6963 = vmatpush3.bf16.msra.mxu1 %v7715_v46  ;;  %v7754_v44 = vld [vmem:[%s10736_s1 + $0x66c] ss:$28 sps:$4 sm:$0xff]  }
 0x13c   :  { %3298 = vmatprep.subr.bf16.mxu0 %v7684_v45  ;;  %6964 = vmatprep.subr.bf16.mxu1 %v7716_v47  ;;  %v7786_v45 = vld [vmem:[%s10736_s1 + $0xd70] ss:$28 sps:$4 sm:$0xff]   ;;  %v7752_v46 = vld [vmem:[%s10736_s1 + $0x668] ss:$28 sps:$4 sm:$0xff]  }
 0x13d   :  { %v7790_v47 = vld [vmem:[%s10736_s1 + $0xbb0] ss:$28 sps:$4 sm:$0xff]  }
 0x13f   :  { %3299 = vmatpush1.bf16.msra.mxu0 %v7682_v48  ;;  %6965 = vmatpush3.bf16.msra.mxu1 %v7720_v50  ;;  %v7759_v48 = vld [vmem:[%s10736_s1 + $0x6a4] ss:$28 sps:$4 sm:$0xff]  }
 0x140   :  { %3309 = vmatprep.subr.bf16.mxu0 %v7689_v49  ;;  %6972 = vmatprep.subr.bf16.mxu1 %v7721_v51  ;;  %v7791_v49 = vld [vmem:[%s10736_s1 + $0xda8] ss:$28 sps:$4 sm:$0xff]   ;;  %v7757_v50 = vld [vmem:[%s10736_s1 + $0x6a0] ss:$28 sps:$4 sm:$0xff]  }
 0x141   :  { %v7795_v51 = vld [vmem:[%s10736_s1 + $0xbe8] ss:$28 sps:$4 sm:$0xff]  }
 0x142   :  { %3301 = vmatmul.mubr.bf16.vlgmr.msra.gmra.mrb[4].mxu0 %v8552_v15  ;;  %3505 = vmatmul.mubr.bf16.vlgmr.msra.gmra.mrb[8].mxu1 %v8762_v26  ;;  %v7731_v15 = vld [vmem:[%s10736_s1 + $0x948] ss:$28 sps:$4 sm:$0xff]  }
 0x143   :  { %3310 = vmatpush1.bf16.msra.mxu0 %v7687_v52  ;;  %6973 = vmatpush3.bf16.msra.mxu1 %v7725_v54  ;;  %v7764_v52 = vld [vmem:[%s10736_s1 + $0x6dc] ss:$28 sps:$4 sm:$0xff]  }
 0x144   :  { %3311 = vmatprep.subr.bf16.mxu0 %v7694_v53  ;;  %6974 = vmatprep.subr.bf16.mxu1 %v7726_v60  ;;  %v7796_v53 = vld [vmem:[%s10736_s1 + $0xde0] ss:$28 sps:$4 sm:$0xff]   ;;  %v7762_v54 = vld [vmem:[%s10736_s1 + $0x6d8] ss:$28 sps:$4 sm:$0xff]  }
 0x145   :  { %3544 = vmatprep.mubr.bf16.mxu1 %v8564_v20  ;;  %3341 = vmatprep.mubr.bf16.mxu0 %v8571_v22  ;;  %v7736_v22 = vld [vmem:[%s10736_s1 + $0x980] ss:$28 sps:$4 sm:$0xff]  }
 0x146   :  { %v7800_v60 = vld [vmem:[%s10736_s1 + $0xc20] ss:$28 sps:$4 sm:$0xff]  }
 0x147   :  { %3312 = vmatpush1.bf16.msra.mxu0 %v7692_v55  ;;  %6975 = vmatpush3.bf16.msra.mxu1 %v7730_v57  ;;  %v7769_v55 = vld [vmem:[%s10736_s1 + $0x714] ss:$28 sps:$4 sm:$0xff]  }
 0x148   :  { %3313 = vmatprep.subr.bf16.mxu0 %v7699_v56  ;;  %6976 = vmatprep.subr.bf16.mxu1 %v7731_v15  ;;  %v7803_v56 = vld [vmem:[%s10738_s3 + $0x4] ss:$20 sps:$4 sm:$0xff]   ;;  %v7767_v57 = vld [vmem:[%s10736_s1 + $0x710] ss:$28 sps:$4 sm:$0xff]  }
 0x149   :  { %v7774_v15 = vld [vmem:[%s10736_s1 + $0x74c] ss:$28 sps:$4 sm:$0xff]  }
 0x14b   :  { %3314 = vmatpush1.bf16.msra.mxu0 %v7697_v58  ;;  %6977 = vmatpush3.bf16.msra.mxu1 %v7735_v61  ;;  %v7801_v58 = vld [vmem:[%s10738_s3] ss:$20 sps:$4 sm:$0xff]   ;;  %v7772_v61 = vld [vmem:[%s10736_s1 + $0x748] ss:$28 sps:$4 sm:$0xff]  }
 0x14c   :  { %3315 = vmatprep.subr.bf16.mxu0 %v7704_v59  ;;  %6978 = vmatprep.subr.bf16.mxu1 %v7736_v22  ;;  %v7809_v59 = vld [vmem:[%s10738_s3 + $0x2c] ss:$20 sps:$4 sm:$0xff]   ;;  %v7807_v22 = vld [vmem:[%s10738_s3 + $0x28] ss:$20 sps:$4 sm:$0xff]  }
 0x14f   :  { %3316 = vmatpush1.bf16.msra.mxu0 %v7702_v62  ;;  %6979 = vmatpush3.bf16.msra.mxu1 %v7740_v0  ;;  %v7779_v62 = vld [vmem:[%s10736_s1 + $0x784] ss:$28 sps:$4 sm:$0xff]   ;;  %v7784_v0 = vld [vmem:[%s10736_s1 + $0x7bc] ss:$28 sps:$4 sm:$0xff]  }
 0x150   :  { %3317 = vmatprep.subr.bf16.mxu0 %v7709_v63  ;;  %6980 = vmatprep.subr.bf16.mxu1 %v7741_v1  ;;  %v7815_v63 = vld [vmem:[%s10738_s3 + $0x54] ss:$20 sps:$4 sm:$0xff]   ;;  %v7813_v1 = vld [vmem:[%s10738_s3 + $0x50] ss:$20 sps:$4 sm:$0xff]  }
 0x153   :  { %3318 = vmatpush1.bf16.msra.mxu0 %v7707_v2  ;;  %6981 = vmatpush3.bf16.msra.mxu1 %v7745_v4  ;;  %v7821_v2 = vld [vmem:[%s10738_s3 + $0x7c] ss:$20 sps:$4 sm:$0xff]   ;;  %v7819_v4 = vld [vmem:[%s10738_s3 + $0x78] ss:$20 sps:$4 sm:$0xff]  }
 0x154   :  { %3319 = vmatprep.subr.bf16.mxu0 %v7714_v3  ;;  %6982 = vmatprep.subr.bf16.mxu1 %v7746_v5  ;;  %v7789_v3 = vld [vmem:[%s10736_s1 + $0x7f4] ss:$28 sps:$4 sm:$0xff]   ;;  %v7827_v5 = vld [vmem:[%s10738_s3 + $0xa4] ss:$20 sps:$4 sm:$0xff]  }
 0x157   :  { %3320 = vmatpush1.bf16.msra.mxu0 %v7712_v6  ;;  %6983 = vmatpush3.bf16.msra.mxu1 %v7750_v7  ;;  %v7787_v6 = vld [vmem:[%s10736_s1 + $0x7f0] ss:$28 sps:$4 sm:$0xff]  }
 0x158   :  { %3321 = vmatprep.subr.bf16.mxu0 %v7719_v8  ;;  %6984 = vmatprep.subr.bf16.mxu1 %v7751_v9  ;;  %v7794_v7 = vld [vmem:[%s10736_s1 + $0x82c] ss:$28 sps:$4 sm:$0xff]   ;;  %v7825_v8 = vld [vmem:[%s10738_s3 + $0xa0] ss:$20 sps:$4 sm:$0xff]  }
 0x159   :  { %v7833_v9 = vld [vmem:[%s10738_s3 + $0xcc] ss:$20 sps:$4 sm:$0xff]  }
 0x15b   :  { %3322 = vmatpush1.bf16.msra.mxu0 %v7717_v10  ;;  %6985 = vmatpush3.bf16.msra.mxu1 %v7755_v11  ;;  %v7792_v10 = vld [vmem:[%s10736_s1 + $0x828] ss:$28 sps:$4 sm:$0xff]  }
 0x15c   :  { %3323 = vmatprep.subr.bf16.mxu0 %v7724_v12  ;;  %6986 = vmatprep.subr.bf16.mxu1 %v7756_v13  ;;  %v7799_v11 = vld [vmem:[%s10736_s1 + $0x864] ss:$28 sps:$4 sm:$0xff]   ;;  %v7831_v12 = vld [vmem:[%s10738_s3 + $0xc8] ss:$20 sps:$4 sm:$0xff]  }
 0x15d   :  { %v7839_v13 = vld [vmem:[%s10738_s3 + $0xf4] ss:$20 sps:$4 sm:$0xff]  }
 0x15f   :  { %3324 = vmatpush1.bf16.msra.mxu0 %v7722_v14  ;;  %6987 = vmatpush3.bf16.msra.mxu1 %v7760_v16  ;;  %v7797_v14 = vld [vmem:[%s10736_s1 + $0x860] ss:$28 sps:$4 sm:$0xff]  }
 0x160   :  { %3325 = vmatprep.subr.bf16.mxu0 %v7729_v17  ;;  %6994 = vmatprep.subr.bf16.mxu1 %v7761_v18  ;;  %v7806_v16 = vld [vmem:[%s10736_s1 + $0x89c] ss:$28 sps:$4 sm:$0xff]   ;;  %v7837_v17 = vld [vmem:[%s10738_s3 + $0xf0] ss:$20 sps:$4 sm:$0xff]  }
 0x161   :  { %v7845_v18 = vld [vmem:[%s10738_s3 + $0x11c] ss:$20 sps:$4 sm:$0xff]  }
 0x162   :  { %3545 = vmatmul.mubr.bf16.vlgmr.msra.gmra.mrb[12].mxu1 %v8567_v21 }
 0x163   :  { %3326 = vmatpush1.bf16.msra.mxu0 %v7727_v19  ;;  %6995 = vmatpush3.bf16.msra.mxu1 %v7765_v23  ;;  %v7804_v19 = vld [vmem:[%s10736_s1 + $0x898] ss:$28 sps:$4 sm:$0xff]  }
 0x164   :  { %3327 = vmatprep.subr.bf16.mxu0 %v7734_v24  ;;  %6996 = vmatprep.subr.bf16.mxu1 %v7766_v25  ;;  %v7843_v23 = vld [vmem:[%s10738_s3 + $0x118] ss:$20 sps:$4 sm:$0xff]   ;;  %v7812_v24 = vld [vmem:[%s10736_s1 + $0x8d4] ss:$28 sps:$4 sm:$0xff]  }
 0x165   :  { %3584 = vmatprep.mubr.bf16.mxu1 %v8971_v37  ;;  %v7851_v25 = vld [vmem:[%s10738_s3 + $0x144] ss:$20 sps:$4 sm:$0xff]  }
 0x167   :  { %3328 = vmatpush1.bf16.msra.mxu0 %v7732_v27  ;;  %6997 = vmatpush3.bf16.msra.mxu1 %v7770_v28  ;;  %v7810_v27 = vld [vmem:[%s10736_s1 + $0x8d0] ss:$28 sps:$4 sm:$0xff]  }
 0x168   :  { %3329 = vmatprep.subr.bf16.mxu0 %v7739_v29  ;;  %6998 = vmatprep.subr.bf16.mxu1 %v7771_v30  ;;  %v7818_v28 = vld [vmem:[%s10736_s1 + $0x90c] ss:$28 sps:$4 sm:$0xff]   ;;  %v7849_v29 = vld [vmem:[%s10738_s3 + $0x140] ss:$20 sps:$4 sm:$0xff]  }
 0x169   :  { %v7857_v30 = vld [vmem:[%s10738_s3 + $0x16c] ss:$20 sps:$4 sm:$0xff]  }
 0x16b   :  { %3330 = vmatpush1.bf16.msra.mxu0 %v7737_v31  ;;  %6999 = vmatpush3.bf16.msra.mxu1 %v7775_v32  ;;  %v7816_v31 = vld [vmem:[%s10736_s1 + $0x908] ss:$28 sps:$4 sm:$0xff]  }
 0x16c   :  { %3331 = vmatprep.subr.bf16.mxu0 %v7744_v33  ;;  %7000 = vmatprep.subr.bf16.mxu1 %v7776_v34  ;;  %v7824_v32 = vld [vmem:[%s10736_s1 + $0x944] ss:$28 sps:$4 sm:$0xff]   ;;  %v7855_v33 = vld [vmem:[%s10738_s3 + $0x168] ss:$20 sps:$4 sm:$0xff]  }
 0x16d   :  { %v7863_v34 = vld [vmem:[%s10738_s3 + $0x194] ss:$20 sps:$4 sm:$0xff]  }
 0x16f   :  { %3332 = vmatpush1.bf16.msra.mxu0 %v7742_v35  ;;  %7001 = vmatpush3.bf16.msra.mxu1 %v7780_v36  ;;  %v7822_v35 = vld [vmem:[%s10736_s1 + $0x940] ss:$28 sps:$4 sm:$0xff]  }
 0x170   :  { %3333 = vmatprep.subr.bf16.mxu0 %v7749_v38  ;;  %7002 = vmatprep.subr.bf16.mxu1 %v7781_v39  ;;  %v7830_v36 = vld [vmem:[%s10736_s1 + $0x97c] ss:$28 sps:$4 sm:$0xff]   ;;  %v7861_v38 = vld [vmem:[%s10738_s3 + $0x190] ss:$20 sps:$4 sm:$0xff]  }
 0x171   :  { %v7869_v39 = vld [vmem:[%s10738_s3 + $0x1bc] ss:$20 sps:$4 sm:$0xff]  }
 0x173   :  { %3334 = vmatpush1.bf16.msra.mxu0 %v7747_v40  ;;  %7003 = vmatpush3.bf16.msra.mxu1 %v7785_v41  ;;  %v7828_v40 = vld [vmem:[%s10736_s1 + $0x978] ss:$28 sps:$4 sm:$0xff]  }
 0x174   :  { %3335 = vmatprep.subr.bf16.mxu0 %v7754_v44  ;;  %7004 = vmatprep.subr.bf16.mxu1 %v7786_v45  ;;  %v7836_v41 = vld [vmem:[%s10736_s1 + $0x9b4] ss:$28 sps:$4 sm:$0xff]   ;;  %v7867_v44 = vld [vmem:[%s10738_s3 + $0x1b8] ss:$20 sps:$4 sm:$0xff]  }
 0x175   :  { %v7875_v45 = vld [vmem:[%s10738_s3 + $0x1e4] ss:$20 sps:$4 sm:$0xff]  }
 0x177   :  { %3336 = vmatpush1.bf16.msra.mxu0 %v7752_v46  ;;  %7005 = vmatpush3.bf16.msra.mxu1 %v7790_v47  ;;  %v7834_v46 = vld [vmem:[%s10736_s1 + $0x9b0] ss:$28 sps:$4 sm:$0xff]  }
 0x178   :  { %3337 = vmatprep.subr.bf16.mxu0 %v7759_v48  ;;  %7006 = vmatprep.subr.bf16.mxu1 %v7791_v49  ;;  %v7842_v47 = vld [vmem:[%s10736_s1 + $0x9ec] ss:$28 sps:$4 sm:$0xff]   ;;  %v7873_v48 = vld [vmem:[%s10738_s3 + $0x1e0] ss:$20 sps:$4 sm:$0xff]  }
 0x179   :  { %v7881_v49 = vld [vmem:[%s10738_s3 + $0x20c] ss:$20 sps:$4 sm:$0xff]  }
 0x17b   :  { %3338 = vmatpush1.bf16.msra.mxu0 %v7757_v50  ;;  %7007 = vmatpush3.bf16.msra.mxu1 %v7795_v51  ;;  %v7840_v50 = vld [vmem:[%s10736_s1 + $0x9e8] ss:$28 sps:$4 sm:$0xff]  }
 0x17c   :  { %3339 = vmatprep.subr.bf16.mxu0 %v7764_v52  ;;  %7008 = vmatprep.subr.bf16.mxu1 %v7796_v53  ;;  %v7848_v51 = vld [vmem:[%s10736_s1 + $0xa24] ss:$28 sps:$4 sm:$0xff]   ;;  %v7879_v52 = vld [vmem:[%s10738_s3 + $0x208] ss:$20 sps:$4 sm:$0xff]  }
 0x17d   :  { %v7887_v53 = vld [vmem:[%s10738_s3 + $0x234] ss:$20 sps:$4 sm:$0xff]  }
 0x17f   :  { %3340 = vmatpush1.bf16.msra.mxu0 %v7762_v54  ;;  %7009 = vmatpush3.bf16.msra.mxu1 %v7800_v60  ;;  %v7846_v54 = vld [vmem:[%s10736_s1 + $0xa20] ss:$28 sps:$4 sm:$0xff]  }
 0x180   :  { %3350 = vmatprep.subr.bf16.mxu0 %v7769_v55  ;;  %5237 = vmatprep.subr.bf16.mxu1 %v7803_v56  ;;  %v7854_v60 = vld [vmem:[%s10736_s1 + $0xa5c] ss:$28 sps:$4 sm:$0xff]   ;;  %v7885_v55 = vld [vmem:[%s10738_s3 + $0x230] ss:$20 sps:$4 sm:$0xff]  }
 0x181   :  { %v7893_v56 = vld [vmem:[%s10738_s3 + $0x25c] ss:$20 sps:$4 sm:$0xff]  }
 0x182   :  { %3342 = vmatmul.mubr.bf16.vlgmr.msra.gmra.mrb[4].mxu0 %v8762_v26  ;;  %3585 = vmatmul.mubr.bf16.vlgmr.msra.gmra.mrb[16].mxu1 %v9159_v43  ;;  %v7777_v26 = vld [vmem:[%s10736_s1 + $0x780] ss:$28 sps:$4 sm:$0xff]  }
 0x183   :  { %3351 = vmatpush1.bf16.msra.mxu0 %v7767_v57  ;;  %5238 = vmatpush1.bf16.msra.mxu1 %v7801_v58  ;;  %v7852_v57 = vld [vmem:[%s10736_s1 + $0xa58] ss:$28 sps:$4 sm:$0xff]  }
 0x184   :  { %3352 = vmatprep.subr.bf16.mxu0 %v7774_v15  ;;  %5239 = vmatprep.subr.bf16.mxu1 %v7809_v59  ;;  %v7860_v15 = vld [vmem:[%s10736_s1 + $0xa94] ss:$28 sps:$4 sm:$0xff]   ;;  %v7891_v58 = vld [vmem:[%s10738_s3 + $0x258] ss:$20 sps:$4 sm:$0xff]  }
 0x185   :  { %3382 = vmatprep.mubr.bf16.mxu0 %v8564_v20  ;;  %v7782_v20 = vld [vmem:[%s10736_s1 + $0x7b8] ss:$28 sps:$4 sm:$0xff]  }
 0x186   :  { %v7899_v59 = vld [vmem:[%s10738_s3 + $0x284] ss:$20 sps:$4 sm:$0xff]  }
 0x187   :  { %3353 = vmatpush1.bf16.msra.mxu0 %v7772_v61  ;;  %5240 = vmatpush1.bf16.msra.mxu1 %v7807_v22  ;;  %v7858_v61 = vld [vmem:[%s10736_s1 + $0xa90] ss:$28 sps:$4 sm:$0xff]  }
 0x188   :  { %3354 = vmatprep.subr.bf16.mxu0 %v7779_v62  ;;  %5241 = vmatprep.subr.bf16.mxu1 %v7815_v63  ;;  %v7866_v22 = vld [vmem:[%s10736_s1 + $0xacc] ss:$28 sps:$4 sm:$0xff]   ;;  %v7872_v63 = vld [vmem:[%s10736_s1 + $0xb04] ss:$28 sps:$4 sm:$0xff]  }
 0x189   :  { %v7864_v62 = vld [vmem:[%s10736_s1 + $0xac8] ss:$28 sps:$4 sm:$0xff]  }
 0x18b   :  { %3355 = vmatpush1.bf16.msra.mxu0 %v7777_v26  ;;  %5242 = vmatpush1.bf16.msra.mxu1 %v7813_v1  ;;  %v7870_v26 = vld [vmem:[%s10736_s1 + $0xb00] ss:$28 sps:$4 sm:$0xff]   ;;  %v545_v1 = vsub.s32 0, %v8452_v42 }
 0x18c   :  { %3356 = vmatprep.subr.bf16.mxu0 %v7784_v0  ;;  %5243 = vmatprep.subr.bf16.mxu1 %v7821_v2  ;;  %v7876_v0 = vld [vmem:[%s10736_s1 + $0xb38] ss:$28 sps:$4 sm:$0xff]   ;;  %v7882_v2 = vld [vmem:[%s10736_s1 + $0xb70] ss:$28 sps:$4 sm:$0xff]  }
 0x18f   :  { %3357 = vmatpush1.bf16.msra.mxu0 %v7782_v20  ;;  %5244 = vmatpush1.bf16.msra.mxu1 %v7819_v4  ;;  %v9785_v20 = vld [vmem:[%s10737_s2] sm:$0x7f]  ;;  %v557_v4 = vsub.s32 3, %v8452_v42 }
 0x190   :  { %3358 = vmatprep.subr.bf16.mxu0 %v7789_v3  ;;  %5245 = vmatprep.subr.bf16.mxu1 %v7827_v5  ;;  %v549_v3 = vsub.s32 1, %v8452_v42  ;;  %v7890_v5 = vld [vmem:[%s10736_s1 + $0xbac] ss:$28 sps:$4 sm:$0xff]  }
 0x193   :  { %3359 = vmatpush1.bf16.msra.mxu0 %v7787_v6  ;;  %5246 = vmatpush1.bf16.msra.mxu1 %v7825_v8  ;;  %v546_v6 = vrot.slane %v9785_v20, %v545_v1  ;;  %v558_v8 = vrot.slane %v9785_v20, %v557_v4 }
 0x194   :  { %3360 = vmatprep.subr.bf16.mxu0 %v7794_v7  ;;  %5247 = vmatprep.subr.bf16.mxu1 %v7833_v9  ;;  %v550_v7 = vrot.slane %v9785_v20, %v549_v3  ;;  %v7888_v9 = vld [vmem:[%s10736_s1 + $0xba8] ss:$28 sps:$4 sm:$0xff]  }
 0x197   :  { %3361 = vmatpush1.bf16.msra.mxu0 %v7792_v10  ;;  %5248 = vmatpush1.bf16.msra.mxu1 %v7831_v12  ;;  %v7896_v10 = vld [vmem:[%s10736_s1 + $0xbe4] ss:$28 sps:$4 sm:$0xff]  }
 0x198   :  { %3362 = vmatprep.subr.bf16.mxu0 %v7799_v11  ;;  %5249 = vmatprep.subr.bf16.mxu1 %v7839_v13 }
 0x19b   :  { %3363 = vmatpush1.bf16.msra.mxu0 %v7797_v14  ;;  %5250 = vmatpush1.bf16.msra.mxu1 %v7837_v17 }
 0x19c   :  { %3364 = vmatprep.subr.bf16.mxu0 %v7806_v16  ;;  %5251 = vmatprep.subr.bf16.mxu1 %v7845_v18 }
 0x19f   :  { %3365 = vmatpush1.bf16.msra.mxu0 %v7804_v19  ;;  %5252 = vmatpush1.bf16.msra.mxu1 %v7843_v23 }
 0x1a0   :  { %3366 = vmatprep.subr.bf16.mxu0 %v7812_v24  ;;  %5253 = vmatprep.subr.bf16.mxu1 %v7851_v25  ;;  %v7894_v24 = vld [vmem:[%s10736_s1 + $0xbe0] ss:$28 sps:$4 sm:$0xff]  }
 0x1a1   :  { %v7902_v25 = vld [vmem:[%s10736_s1 + $0xc1c] ss:$28 sps:$4 sm:$0xff]  }
 0x1a3   :  { %3367 = vmatpush1.bf16.msra.mxu0 %v7810_v27  ;;  %5254 = vmatpush1.bf16.msra.mxu1 %v7849_v29 }
 0x1a4   :  { %3368 = vmatprep.subr.bf16.mxu0 %v7818_v28  ;;  %5255 = vmatprep.subr.bf16.mxu1 %v7857_v30 }
 0x1a7   :  { %3369 = vmatpush1.bf16.msra.mxu0 %v7816_v31  ;;  %5256 = vmatpush1.bf16.msra.mxu1 %v7855_v33  ;;  %v7900_v33 = vld [vmem:[%s10736_s1 + $0xc18] ss:$28 sps:$4 sm:$0xff]  }
 0x1a8   :  { %3370 = vmatprep.subr.bf16.mxu0 %v7824_v32  ;;  %5257 = vmatprep.subr.bf16.mxu1 %v7863_v34  ;;  %v7897_v32 = vld [vmem:[%s10738_s3 + $0x280] ss:$20 sps:$4 sm:$0xff]  }
 0x1ab   :  { %3371 = vmatpush1.bf16.msra.mxu0 %v7822_v35  ;;  %5258 = vmatpush1.bf16.msra.mxu1 %v7861_v38  ;;  %v7905_v35 = vld [vmem:[%s10738_s3 + $0x2ac] ss:$20 sps:$4 sm:$0xff]  }
 0x1ac   :  { %3372 = vmatprep.subr.bf16.mxu0 %v7830_v36  ;;  %5259 = vmatprep.subr.bf16.mxu1 %v7869_v39  ;;  %v7908_v36 = vld [vmem:[%s10736_s1 + $0xc54] ss:$28 sps:$4 sm:$0xff]   ;;  %v7903_v39 = vld [vmem:[%s10738_s3 + $0x2a8] ss:$20 sps:$4 sm:$0xff]  }
 0x1af   :  { %3373 = vmatpush1.bf16.msra.mxu0 %v7828_v40  ;;  %5260 = vmatpush1.bf16.msra.mxu1 %v7867_v44  ;;  %v7906_v40 = vld [vmem:[%s10736_s1 + $0xc50] ss:$28 sps:$4 sm:$0xff]   ;;  %v7911_v44 = vld [vmem:[%s10738_s3 + $0x2d4] ss:$20 sps:$4 sm:$0xff]  }
 0x1b0   :  { %3374 = vmatprep.subr.bf16.mxu0 %v7836_v41  ;;  %5261 = vmatprep.subr.bf16.mxu1 %v7875_v45  ;;  %v7914_v45 = vld [vmem:[%s10736_s1 + $0xc8c] ss:$28 sps:$4 sm:$0xff]  }
 0x1b3   :  { %3375 = vmatpush1.bf16.msra.mxu0 %v7834_v46  ;;  %5262 = vmatpush1.bf16.msra.mxu1 %v7873_v48  ;;  %v7909_v46 = vld [vmem:[%s10738_s3 + $0x2d0] ss:$20 sps:$4 sm:$0xff]  }
 0x1b4   :  { %3376 = vmatprep.subr.bf16.mxu0 %v7842_v47  ;;  %5263 = vmatprep.subr.bf16.mxu1 %v7881_v49  ;;  %v7912_v47 = vld [vmem:[%s10736_s1 + $0xc88] ss:$28 sps:$4 sm:$0xff]   ;;  %v7917_v48 = vld [vmem:[%s10738_s3 + $0x2fc] ss:$20 sps:$4 sm:$0xff]  }
 0x1b5   :  { %v7920_v49 = vld [vmem:[%s10736_s1 + $0xcc4] ss:$28 sps:$4 sm:$0xff]  }
 0x1b7   :  { %3377 = vmatpush1.bf16.msra.mxu0 %v7840_v50  ;;  %5264 = vmatpush1.bf16.msra.mxu1 %v7879_v52 }
 0x1b8   :  { %3378 = vmatprep.subr.bf16.mxu0 %v7848_v51  ;;  %5265 = vmatprep.subr.bf16.mxu1 %v7887_v53 }
 0x1bb   :  { %3379 = vmatpush1.bf16.msra.mxu0 %v7846_v54  ;;  %5266 = vmatpush1.bf16.msra.mxu1 %v7885_v55 }
 0x1bc   :  { %3380 = vmatprep.subr.bf16.mxu0 %v7854_v60  ;;  %5267 = vmatprep.subr.bf16.mxu1 %v7893_v56 }
 0x1bf   :  { %3381 = vmatpush1.bf16.msra.mxu0 %v7852_v57  ;;  %5268 = vmatpush1.bf16.msra.mxu1 %v7891_v58 }
 0x1c0   :  { %3391 = vmatprep.subr.bf16.mxu0 %v7860_v15  ;;  %5278 = vmatprep.subr.bf16.mxu1 %v7899_v59 }
 0x1c2   :  { %3383 = vmatmul.mubr.bf16.vlgmr.msra.gmra.mrb[4].mxu0 %v8567_v21  ;;  %v7878_v21 = vld [vmem:[%s10736_s1 + $0xb3c] ss:$28 sps:$4 sm:$0xff]  }
 0x1c3   :  { %3392 = vmatpush1.bf16.msra.mxu0 %v7858_v61  ;;  %3423 = vmatprep.mubr.bf16.mxu0 %v8971_v37  ;;  %v7884_v37 = vld [vmem:[%s10736_s1 + $0xb74] ss:$28 sps:$4 sm:$0xff]  }
 0x1c4   :  { %3393 = vmatprep.subr.bf16.mxu0 %v7866_v22 }
 0x1c7   :  { %3394 = vmatpush1.bf16.msra.mxu0 %v7864_v62 }
 0x1c8   :  { %3395 = vmatprep.subr.bf16.mxu0 %v7872_v63 }
 0x1cb   :  { %3396 = vmatpush1.bf16.msra.mxu0 %v7870_v26 }
 0x1cc   :  { %3397 = vmatprep.subr.bf16.mxu0 %v7878_v21 }
 0x1cf   :  { %3398 = vmatpush1.bf16.msra.mxu0 %v7876_v0 }
 0x1d0   :  { %3399 = vmatprep.subr.bf16.mxu0 %v7884_v37 }
 0x1d3   :  { %3400 = vmatpush1.bf16.msra.mxu0 %v7882_v2 }
 0x1d4   :  { %3401 = vmatprep.subr.bf16.mxu0 %v7890_v5 }
 0x1d5   :  { %v3097_v11 = vpop.f32.mrb[0].mxu0  ;;  %v9807_v12 = vpop.f32.mrb[0].mxu1 }
 0x1d6   :  { %v7160_v13 = vadd.f32 %v3097_v11, %v546_v6  ;;  %v3099_v14 = vpop.f32.mrb[1].mxu0  ;;  %v3263_v16 = vpop.f32.mrb[1].mxu1 }
 0x1d7   :  { %v7161_v17 = vadd.f32 %v3099_v14, %v550_v7  ;;  %v7163_v18 = vadd.f32 %v3263_v16, %v558_v8  ;;  %v3101_v19 = vpop.f32.mrb[2].mxu0  ;;  %v3265_v23 = vpop.f32.mrb[2].mxu1  ;;  %3402 = vmatpush1.bf16.msra.mxu0 %v7888_v9 }
 0x1d8   :  { %v3592_v27 = vmax.f32 %v7160_v13, 0.0  ;;  %v3102_v28 = vpop.f32.mrb[3].mxu0  ;;  %v3266_v29 = vpop.f32.mrb[3].mxu1  ;;  %3403 = vmatprep.subr.bf16.mxu0 %v7896_v10 }
 0x1d9   :  { %v3593_v30 = vmax.f32 %v7161_v17, 0.0  ;;  %v3595_v31 = vmax.f32 %v7163_v18, 0.0 }
 0x1da   :  { %v9829_v38 = vpack.c.bf16 %v3592_v27, %v3592_v27 }
 0x1db   :  { %v9821_v34 = vpack.c.bf16 %v3593_v30, %v3593_v30  ;;  %3404 = vmatpush1.bf16.msra.mxu0 %v7894_v24  ;;  %v9838_v41 = vpack.c.bf16 %v3595_v31, %v3595_v31 }
 0x1dc   :  { %3405 = vmatprep.subr.bf16.mxu0 %v7902_v25 }
 0x1dd   :  { %5269 = vmatprep.mubr.bf16.mxu1 %v9821_v34 }
 0x1de   :  { %5270 = vmatmul.mubr.bf16.vlgmr.msra.gmra.mrb[20].mxu1 %v9829_v38 }
 0x1df   :  { %5279 = vmatpush1.bf16.msra.mxu1 %v7897_v32  ;;  %3406 = vmatpush1.bf16.msra.mxu0 %v7900_v33 }
 0x1e0   :  { %5310 = vmatprep.mubr.bf16.mxu1 %v9838_v41  ;;  %5280 = vmatprep.subr.bf16.mxu1 %v7905_v35 }
 0x1e1   :  { %3407 = vmatprep.subr.bf16.mxu0 %v7908_v36 }
 0x1e3   :  { %5281 = vmatpush1.bf16.msra.mxu1 %v7903_v39  ;;  %3408 = vmatpush1.bf16.msra.mxu0 %v7906_v40 }
 0x1e4   :  { %5282 = vmatprep.subr.bf16.mxu1 %v7911_v44  ;;  %3409 = vmatprep.subr.bf16.mxu0 %v7914_v45 }
 0x1e5   :  { %12 = vsyncpa [#allocation3], 0  ;;  %v7915_v50 = vld [vmem:[%s10738_s3 + $0x2f8] ss:$20 sps:$4 sm:$0xff]   ;;  %v7918_v51 = vld [vmem:[%s10736_s1 + $0xcc0] ss:$28 sps:$4 sm:$0xff]  }
 0x1e6   :  { %v7923_v52 = vld [vmem:[%s10738_s3 + $0x324] ss:$20 sps:$4 sm:$0xff]   ;;  %v7921_v54 = vld [vmem:[%s10738_s3 + $0x320] ss:$20 sps:$4 sm:$0xff]   ;;  %v7927_v57 = vld [vmem:[%s10738_s3 + $0x348] ss:$20 sps:$4 sm:$0xff]  }
 0x1e7   :  { %5283 = vmatpush1.bf16.msra.mxu1 %v7909_v46  ;;  %3410 = vmatpush1.bf16.msra.mxu0 %v7912_v47  ;;  %v7926_v53 = vld [vmem:[%s10736_s1 + $0xcfc] ss:$28 sps:$4 sm:$0xff]   ;;  %v7929_v55 = vld [vmem:[%s10738_s3 + $0x34c] ss:$20 sps:$4 sm:$0xff]   ;;  %v7932_v56 = vld [vmem:[%s10736_s1 + $0xd34] ss:$28 sps:$4 sm:$0xff]  }
 0x1e8   :  { %5284 = vmatprep.subr.bf16.mxu1 %v7917_v48  ;;  %3411 = vmatprep.subr.bf16.mxu0 %v7920_v49  ;;  %v7924_v60 = vld [vmem:[%s10736_s1 + $0xcf8] ss:$28 sps:$4 sm:$0xff]   ;;  %v7930_v15 = vld [vmem:[%s10736_s1 + $0xd30] ss:$28 sps:$4 sm:$0xff]   ;;  %v7936_v22 = vld [vmem:[%s10736_s1 + $0xd68] ss:$28 sps:$4 sm:$0xff]  }
 0x1e9   :  { %v7935_v58 = vld [vmem:[%s10738_s3 + $0x374] ss:$20 sps:$4 sm:$0xff]   ;;  %v7933_v61 = vld [vmem:[%s10738_s3 + $0x370] ss:$20 sps:$4 sm:$0xff]   ;;  %v7939_v26 = vld [vmem:[%s10738_s3 + $0x398] ss:$20 sps:$4 sm:$0xff]  }
 0x1ea   :  { %v7938_v59 = vld [vmem:[%s10736_s1 + $0xd6c] ss:$28 sps:$4 sm:$0xff]   ;;  %v7941_v62 = vld [vmem:[%s10738_s3 + $0x39c] ss:$20 sps:$4 sm:$0xff]   ;;  %v7944_v63 = vld [vmem:[%s10736_s1 + $0xda4] ss:$28 sps:$4 sm:$0xff]  }
 0x1eb   :  { %5285 = vmatpush1.bf16.msra.mxu1 %v7915_v50  ;;  %3412 = vmatpush1.bf16.msra.mxu0 %v7918_v51  ;;  %v7942_v21 = vld [vmem:[%s10736_s1 + $0xda0] ss:$28 sps:$4 sm:$0xff]   ;;  %v7947_v37 = vld [vmem:[%s10738_s3 + $0x3c4] ss:$20 sps:$4 sm:$0xff]   ;;  %v7959_v17 = vld [vmem:[%s10738_s3 + $0x414] ss:$20 sps:$4 sm:$0xff]  }
 0x1ec   :  { %5286 = vmatprep.subr.bf16.mxu1 %v7923_v52  ;;  %3413 = vmatprep.subr.bf16.mxu0 %v7926_v53  ;;  %v7950_v2 = vld [vmem:[%s10736_s1 + $0xddc] ss:$28 sps:$4 sm:$0xff]   ;;  %v7945_v9 = vld [vmem:[%s10738_s3 + $0x3c0] ss:$20 sps:$4 sm:$0xff]   ;;  %v7957_v19 = vld [vmem:[%s10738_s3 + $0x410] ss:$20 sps:$4 sm:$0xff]  }
 0x1ed   :  { %v7948_v10 = vld [vmem:[%s10736_s1 + $0xdd8] ss:$28 sps:$4 sm:$0xff]   ;;  %v7953_v11 = vld [vmem:[%s10738_s3 + $0x3ec] ss:$20 sps:$4 sm:$0xff]   ;;  %v7951_v14 = vld [vmem:[%s10738_s3 + $0x3e8] ss:$20 sps:$4 sm:$0xff]  }
 0x1ee   :  { %v7956_v13 = vld [vmem:[%s10738_s3 + $0xc] ss:$20 sps:$4 sm:$0xff]   ;;  %v7954_v16 = vld [vmem:[%s10738_s3 + $0x8] ss:$20 sps:$4 sm:$0xff]   ;;  %v7960_v23 = vld [vmem:[%s10738_s3 + $0x30] ss:$20 sps:$4 sm:$0xff]  }
 0x1ef   :  { %5287 = vmatpush1.bf16.msra.mxu1 %v7921_v54  ;;  %3414 = vmatpush1.bf16.msra.mxu0 %v7924_v60  ;;  %v7962_v18 = vld [vmem:[%s10738_s3 + $0x34] ss:$20 sps:$4 sm:$0xff]   ;;  %v7965_v24 = vld [vmem:[%s10738_s3 + $0x43c] ss:$20 sps:$4 sm:$0xff]   ;;  %v7963_v25 = vld [vmem:[%s10738_s3 + $0x438] ss:$20 sps:$4 sm:$0xff]  }
 0x1f0   :  { %5288 = vmatprep.subr.bf16.mxu1 %v7929_v55  ;;  %3415 = vmatprep.subr.bf16.mxu0 %v7932_v56  ;;  %v7966_v27 = vld [vmem:[%s10738_s3 + $0x58] ss:$20 sps:$4 sm:$0xff]   ;;  %v7969_v30 = vld [vmem:[%s10738_s3 + $0x460] ss:$20 sps:$4 sm:$0xff]   ;;  %v553_v32 = vsub.s32 2, %v8452_v42  ;;  %v569_v36 = vsub.s32 6, %v8452_v42 }
 0x1f1   :  { %v7971_v28 = vld [vmem:[%s10738_s3 + $0x464] ss:$20 sps:$4 sm:$0xff]   ;;  %v7972_v31 = vld [vmem:[%s10738_s3 + $0x80] ss:$20 sps:$4 sm:$0xff]   ;;  %v7975_v39 = vld [vmem:[%s10738_s3 + $0x488] ss:$20 sps:$4 sm:$0xff]  }
 0x1f2   :  { %v7974_v29 = vld [vmem:[%s10738_s3 + $0x84] ss:$20 sps:$4 sm:$0xff]   ;;  %v7977_v33 = vld [vmem:[%s10738_s3 + $0x48c] ss:$20 sps:$4 sm:$0xff]   ;;  %v7978_v40 = vld [vmem:[%s10738_s3 + $0xa8] ss:$20 sps:$4 sm:$0xff]   ;;  %v554_v44 = vrot.slane %v9785_v20, %v553_v32  ;;  %v570_v47 = vrot.slane %v9785_v20, %v569_v36 }
 0x1f3   :  { %5289 = vmatpush1.bf16.msra.mxu1 %v7927_v57  ;;  %3416 = vmatpush1.bf16.msra.mxu0 %v7930_v15  ;;  %v7980_v35 = vld [vmem:[%s10738_s3 + $0xac] ss:$20 sps:$4 sm:$0xff]   ;;  %v7983_v45 = vld [vmem:[%s10738_s3 + $0x4b4] ss:$20 sps:$4 sm:$0xff]   ;;  %v7981_v48 = vld [vmem:[%s10738_s3 + $0x4b0] ss:$20 sps:$4 sm:$0xff]  }
 0x1f4   :  { %5290 = vmatprep.subr.bf16.mxu1 %v7935_v58  ;;  %3417 = vmatprep.subr.bf16.mxu0 %v7938_v59  ;;  %v7986_v46 = vld [vmem:[%s10738_s3 + $0xd4] ss:$20 sps:$4 sm:$0xff]   ;;  %v7984_v49 = vld [vmem:[%s10738_s3 + $0xd0] ss:$20 sps:$4 sm:$0xff]   ;;  %v7162_v50 = vadd.f32 %v9807_v12, %v554_v44  ;;  %v7987_v12 = vld [vmem:[%s10738_s3 + $0x4d8] ss:$20 sps:$4 sm:$0xff]  }
 0x1f5   :  { %v6944_v0 = vpop.f32.mrb[4].mxu1  ;;  %v7989_v51 = vld [vmem:[%s10738_s3 + $0x4dc] ss:$20 sps:$4 sm:$0xff]   ;;  %v7990_v55 = vld [vmem:[%s10738_s3 + $0xf8] ss:$20 sps:$4 sm:$0xff]   ;;  %vm5233_vm0 = vcmask 261120  }
 0x1f6   :  { %v6945_v5 = vpop.f32.mrb[5].mxu1  ;;  %v7992_v52 = vld [vmem:[%s10738_s3 + $0xfc] ss:$20 sps:$4 sm:$0xff]   ;;  %v3594_v15 = vmax.f32 %v7162_v50, 0.0  ;;  %v7995_v58 = vld [vmem:[%s10738_s3 + $0x124] ss:$20 sps:$4 sm:$0xff]  }
 0x1f7   :  { %5291 = vmatpush1.bf16.msra.mxu1 %v7933_v61  ;;  %3418 = vmatpush1.bf16.msra.mxu0 %v7936_v22  ;;  %v9920_v6 = vadd.f32 %v6945_v5, %v6944_v0  ;;  %v6947_v7 = vpop.f32.mrb[6].mxu1  ;;  %v8070_v61 = vld [vmem:[%s10738_s3 + $0x504] ss:$20 sps:$4 sm:$0xff]   ;;  %v8076_v0 = vld [vmem:[%s10738_s3 + $0x52c] ss:$20 sps:$4 sm:$0xff]   ;;  %vm8293_vm1 = vmmov 0  }
 0x1f8   :  { %5292 = vmatprep.subr.bf16.mxu1 %v7941_v62  ;;  %3419 = vmatprep.subr.bf16.mxu0 %v7944_v63  ;;  %v6948_v8 = vpop.f32.mrb[7].mxu1  ;;  %v7993_v62 = vld [vmem:[%s10738_s3 + $0x120] ss:$20 sps:$4 sm:$0xff]   ;;  %v7999_v7 = vld [vmem:[%s10738_s3 + $0x170] ss:$20 sps:$4 sm:$0xff]   ;;  %vm6046_vm2 = vcmask 1043456  }
 0x1f9   :  { %v3467_v53 = vadd.f32 %v9920_v6, %v570_v47  ;;  %v8068_v63 = vld [vmem:[%s10738_s3 + $0x500] ss:$20 sps:$4 sm:$0xff]   ;;  %v8080_v8 = vld [vmem:[%s10738_s3 + $0x550] ss:$20 sps:$4 sm:$0xff]   ;;  %v8014_v36 = vld [vmem:[%s10738_s3 + $0x238] ss:$20 sps:$4 sm:$0xff]  }
 0x1fa   :  { %v8001_v5 = vld [vmem:[%s10738_s3 + $0x174] ss:$20 sps:$4 sm:$0xff]   ;;  %v8110_v44 = vld [vmem:[%s10738_s3 + $0x618] ss:$20 sps:$4 sm:$0xff]   ;;  %vm6042_vm3 = vcmask 719872   ;;  %s8294_s1 = smov [#allocation2]  }
 0x1fb   :  { %5293 = vmatpush1.bf16.msra.mxu1 %v7939_v26  ;;  %3420 = vmatpush1.bf16.msra.mxu0 %v7942_v21  ;;  %v10036_v26 = vpack.c.bf16 %v3594_v15, %v3594_v15  ;;  %v7998_v21 = vld [vmem:[%s10738_s3 + $0x14c] ss:$20 sps:$4 sm:$0xff]   ;;  %v8082_v6 = vld [vmem:[%s10738_s3 + $0x554] ss:$20 sps:$4 sm:$0xff]   ;;  %v8118_v47 = vld [vmem:[%s10738_s3 + $0x644] ss:$20 sps:$4 sm:$0xff]  }
 0x1fc   :  { %5294 = vmatprep.subr.bf16.mxu1 %v7947_v37  ;;  %3421 = vmatprep.subr.bf16.mxu0 %v7950_v2  ;;  %v7996_v37 = vld [vmem:[%s10738_s3 + $0x148] ss:$20 sps:$4 sm:$0xff]   ;;  %v8116_v50 = vld [vmem:[%s10738_s3 + $0x640] ss:$20 sps:$4 sm:$0xff]   ;;  %s6179_s24 = sshll.u32 %s8294_s1, 4  ;;  %vm6171_vm4 = vcmask 9216   ;;  %s6180_s24 = int_to_ptr.vmem [resolvable:$true] %s6179_s24 }
 0x1fd   :  { %v8074_v2 = vld [vmem:[%s10738_s3 + $0x528] ss:$20 sps:$4 sm:$0xff]   ;;  %p8271_p1 = scmp.lt.s32.totalorder %s6180_s24, %s6180_s24 }
 0x1fe   :  { %v8136_v15 = vld [vmem:[%s10738_s3 + $0x6bc] ss:$20 sps:$4 sm:$0xff]  }
 0x1ff   :  { %5295 = vmatpush1.bf16.msra.mxu1 %v7945_v9  ;;  %3422 = vmatpush1.bf16.msra.mxu0 %v7948_v10  ;;  %v8004_v9 = vld [vmem:[%s10738_s3 + $0x19c] ss:$20 sps:$4 sm:$0xff]  }
 0x200   :  { %5296 = vmatprep.subr.bf16.mxu1 %v7953_v11  ;;  %5401 = vmatprep.subr.bf16.mxu0 %v7956_v13  ;;  %v8088_v10 = vld [vmem:[%s10738_s3 + $0x57c] ss:$20 sps:$4 sm:$0xff]   ;;  %v8002_v11 = vld [vmem:[%s10738_s3 + $0x198] ss:$20 sps:$4 sm:$0xff]  }
 0x201   :  { %v8086_v13 = vld [vmem:[%s10738_s3 + $0x578] ss:$20 sps:$4 sm:$0xff]  }
 0x202   :  { %3424 = vmatmul.mubr.bf16.vlgmr.msra.gmra.mrb[4].mxu0 %v9159_v43  ;;  %v7968_v43 = vld [vmem:[%s10738_s3 + $0x5c] ss:$20 sps:$4 sm:$0xff]  }
 0x203   :  { %5297 = vmatpush1.bf16.msra.mxu1 %v7951_v14  ;;  %5402 = vmatpush1.bf16.msra.mxu0 %v7954_v16  ;;  %v8007_v14 = vld [vmem:[%s10738_s3 + $0x1c4] ss:$20 sps:$4 sm:$0xff]  }
 0x204   :  { %5433 = vmatprep.mubr.bf16.mxu0 %v9821_v34  ;;  %5298 = vmatprep.subr.bf16.mxu1 %v7959_v17  ;;  %v8094_v16 = vld [vmem:[%s10738_s3 + $0x5a4] ss:$20 sps:$4 sm:$0xff]   ;;  %v8005_v17 = vld [vmem:[%s10738_s3 + $0x1c0] ss:$20 sps:$4 sm:$0xff]  }
 0x205   :  { %5403 = vmatprep.subr.bf16.mxu0 %v7962_v18  ;;  %v8092_v18 = vld [vmem:[%s10738_s3 + $0x5a0] ss:$20 sps:$4 sm:$0xff]  }
 0x207   :  { %5299 = vmatpush1.bf16.msra.mxu1 %v7957_v19  ;;  %5404 = vmatpush1.bf16.msra.mxu0 %v7960_v23  ;;  %v8010_v19 = vld [vmem:[%s10738_s3 + $0x1ec] ss:$20 sps:$4 sm:$0xff]  }
 0x208   :  { %5300 = vmatprep.subr.bf16.mxu1 %v7965_v24  ;;  %5405 = vmatprep.subr.bf16.mxu0 %v7968_v43  ;;  %v8100_v23 = vld [vmem:[%s10738_s3 + $0x5cc] ss:$20 sps:$4 sm:$0xff]   ;;  %v8008_v24 = vld [vmem:[%s10738_s3 + $0x1e8] ss:$20 sps:$4 sm:$0xff]  }
 0x209   :  { %v8098_v43 = vld [vmem:[%s10738_s3 + $0x5c8] ss:$20 sps:$4 sm:$0xff]  }
 0x20b   :  { %5301 = vmatpush1.bf16.msra.mxu1 %v7963_v25  ;;  %5406 = vmatpush1.bf16.msra.mxu0 %v7966_v27  ;;  %v8013_v25 = vld [vmem:[%s10738_s3 + $0x214] ss:$20 sps:$4 sm:$0xff]  }
 0x20c   :  { %5302 = vmatprep.subr.bf16.mxu1 %v7971_v28  ;;  %5407 = vmatprep.subr.bf16.mxu0 %v7974_v29  ;;  %v8106_v27 = vld [vmem:[%s10738_s3 + $0x5f4] ss:$20 sps:$4 sm:$0xff]   ;;  %v8011_v28 = vld [vmem:[%s10738_s3 + $0x210] ss:$20 sps:$4 sm:$0xff]  }
 0x20d   :  { %v8104_v29 = vld [vmem:[%s10738_s3 + $0x5f0] ss:$20 sps:$4 sm:$0xff]  }
 0x20f   :  { %5303 = vmatpush1.bf16.msra.mxu1 %v7969_v30  ;;  %5408 = vmatpush1.bf16.msra.mxu0 %v7972_v31  ;;  %v8016_v30 = vld [vmem:[%s10738_s3 + $0x23c] ss:$20 sps:$4 sm:$0xff]  }
 0x210   :  { %5304 = vmatprep.subr.bf16.mxu1 %v7977_v33  ;;  %5409 = vmatprep.subr.bf16.mxu0 %v7980_v35  ;;  %v8112_v31 = vld [vmem:[%s10738_s3 + $0x61c] ss:$20 sps:$4 sm:$0xff]  }
 0x213   :  { %5305 = vmatpush1.bf16.msra.mxu1 %v7975_v39  ;;  %5410 = vmatpush1.bf16.msra.mxu0 %v7978_v40 }
 0x214   :  { %5306 = vmatprep.subr.bf16.mxu1 %v7983_v45  ;;  %5411 = vmatprep.subr.bf16.mxu0 %v7986_v46  ;;  %v8019_v45 = vld [vmem:[%s10738_s3 + $0x264] ss:$20 sps:$4 sm:$0xff]  }
 0x215   :  { %v6966_v54 = vpop.f32.mrb[8].mxu1 }
 0x216   :  { %v6967_v60 = vpop.f32.mrb[9].mxu1 }
 0x217   :  { %5307 = vmatpush1.bf16.msra.mxu1 %v7981_v48  ;;  %5412 = vmatpush1.bf16.msra.mxu0 %v7984_v49  ;;  %v6968_v56 = vadd.f32 %v6967_v60, %v6966_v54  ;;  %v6969_v57 = vpop.f32.mrb[10].mxu1  ;;  %v8017_v49 = vld [vmem:[%s10738_s3 + $0x260] ss:$20 sps:$4 sm:$0xff]   ;;  %v8122_v60 = vld [vmem:[%s10738_s3 + $0x668] ss:$20 sps:$4 sm:$0xff]  }
 0x218   :  { %5308 = vmatprep.subr.bf16.mxu1 %v7989_v51  ;;  %5413 = vmatprep.subr.bf16.mxu0 %v7992_v52  ;;  %v6970_v59 = vpop.f32.mrb[11].mxu1  ;;  %v8022_v51 = vld [vmem:[%s10738_s3 + $0x28c] ss:$20 sps:$4 sm:$0xff]   ;;  %v8025_v54 = vld [vmem:[%s10738_s3 + $0x2b4] ss:$20 sps:$4 sm:$0xff]  }
 0x219   :  { %v10028_v22 = vadd.f32 %v6968_v56, %v3467_v53  ;;  %v8124_v52 = vld [vmem:[%s10738_s3 + $0x66c] ss:$20 sps:$4 sm:$0xff]   ;;  %v8020_v53 = vld [vmem:[%s10738_s3 + $0x288] ss:$20 sps:$4 sm:$0xff]   ;;  %v8128_v57 = vld [vmem:[%s10738_s3 + $0x690] ss:$20 sps:$4 sm:$0xff]  }
 0x21a   :  { %v8028_v56 = vld [vmem:[%s10738_s3 + $0x2dc] ss:$20 sps:$4 sm:$0xff]   ;;  %v8031_v59 = vld [vmem:[%s10738_s3 + $0x304] ss:$20 sps:$4 sm:$0xff]  }
 0x21b   :  { %5309 = vmatpush1.bf16.msra.mxu1 %v7987_v12  ;;  %5414 = vmatpush1.bf16.msra.mxu0 %v7990_v55  ;;  %v8130_v12 = vld [vmem:[%s10738_s3 + $0x694] ss:$20 sps:$4 sm:$0xff]   ;;  %v8023_v55 = vld [vmem:[%s10738_s3 + $0x2b0] ss:$20 sps:$4 sm:$0xff]  }
 0x21c   :  { %5415 = vmatprep.subr.bf16.mxu0 %v7995_v58  ;;  %5319 = vmatprep.subr.bf16.mxu1 %v8070_v61  ;;  %v8026_v58 = vld [vmem:[%s10738_s3 + $0x2d8] ss:$20 sps:$4 sm:$0xff]  }
 0x21d   :  { %v8134_v61 = vld [vmem:[%s10738_s3 + $0x6b8] ss:$20 sps:$4 sm:$0xff]  }
 0x21e   :  { %5311 = vmatmul.mubr.bf16.vlgmr.msra.gmra.mrb[20].mxu1 %v10036_v26 }
 0x21f   :  { %5416 = vmatpush1.bf16.msra.mxu0 %v7993_v62  ;;  %5320 = vmatpush1.bf16.msra.mxu1 %v8068_v63  ;;  %v8029_v62 = vld [vmem:[%s10738_s3 + $0x300] ss:$20 sps:$4 sm:$0xff]  }
 0x220   :  { %5417 = vmatprep.subr.bf16.mxu0 %v7998_v21  ;;  %5321 = vmatprep.subr.bf16.mxu1 %v8076_v0  ;;  %v8034_v63 = vld [vmem:[%s10738_s3 + $0x32c] ss:$20 sps:$4 sm:$0xff]  }
 0x221   :  { %v8140_v21 = vld [vmem:[%s10738_s3 + $0x6e0] ss:$20 sps:$4 sm:$0xff]  }
 0x222   :  { %v8148_v0 = vld [vmem:[%s10738_s3 + $0x70c] ss:$20 sps:$4 sm:$0xff]  }
 0x223   :  { %5418 = vmatpush1.bf16.msra.mxu0 %v7996_v37  ;;  %5322 = vmatpush1.bf16.msra.mxu1 %v8074_v2  ;;  %v8032_v37 = vld [vmem:[%s10738_s3 + $0x328] ss:$20 sps:$4 sm:$0xff]  }
 0x224   :  { %5419 = vmatprep.subr.bf16.mxu0 %v8001_v5  ;;  %5323 = vmatprep.subr.bf16.mxu1 %v8082_v6  ;;  %v8037_v2 = vld [vmem:[%s10738_s3 + $0x354] ss:$20 sps:$4 sm:$0xff]   ;;  %v8035_v6 = vld [vmem:[%s10738_s3 + $0x350] ss:$20 sps:$4 sm:$0xff]  }
 0x225   :  { %v8146_v5 = vld [vmem:[%s10738_s3 + $0x708] ss:$20 sps:$4 sm:$0xff]  }
 0x227   :  { %5420 = vmatpush1.bf16.msra.mxu0 %v7999_v7  ;;  %5324 = vmatpush1.bf16.msra.mxu1 %v8080_v8  ;;  %v8040_v7 = vld [vmem:[%s10738_s3 + $0x37c] ss:$20 sps:$4 sm:$0xff]  }
 0x228   :  { %5421 = vmatprep.subr.bf16.mxu0 %v8004_v9  ;;  %5325 = vmatprep.subr.bf16.mxu1 %v8088_v10  ;;  %v8154_v9 = vld [vmem:[%s10738_s3 + $0x734] ss:$20 sps:$4 sm:$0xff]  }
 0x22b   :  { %5422 = vmatpush1.bf16.msra.mxu0 %v8002_v11  ;;  %5326 = vmatpush1.bf16.msra.mxu1 %v8086_v13  ;;  %v8152_v11 = vld [vmem:[%s10738_s3 + $0x730] ss:$20 sps:$4 sm:$0xff]   ;;  %v8038_v13 = vld [vmem:[%s10738_s3 + $0x378] ss:$20 sps:$4 sm:$0xff]  }
 0x22c   :  { %5423 = vmatprep.subr.bf16.mxu0 %v8007_v14  ;;  %5327 = vmatprep.subr.bf16.mxu1 %v8094_v16 }
 0x22f   :  { %5424 = vmatpush1.bf16.msra.mxu0 %v8005_v17  ;;  %5328 = vmatpush1.bf16.msra.mxu1 %v8092_v18  ;;  %v8043_v17 = vld [vmem:[%s10738_s3 + $0x3a4] ss:$20 sps:$4 sm:$0xff]  }
 0x230   :  { %5425 = vmatprep.subr.bf16.mxu0 %v8010_v19  ;;  %5329 = vmatprep.subr.bf16.mxu1 %v8100_v23  ;;  %v8160_v23 = vld [vmem:[%s10738_s3 + $0x75c] ss:$20 sps:$4 sm:$0xff]  }
 0x233   :  { %5426 = vmatpush1.bf16.msra.mxu0 %v8008_v24  ;;  %5330 = vmatpush1.bf16.msra.mxu1 %v8098_v43  ;;  %v8158_v24 = vld [vmem:[%s10738_s3 + $0x758] ss:$20 sps:$4 sm:$0xff]   ;;  %v8041_v43 = vld [vmem:[%s10738_s3 + $0x3a0] ss:$20 sps:$4 sm:$0xff]  }
 0x234   :  { %5427 = vmatprep.subr.bf16.mxu0 %v8013_v25  ;;  %5331 = vmatprep.subr.bf16.mxu1 %v8106_v27  ;;  %v8046_v25 = vld [vmem:[%s10738_s3 + $0x3cc] ss:$20 sps:$4 sm:$0xff]   ;;  %v8166_v27 = vld [vmem:[%s10738_s3 + $0x784] ss:$20 sps:$4 sm:$0xff]  }
 0x235   :  { %v6988_v33 = vpop.f32.mrb[12].mxu1 }
 0x236   :  { %v6989_v35 = vpop.f32.mrb[13].mxu1 }
 0x237   :  { %5428 = vmatpush1.bf16.msra.mxu0 %v8011_v28  ;;  %v6990_v39 = vadd.f32 %v6989_v35, %v6988_v33  ;;  %v6991_v40 = vpop.f32.mrb[14].mxu1  ;;  %5332 = vmatpush1.bf16.msra.mxu1 %v8104_v29  ;;  %v8044_v28 = vld [vmem:[%s10738_s3 + $0x3c8] ss:$20 sps:$4 sm:$0xff]   ;;  %v8050_v33 = vld [vmem:[%s10738_s3 + $0x418] ss:$20 sps:$4 sm:$0xff]  }
 0x238   :  { %5429 = vmatprep.subr.bf16.mxu0 %v8016_v30  ;;  %v6992_v46 = vpop.f32.mrb[15].mxu1  ;;  %5333 = vmatprep.subr.bf16.mxu1 %v8112_v31  ;;  %v8049_v29 = vld [vmem:[%s10738_s3 + $0x3f4] ss:$20 sps:$4 sm:$0xff]   ;;  %v8047_v30 = vld [vmem:[%s10738_s3 + $0x3f0] ss:$20 sps:$4 sm:$0xff]  }
 0x239   :  { %v10130_v48 = vadd.f32 %v6990_v39, %v10028_v22  ;;  %v8142_v22 = vld [vmem:[%s10738_s3 + $0x6e4] ss:$20 sps:$4 sm:$0xff]   ;;  %v8052_v31 = vld [vmem:[%s10738_s3 + $0x41c] ss:$20 sps:$4 sm:$0xff]   ;;  %v8058_v39 = vld [vmem:[%s10738_s3 + $0x46c] ss:$20 sps:$4 sm:$0xff]  }
 0x23a   :  { %v8055_v35 = vld [vmem:[%s10738_s3 + $0x444] ss:$20 sps:$4 sm:$0xff]   ;;  %v8056_v40 = vld [vmem:[%s10738_s3 + $0x468] ss:$20 sps:$4 sm:$0xff]  }
 0x23b   :  { %5430 = vmatpush1.bf16.msra.mxu0 %v8014_v36  ;;  %5334 = vmatpush1.bf16.msra.mxu1 %v8110_v44  ;;  %v8053_v36 = vld [vmem:[%s10738_s3 + $0x440] ss:$20 sps:$4 sm:$0xff]   ;;  %v8064_v46 = vld [vmem:[%s10738_s3 + $0x4bc] ss:$20 sps:$4 sm:$0xff]  }
 0x23c   :  { %5431 = vmatprep.subr.bf16.mxu0 %v8019_v45  ;;  %5335 = vmatprep.subr.bf16.mxu1 %v8118_v47  ;;  %v8061_v44 = vld [vmem:[%s10738_s3 + $0x494] ss:$20 sps:$4 sm:$0xff]   ;;  %v8059_v45 = vld [vmem:[%s10738_s3 + $0x490] ss:$20 sps:$4 sm:$0xff]   ;;  %v8062_v47 = vld [vmem:[%s10738_s3 + $0x4b8] ss:$20 sps:$4 sm:$0xff]  }
 0x23f   :  { %5432 = vmatpush1.bf16.msra.mxu0 %v8017_v49  ;;  %5336 = vmatpush1.bf16.msra.mxu1 %v8116_v50  ;;  %v8065_v49 = vld [vmem:[%s10738_s3 + $0x4e0] ss:$20 sps:$4 sm:$0xff]  }
 0x240   :  { %5442 = vmatprep.subr.bf16.mxu0 %v8022_v51  ;;  %5337 = vmatprep.subr.bf16.mxu1 %v8124_v52  ;;  %v8073_v50 = vld [vmem:[%s10738_s3 + $0x50c] ss:$20 sps:$4 sm:$0xff]   ;;  %v8071_v51 = vld [vmem:[%s10738_s3 + $0x508] ss:$20 sps:$4 sm:$0xff]  }
 0x241   :  { %v8079_v52 = vld [vmem:[%s10738_s3 + $0x534] ss:$20 sps:$4 sm:$0xff]  }
 0x242   :  { %5434 = vmatmul.mubr.bf16.vlgmr.msra.gmra.mrb[8].mxu0 %v9829_v38 }
 0x243   :  { %5443 = vmatpush1.bf16.msra.mxu0 %v8020_v53  ;;  %5474 = vmatprep.mubr.bf16.mxu0 %v9838_v41  ;;  %v8077_v53 = vld [vmem:[%s10738_s3 + $0x530] ss:$20 sps:$4 sm:$0xff]  }
 0x244   :  { %5444 = vmatprep.subr.bf16.mxu0 %v8025_v54  ;;  %5338 = vmatpush1.bf16.msra.mxu1 %v8122_v60  ;;  %v8085_v54 = vld [vmem:[%s10738_s3 + $0x55c] ss:$20 sps:$4 sm:$0xff]   ;;  %v8083_v60 = vld [vmem:[%s10738_s3 + $0x558] ss:$20 sps:$4 sm:$0xff]  }
 0x245   :  { %5339 = vmatprep.subr.bf16.mxu1 %v8130_v12  ;;  %v8091_v12 = vld [vmem:[%s10738_s3 + $0x584] ss:$20 sps:$4 sm:$0xff]  }
 0x247   :  { %5445 = vmatpush1.bf16.msra.mxu0 %v8023_v55  ;;  %v8089_v55 = vld [vmem:[%s10738_s3 + $0x580] ss:$20 sps:$4 sm:$0xff]  }
 0x248   :  { %5446 = vmatprep.subr.bf16.mxu0 %v8028_v56  ;;  %5340 = vmatpush1.bf16.msra.mxu1 %v8128_v57  ;;  %v8097_v56 = vld [vmem:[%s10738_s3 + $0x5ac] ss:$20 sps:$4 sm:$0xff]   ;;  %v8095_v57 = vld [vmem:[%s10738_s3 + $0x5a8] ss:$20 sps:$4 sm:$0xff]  }
 0x249   :  { %5341 = vmatprep.subr.bf16.mxu1 %v8136_v15  ;;  %v8103_v15 = vld [vmem:[%s10738_s3 + $0x5d4] ss:$20 sps:$4 sm:$0xff]  }
 0x24b   :  { %5447 = vmatpush1.bf16.msra.mxu0 %v8026_v58  ;;  %v8101_v58 = vld [vmem:[%s10738_s3 + $0x5d0] ss:$20 sps:$4 sm:$0xff]  }
 0x24c   :  { %5448 = vmatprep.subr.bf16.mxu0 %v8031_v59  ;;  %5342 = vmatpush1.bf16.msra.mxu1 %v8134_v61  ;;  %v8109_v59 = vld [vmem:[%s10738_s3 + $0x5fc] ss:$20 sps:$4 sm:$0xff]   ;;  %v8107_v61 = vld [vmem:[%s10738_s3 + $0x5f8] ss:$20 sps:$4 sm:$0xff]  }
 0x24d   :  { %5343 = vmatprep.subr.bf16.mxu1 %v8142_v22  ;;  %v8115_v22 = vld [vmem:[%s10738_s3 + $0x624] ss:$20 sps:$4 sm:$0xff]  }
 0x24f   :  { %5449 = vmatpush1.bf16.msra.mxu0 %v8029_v62  ;;  %v8113_v62 = vld [vmem:[%s10738_s3 + $0x620] ss:$20 sps:$4 sm:$0xff]  }
 0x250   :  { %5450 = vmatprep.subr.bf16.mxu0 %v8034_v63  ;;  %5344 = vmatpush1.bf16.msra.mxu1 %v8140_v21  ;;  %v8121_v63 = vld [vmem:[%s10738_s3 + $0x64c] ss:$20 sps:$4 sm:$0xff]   ;;  %v8119_v21 = vld [vmem:[%s10738_s3 + $0x648] ss:$20 sps:$4 sm:$0xff]  }
 0x251   :  { %5345 = vmatprep.subr.bf16.mxu1 %v8148_v0  ;;  %v8127_v0 = vld [vmem:[%s10738_s3 + $0x674] ss:$20 sps:$4 sm:$0xff]  }
 0x253   :  { %5451 = vmatpush1.bf16.msra.mxu0 %v8032_v37  ;;  %v8125_v37 = vld [vmem:[%s10738_s3 + $0x670] ss:$20 sps:$4 sm:$0xff]  }
 0x254   :  { %5452 = vmatprep.subr.bf16.mxu0 %v8037_v2  ;;  %5346 = vmatpush1.bf16.msra.mxu1 %v8146_v5  ;;  %v8133_v2 = vld [vmem:[%s10738_s3 + $0x69c] ss:$20 sps:$4 sm:$0xff]   ;;  %v8131_v5 = vld [vmem:[%s10738_s3 + $0x698] ss:$20 sps:$4 sm:$0xff]  }
 0x255   :  { %v7010_v8 = vpop.f32.mrb[16].mxu1  ;;  %5347 = vmatprep.subr.bf16.mxu1 %v8154_v9  ;;  %v8143_v9 = vld [vmem:[%s10738_s3 + $0x6e8] ss:$20 sps:$4 sm:$0xff]  }
 0x256   :  { %v7011_v10 = vpop.f32.mrb[17].mxu1 }
 0x257   :  { %5453 = vmatpush1.bf16.msra.mxu0 %v8035_v6  ;;  %v7012_v14 = vadd.f32 %v7011_v10, %v7010_v8  ;;  %v7013_v16 = vpop.f32.mrb[18].mxu1  ;;  %v8139_v6 = vld [vmem:[%s10738_s3 + $0x6c4] ss:$20 sps:$4 sm:$0xff]   ;;  %v8145_v8 = vld [vmem:[%s10738_s3 + $0x6ec] ss:$20 sps:$4 sm:$0xff]  }
 0x258   :  { %5454 = vmatprep.subr.bf16.mxu0 %v8040_v7  ;;  %5348 = vmatpush1.bf16.msra.mxu1 %v8152_v11  ;;  %v7014_v18 = vpop.f32.mrb[19].mxu1  ;;  %v8137_v7 = vld [vmem:[%s10738_s3 + $0x6c0] ss:$20 sps:$4 sm:$0xff]   ;;  %v8149_v11 = vld [vmem:[%s10738_s3 + $0x710] ss:$20 sps:$4 sm:$0xff]  }
 0x259   :  { %v10222_v19 = vadd.f32 %v7012_v14, %v10130_v48  ;;  %5349 = vmatprep.subr.bf16.mxu1 %v8160_v23  ;;  %v8067_v48 = vld [vmem:[%s10738_s3 + $0x4e4] ss:$20 sps:$4 sm:$0xff]   ;;  %v8151_v10 = vld [vmem:[%s10738_s3 + $0x714] ss:$20 sps:$4 sm:$0xff]   ;;  %v8169_v18 = vld [vmem:[%s10738_s3 + $0x78c] ss:$20 sps:$4 sm:$0xff]  }
 0x25a   :  { %v8155_v14 = vld [vmem:[%s10738_s3 + $0x738] ss:$20 sps:$4 sm:$0xff]   ;;  %v561_v23 = vsub.s32 4, %v8452_v42 }
 0x25b   :  { %5455 = vmatpush1.bf16.msra.mxu0 %v8038_v13  ;;  %v8157_v13 = vld [vmem:[%s10738_s3 + $0x73c] ss:$20 sps:$4 sm:$0xff]   ;;  %v8163_v16 = vld [vmem:[%s10738_s3 + $0x764] ss:$20 sps:$4 sm:$0xff]  }
 0x25c   :  { %5456 = vmatprep.subr.bf16.mxu0 %v8043_v17  ;;  %5350 = vmatpush1.bf16.msra.mxu1 %v8158_v24  ;;  %v8161_v17 = vld [vmem:[%s10738_s3 + $0x760] ss:$20 sps:$4 sm:$0xff]   ;;  %v565_v24 = vsub.s32 5, %v8452_v42 }
 0x25d   :  { %5360 = vmatprep.subr.bf16.mxu1 %v8166_v27 }
 0x25f   :  { %5457 = vmatpush1.bf16.msra.mxu0 %v8041_v43  ;;  %v562_v43 = vrot.slane %v9785_v20, %v561_v23 }
 0x260   :  { %5458 = vmatprep.subr.bf16.mxu0 %v8046_v25  ;;  %v566_v25 = vrot.slane %v9785_v20, %v565_v24  ;;  %v8172_v20 = vld [vmem:[%s10738_s3 + $0x7ac] ss:$20 sps:$4 sm:$0xff]  }
 0x261   :  { %v8197_v24 = vld [vmem:[%s10738_s3 + $0x2e0] ss:$20 sps:$4 sm:$0xff]  }
 0x263   :  { %5459 = vmatpush1.bf16.msra.mxu0 %v8044_v28 }
 0x264   :  { %5460 = vmatprep.subr.bf16.mxu0 %v8049_v29 }
 0x267   :  { %5461 = vmatpush1.bf16.msra.mxu0 %v8047_v30 }
 0x268   :  { %5462 = vmatprep.subr.bf16.mxu0 %v8052_v31 }
 0x26b   :  { %5463 = vmatpush1.bf16.msra.mxu0 %v8050_v33 }
 0x26c   :  { %5464 = vmatprep.subr.bf16.mxu0 %v8055_v35 }
 0x26f   :  { %5465 = vmatpush1.bf16.msra.mxu0 %v8053_v36 }
 0x270   :  { %5466 = vmatprep.subr.bf16.mxu0 %v8058_v39 }
 0x273   :  { %5467 = vmatpush1.bf16.msra.mxu0 %v8056_v40  ;;  %v8164_v40 = vld [vmem:[%s10738_s3 + $0x780] ss:$20 sps:$4 sm:$0xff]  }
 0x274   :  { %5468 = vmatprep.subr.bf16.mxu0 %v8061_v44  ;;  %v8167_v44 = vld [vmem:[%s10738_s3 + $0x788] ss:$20 sps:$4 sm:$0xff]  }
 0x277   :  { %5469 = vmatpush1.bf16.msra.mxu0 %v8059_v45 }
 0x278   :  { %5470 = vmatprep.subr.bf16.mxu0 %v8064_v46  ;;  %v8175_v46 = vld [vmem:[%s10738_s3 + $0x7b4] ss:$20 sps:$4 sm:$0xff]  }
 0x27b   :  { %5471 = vmatpush1.bf16.msra.mxu0 %v8062_v47  ;;  %v8170_v47 = vld [vmem:[%s10738_s3 + $0x7a8] ss:$20 sps:$4 sm:$0xff]  }
 0x27c   :  { %5472 = vmatprep.subr.bf16.mxu0 %v8067_v48  ;;  %v8173_v48 = vld [vmem:[%s10738_s3 + $0x7b0] ss:$20 sps:$4 sm:$0xff]  }
 0x27f   :  { %5473 = vmatpush1.bf16.msra.mxu0 %v8065_v49  ;;  %v8176_v49 = vld [vmem:[%s10738_s3 + $0x150] ss:$20 sps:$4 sm:$0xff]  }
 0x280   :  { %5483 = vmatprep.subr.bf16.mxu0 %v8073_v50  ;;  %v8227_v50 = vld [vmem:[%s10740_s5 + $0xc0] sm:$0xff]  }
 0x282   :  { %5475 = vmatmul.mubr.bf16.vlgmr.msra.gmra.mrb[8].mxu0 %v10036_v26 }
 0x283   :  { %5484 = vmatpush1.bf16.msra.mxu0 %v8071_v51  ;;  %v8291_v51 = vmov 0  }
 0x284   :  { %5485 = vmatprep.subr.bf16.mxu0 %v8079_v52  ;;  %v3598_v52 = vmax.f32 %v10222_v19, 0.0  ;;  %v8231_v19 = vld [vmem:[%s10740_s5 + $0xc8] sm:$0xff]  }
 0x287   :  { %5486 = vmatpush1.bf16.msra.mxu0 %v8077_v53  ;;  %v8177_v53 = vld [vmem:[%s10738_s3 + $0x10] ss:$20 sps:$4 sm:$0xff]  }
 0x288   :  { %5487 = vmatprep.subr.bf16.mxu0 %v8085_v54  ;;  %v10426_v54 = vpack.c.bf16 %v3598_v52, %v3598_v52  ;;  %v8251_v52 = vld [vmem:[%s10740_s5 + $0xf0] sm:$0xff]  }
 0x28b   :  { %5488 = vmatpush1.bf16.msra.mxu0 %v8083_v60  ;;  %v8178_v60 = vld [vmem:[%s10738_s3 + $0x178] ss:$20 sps:$4 sm:$0xff]  }
 0x28c   :  { %5489 = vmatprep.subr.bf16.mxu0 %v8091_v12  ;;  %v8229_v12 = vld [vmem:[%s10740_s5 + $0x80] sm:$0xff]  }
 0x28f   :  { %5490 = vmatpush1.bf16.msra.mxu0 %v8089_v55  ;;  %v8179_v55 = vld [vmem:[%s10738_s3 + $0x38] ss:$20 sps:$4 sm:$0xff]  }
 0x290   :  { %5491 = vmatprep.subr.bf16.mxu0 %v8097_v56  ;;  %v8180_v56 = vld [vmem:[%s10738_s3 + $0x1a0] ss:$20 sps:$4 sm:$0xff]  }
 0x293   :  { %5492 = vmatpush1.bf16.msra.mxu0 %v8095_v57  ;;  %v8233_v57 = vld [vmem:[%s10740_s5 + $0x88] sm:$0xff]  }
 0x294   :  { %5493 = vmatprep.subr.bf16.mxu0 %v8103_v15  ;;  %v8235_v15 = vld [vmem:[%s10740_s5 + $0xd0] sm:$0xff]  }
 0x297   :  { %5494 = vmatpush1.bf16.msra.mxu0 %v8101_v58  ;;  %v8182_v58 = vld [vmem:[%s10738_s3 + $0x1c8] ss:$20 sps:$4 sm:$0xff]  }
 0x298   :  { %5495 = vmatprep.subr.bf16.mxu0 %v8109_v59  ;;  %v8237_v59 = vld [vmem:[%s10740_s5 + $0x90] sm:$0xff]  }
 0x29b   :  { %5496 = vmatpush1.bf16.msra.mxu0 %v8107_v61  ;;  %v8239_v61 = vld [vmem:[%s10740_s5 + $0xd8] sm:$0xff]  }
 0x29c   :  { %5497 = vmatprep.subr.bf16.mxu0 %v8115_v22  ;;  %v8183_v22 = vld [vmem:[%s10738_s3 + $0x88] ss:$20 sps:$4 sm:$0xff]  }
 0x29f   :  { %5498 = vmatpush1.bf16.msra.mxu0 %v8113_v62  ;;  %v8184_v62 = vld [vmem:[%s10738_s3 + $0x1f0] ss:$20 sps:$4 sm:$0xff]  }
 0x2a0   :  { %5499 = vmatprep.subr.bf16.mxu0 %v8121_v63  ;;  %v8241_v63 = vld [vmem:[%s10740_s5 + $0x98] sm:$0xff]  }
 0x2a3   :  { %5500 = vmatpush1.bf16.msra.mxu0 %v8119_v21  ;;  %v8243_v21 = vld [vmem:[%s10740_s5 + $0xe0] sm:$0xff]  }
 0x2a4   :  { %5501 = vmatprep.subr.bf16.mxu0 %v8127_v0  ;;  %v8185_v0 = vld [vmem:[%s10738_s3 + $0xb0] ss:$20 sps:$4 sm:$0xff]  }
 0x2a7   :  { %5502 = vmatpush1.bf16.msra.mxu0 %v8125_v37  ;;  %v8186_v37 = vld [vmem:[%s10738_s3 + $0x218] ss:$20 sps:$4 sm:$0xff]  }
 0x2a8   :  { %5503 = vmatprep.subr.bf16.mxu0 %v8133_v2  ;;  %v8245_v2 = vld [vmem:[%s10740_s5 + $0xa0] sm:$0xff]  }
 0x2ab   :  { %5504 = vmatpush1.bf16.msra.mxu0 %v8131_v5  ;;  %v8247_v5 = vld [vmem:[%s10740_s5 + $0xe8] sm:$0xff]  }
 0x2ac   :  { %5505 = vmatprep.subr.bf16.mxu0 %v8139_v6  ;;  %v8187_v6 = vld [vmem:[%s10738_s3 + $0xd8] ss:$20 sps:$4 sm:$0xff]  }
 0x2af   :  { %5506 = vmatpush1.bf16.msra.mxu0 %v8137_v7  ;;  %v8188_v7 = vld [vmem:[%s10738_s3 + $0x240] ss:$20 sps:$4 sm:$0xff]  }
 0x2b0   :  { %5507 = vmatprep.subr.bf16.mxu0 %v8145_v8  ;;  %v8249_v8 = vld [vmem:[%s10740_s5 + $0xa8] sm:$0xff]  }
 0x2b3   :  { %5508 = vmatpush1.bf16.msra.mxu0 %v8143_v9  ;;  %v8189_v9 = vld [vmem:[%s10738_s3 + $0x100] ss:$20 sps:$4 sm:$0xff]  }
 0x2b4   :  { %5509 = vmatprep.subr.bf16.mxu0 %v8151_v10  ;;  %v8190_v10 = vld [vmem:[%s10738_s3 + $0x268] ss:$20 sps:$4 sm:$0xff]  }
 0x2b7   :  { %5510 = vmatpush1.bf16.msra.mxu0 %v8149_v11  ;;  %v8191_v11 = vld [vmem:[%s10738_s3 + $0x128] ss:$20 sps:$4 sm:$0xff]  }
 0x2b8   :  { %5511 = vmatprep.subr.bf16.mxu0 %v8157_v13  ;;  %v8192_v13 = vld [vmem:[%s10738_s3 + $0x3d0] ss:$20 sps:$4 sm:$0xff]  }
 0x2bb   :  { %5512 = vmatpush1.bf16.msra.mxu0 %v8155_v14  ;;  %v8193_v14 = vld [vmem:[%s10738_s3 + $0x290] ss:$20 sps:$4 sm:$0xff]  }
 0x2bc   :  { %5513 = vmatprep.subr.bf16.mxu0 %v8163_v16  ;;  %v8194_v16 = vld [vmem:[%s10738_s3 + $0x3f8] ss:$20 sps:$4 sm:$0xff]  }
 0x2bf   :  { %5514 = vmatpush1.bf16.msra.mxu0 %v8161_v17  ;;  %v8195_v17 = vld [vmem:[%s10738_s3 + $0x2b8] ss:$20 sps:$4 sm:$0xff]  }
 0x2c0   :  { %5524 = vmatprep.subr.bf16.mxu0 %v8169_v18  ;;  %v8196_v18 = vld [vmem:[%s10738_s3 + $0x420] ss:$20 sps:$4 sm:$0xff]  }
 0x2d5   :  { %v3425_v27 = vpop.f32.mrb[4].mxu0 }
 0x2d6   :  { %v7164_v28 = vadd.f32 %v3425_v27, %v562_v43  ;;  %v3427_v29 = vpop.f32.mrb[5].mxu0  ;;  %v8200_v43 = vld [vmem:[%s10738_s3 + $0x470] ss:$20 sps:$4 sm:$0xff]   ;;  %v8202_v27 = vld [vmem:[%s10738_s3 + $0x498] ss:$20 sps:$4 sm:$0xff]  }
 0x2d7   :  { %v7165_v30 = vadd.f32 %v3427_v29, %v566_v25  ;;  %v3429_v31 = vpop.f32.mrb[6].mxu0  ;;  %v8201_v25 = vld [vmem:[%s10738_s3 + $0x330] ss:$20 sps:$4 sm:$0xff]   ;;  %v8204_v29 = vld [vmem:[%s10738_s3 + $0x4c0] ss:$20 sps:$4 sm:$0xff]  }
 0x2d8   :  { %v3596_v33 = vmax.f32 %v7164_v28, 0.0  ;;  %v3430_v35 = vpop.f32.mrb[7].mxu0  ;;  %v8203_v28 = vld [vmem:[%s10738_s3 + $0x358] ss:$20 sps:$4 sm:$0xff]   ;;  %v8206_v31 = vld [vmem:[%s10738_s3 + $0x4e8] ss:$20 sps:$4 sm:$0xff]  }
 0x2d9   :  { %v3597_v36 = vmax.f32 %v7165_v30, 0.0  ;;  %v8205_v30 = vld [vmem:[%s10738_s3 + $0x380] ss:$20 sps:$4 sm:$0xff]   ;;  %v8208_v35 = vld [vmem:[%s10738_s3 + $0x650] ss:$20 sps:$4 sm:$0xff]  }
 0x2da   :  { %v10398_v45 = vpack.c.bf16 %v3596_v33, %v3596_v33  ;;  %v8207_v33 = vld [vmem:[%s10738_s3 + $0x3a8] ss:$20 sps:$4 sm:$0xff]  }
 0x2db   :  { %v10390_v39 = vpack.c.bf16 %v3597_v36, %v3597_v36  ;;  %v8209_v36 = vld [vmem:[%s10738_s3 + $0x510] ss:$20 sps:$4 sm:$0xff]  }
 0x2dd   :  { %5351 = vmatprep.mubr.bf16.mxu1 %v10390_v39  ;;  %5515 = vmatprep.mubr.bf16.mxu0 %v10390_v39 }
 0x2de   :  { %5352 = vmatmul.mubr.bf16.vlgmr.msra.gmra.mrb[20].mxu1 %v10398_v45  ;;  %5516 = vmatmul.mubr.bf16.vlgmr.msra.gmra.mrb[8].mxu0 %v10398_v45 }
 0x2df   :  { %5361 = vmatpush1.bf16.msra.mxu1 %v8164_v40  ;;  %5525 = vmatpush1.bf16.msra.mxu0 %v8167_v44  ;;  %v8210_v40 = vld [vmem:[%s10738_s3 + $0x678] ss:$20 sps:$4 sm:$0xff]  }
 0x2e0   :  { %5362 = vmatprep.subr.bf16.mxu1 %v8172_v20  ;;  %5526 = vmatprep.subr.bf16.mxu0 %v8175_v46  ;;  %v8211_v44 = vld [vmem:[%s10738_s3 + $0x538] ss:$20 sps:$4 sm:$0xff]   ;;  %v8212_v20 = vld [vmem:[%s10738_s3 + $0x6a0] ss:$20 sps:$4 sm:$0xff]  }
 0x2e1   :  { %5392 = vmatprep.mubr.bf16.mxu1 %v8291_v51  ;;  %5556 = vmatprep.mubr.bf16.mxu0 %v8291_v51  ;;  %v8213_v46 = vld [vmem:[%s10738_s3 + $0x560] ss:$20 sps:$4 sm:$0xff]  }
 0x2e2   :  { %v8220_v51 = vld [vmem:[%s10738_s3 + $0x740] ss:$20 sps:$4 sm:$0xff]  }
 0x2e3   :  { %5363 = vmatpush1.bf16.msra.mxu1 %v8170_v47  ;;  %5527 = vmatpush1.bf16.msra.mxu0 %v8173_v48  ;;  %v8216_v47 = vld [vmem:[%s10738_s3 + $0x6f0] ss:$20 sps:$4 sm:$0xff]  }
 0x2e4   :  { %7016 = vmatprep.subr.bf16.mxu1 %v8176_v49  ;;  %7107 = vmatprep.subr.bf16.mxu0 %v8227_v50  ;;  %v8217_v48 = vld [vmem:[%s10738_s3 + $0x5b0] ss:$20 sps:$4 sm:$0xff]   ;;  %v8218_v49 = vld [vmem:[%s10738_s3 + $0x718] ss:$20 sps:$4 sm:$0xff]  }
 0x2e5   :  { %v8219_v50 = vld [vmem:[%s10738_s3 + $0x5d8] ss:$20 sps:$4 sm:$0xff]  }
 0x2ea   :  { %6885 = vmatmul.mubr.msk.bf16.vlgmr.msra.gmra.mrb[20].mxu1 %vm5233_vm0, %v10426_v54  ;;  %6886 = vmatmul.mubr.msk.bf16.vlgmr.msra.gmra.mrb[8].mxu0 %vm5233_vm0, %v10426_v54 }
 0x2eb   :  { %7017 = vmatpush3.bf16.msra.mxu1 %v8177_v53  ;;  %5597 = vmatprep.mubr.bf16.mxu1 %v9821_v34  ;;  %v8181_v34 = vld [vmem:[%s10738_s3 + $0x60] ss:$20 sps:$4 sm:$0xff]  }
 0x2ec   :  { %7018 = vmatprep.subr.bf16.mxu1 %v8178_v60  ;;  %7108 = vmatpush3.bf16.msra.mxu0 %v8229_v12  ;;  %v8253_v53 = vld [vmem:[%s10740_s5 + $0xb0] sm:$0xff]   ;;  %v8222_v12 = vld [vmem:[%s10738_s3 + $0x768] ss:$20 sps:$4 sm:$0xff]  }
 0x2ed   :  { %7109 = vmatprep.subr.bf16.mxu0 %v8231_v19  ;;  %v8221_v60 = vld [vmem:[%s10738_s3 + $0x600] ss:$20 sps:$4 sm:$0xff]   ;;  %v8255_v19 = vld [vmem:[%s10740_s5 + $0xf8] sm:$0xff]  }
 0x2ef   :  { %7019 = vmatpush3.bf16.msra.mxu1 %v8179_v55  ;;  %v8257_v55 = vld [vmem:[%s10740_s5 + $0xb8] sm:$0xff]  }
 0x2f0   :  { %7020 = vmatprep.subr.bf16.mxu1 %v8180_v56  ;;  %7110 = vmatpush3.bf16.msra.mxu0 %v8233_v57  ;;  %v8223_v56 = vld [vmem:[%s10738_s3 + $0x628] ss:$20 sps:$4 sm:$0xff]   ;;  %v8224_v57 = vld [vmem:[%s10738_s3 + $0x790] ss:$20 sps:$4 sm:$0xff]  }
 0x2f1   :  { %7111 = vmatprep.subr.bf16.mxu0 %v8235_v15  ;;  %v8292_v15 = vmov 0.0  }
 0x2f3   :  { %7021 = vmatpush3.bf16.msra.mxu1 %v8181_v34  ;;  %v8225_v34 = vld [vmem:[%s10738_s3 + $0x7b8] ss:$20 sps:$4 sm:$0xff]  }
 0x2f4   :  { %7022 = vmatprep.subr.bf16.mxu1 %v8182_v58  ;;  %7112 = vmatpush3.bf16.msra.mxu0 %v8237_v59  ;;  %v8226_v58 = vld [vmem:[%s10740_s5 + $0x40] sm:$0xff]   ;;  %v8230_v59 = vld [vmem:[%s10740_s5 + $0x48] sm:$0xff]  }
 0x2f5   :  { %7113 = vmatprep.subr.bf16.mxu0 %v8239_v61  ;;  %v8232_v61 = vld [vmem:[%s10740_s5 + $0x8] sm:$0xff]  }
 0x2f7   :  { %7023 = vmatpush3.bf16.msra.mxu1 %v8183_v22  ;;  %v8234_v22 = vld [vmem:[%s10740_s5 + $0x50] sm:$0xff]  }
 0x2f8   :  { %7024 = vmatprep.subr.bf16.mxu1 %v8184_v62  ;;  %7114 = vmatpush3.bf16.msra.mxu0 %v8241_v63  ;;  %v8236_v62 = vld [vmem:[%s10740_s5 + $0x10] sm:$0xff]   ;;  %v8240_v63 = vld [vmem:[%s10740_s5 + $0x18] sm:$0xff]  }
 0x2f9   :  { %7115 = vmatprep.subr.bf16.mxu0 %v8243_v21  ;;  %v8242_v21 = vld [vmem:[%s10740_s5 + $0x60] sm:$0xff]  }
 0x2fb   :  { %7025 = vmatpush3.bf16.msra.mxu1 %v8185_v0  ;;  %v8244_v0 = vld [vmem:[%s10740_s5 + $0x20] sm:$0xff]  }
 0x2fc   :  { %7026 = vmatprep.subr.bf16.mxu1 %v8186_v37  ;;  %7116 = vmatpush3.bf16.msra.mxu0 %v8245_v2  ;;  %v8246_v37 = vld [vmem:[%s10740_s5 + $0x68] sm:$0xff]  }
 0x2fd   :  { %7117 = vmatprep.subr.bf16.mxu0 %v8247_v5  ;;  %v8248_v2 = vld [vmem:[%s10740_s5 + $0x28] sm:$0xff]   ;;  %v8250_v5 = vld [vmem:[%s10740_s5 + $0x70] sm:$0xff]  }
 0x2ff   :  { %7027 = vmatpush3.bf16.msra.mxu1 %v8187_v6  ;;  %v8252_v6 = vld [vmem:[%s10740_s5 + $0x30] sm:$0xff]  }
 0x300   :  { %7028 = vmatprep.subr.bf16.mxu1 %v8188_v7  ;;  %7118 = vmatpush3.bf16.msra.mxu0 %v8249_v8  ;;  %v8254_v7 = vld [vmem:[%s10740_s5 + $0x78] sm:$0xff]  }
 0x301   :  { %7119 = vmatprep.subr.bf16.mxu0 %v8251_v52  ;;  %v8256_v8 = vld [vmem:[%s10740_s5 + $0x38] sm:$0xff]  }
 0x303   :  { %7029 = vmatpush3.bf16.msra.mxu1 %v8189_v9  ;;  %v3906_v9 = vld [vmem:[%s10739_s4] sm:$0x1f] }
 0x304   :  { %7030 = vmatprep.subr.bf16.mxu1 %v8190_v10  ;;  %7120 = vmatpush3.bf16.msra.mxu0 %v8253_v53  ;;  %v3911_v10 = vrot.slane %v3906_v9, %v545_v1  ;;  %v3927_v53 = vrot.slane %v3906_v9, %v561_v23 }
 0x305   :  { %7121 = vmatprep.subr.bf16.mxu0 %v8255_v19 }
 0x307   :  { %7031 = vmatpush3.bf16.msra.mxu1 %v8191_v11  ;;  %v3919_v11 = vrot.slane %v3906_v9, %v553_v32 }
 0x308   :  { %7038 = vmatprep.subr.bf16.mxu1 %v8192_v13  ;;  %7122 = vmatpush3.bf16.msra.mxu0 %v8257_v55  ;;  %v3915_v13 = vrot.slane %v3906_v9, %v549_v3 }
 0x30a   :  { %5598 = vmatmul.mubr.bf16.vlgmr.msra.gmra.mrb[24].mxu1 %v9829_v38  ;;  %v8198_v38 = vld [vmem:[%s10738_s3 + $0x448] ss:$20 sps:$4 sm:$0xff]  }
 0x30b   :  { %7039 = vmatpush3.bf16.msra.mxu1 %v8193_v14  ;;  %5637 = vmatprep.mubr.bf16.mxu1 %v9838_v41  ;;  %v8199_v41 = vld [vmem:[%s10738_s3 + $0x308] ss:$20 sps:$4 sm:$0xff]   ;;  %v3923_v14 = vrot.slane %v3906_v9, %v557_v4  ;;  %v8258_v4 = vld [vmem:[%s10740_s5 + $0x100] sm:$0xff]  }
 0x30c   :  { %7040 = vmatprep.subr.bf16.mxu1 %v8194_v16 }
 0x30f   :  { %7041 = vmatpush3.bf16.msra.mxu1 %v8195_v17 }
 0x310   :  { %7042 = vmatprep.subr.bf16.mxu1 %v8196_v18 }
 0x313   :  { %7043 = vmatpush3.bf16.msra.mxu1 %v8197_v24 }
 0x314   :  { %7044 = vmatprep.subr.bf16.mxu1 %v8198_v38 }
 0x317   :  { %7045 = vmatpush3.bf16.msra.mxu1 %v8199_v41 }
 0x318   :  { %7046 = vmatprep.subr.bf16.mxu1 %v8200_v43 }
 0x31b   :  { %7047 = vmatpush3.bf16.msra.mxu1 %v8201_v25 }
 0x31c   :  { %7048 = vmatprep.subr.bf16.mxu1 %v8202_v27 }
 0x31f   :  { %7049 = vmatpush3.bf16.msra.mxu1 %v8203_v28 }
 0x320   :  { %7050 = vmatprep.subr.bf16.mxu1 %v8204_v29 }
 0x323   :  { %7051 = vmatpush3.bf16.msra.mxu1 %v8205_v30 }
 0x324   :  { %7052 = vmatprep.subr.bf16.mxu1 %v8206_v31 }
 0x327   :  { %7053 = vmatpush3.bf16.msra.mxu1 %v8207_v33 }
 0x328   :  { %7060 = vmatprep.subr.bf16.mxu1 %v8208_v35 }
 0x32a   :  { %5638 = vmatmul.mubr.bf16.vlgmr.msra.gmra.mrb[28].mxu1 %v10036_v26  ;;  %v8214_v26 = vld [vmem:[%s10738_s3 + $0x6c8] ss:$20 sps:$4 sm:$0xff]  }
 0x32b   :  { %7061 = vmatpush3.bf16.msra.mxu1 %v8209_v36  ;;  %5677 = vmatprep.mubr.bf16.mxu1 %v10390_v39  ;;  %v8215_v39 = vld [vmem:[%s10738_s3 + $0x588] ss:$20 sps:$4 sm:$0xff]  }
 0x32c   :  { %7062 = vmatprep.subr.bf16.mxu1 %v8210_v40 }
 0x32f   :  { %7063 = vmatpush3.bf16.msra.mxu1 %v8211_v44  ;;  %v8259_v44 = vld [vmem:[%s10740_s5 + $0x108] sm:$0xff]  }
 0x330   :  { %7064 = vmatprep.subr.bf16.mxu1 %v8212_v20  ;;  %v8260_v20 = vld [vmem:[%s10740_s5 + $0x110] sm:$0xff]  }
 0x333   :  { %7065 = vmatpush3.bf16.msra.mxu1 %v8213_v46  ;;  %v8261_v46 = vld [vmem:[%s10740_s5 + $0x118] sm:$0xff]  }
 0x334   :  { %7066 = vmatprep.subr.bf16.mxu1 %v8214_v26  ;;  %v8262_v26 = vld [vmem:[%s10740_s5 + $0x120] sm:$0xff]  }
 0x337   :  { %7067 = vmatpush3.bf16.msra.mxu1 %v8215_v39  ;;  %v8263_v39 = vld [vmem:[%s10740_s5 + $0x128] ss:$0 sps:$4 sm:$0xff]  }
 0x338   :  { %7068 = vmatprep.subr.bf16.mxu1 %v8216_v47  ;;  %v6048_v47 = vsel %vm6046_vm2, %v8263_v39, 0 }
 0x33b   :  { %7069 = vmatpush3.bf16.msra.mxu1 %v8217_v48 }
 0x33c   :  { %7070 = vmatprep.subr.bf16.mxu1 %v8218_v49 }
 0x33f   :  { %7071 = vmatpush3.bf16.msra.mxu1 %v8219_v50 }
 0x340   :  { %7072 = vmatprep.subr.bf16.mxu1 %v8220_v51 }
 0x343   :  { %7073 = vmatpush3.bf16.msra.mxu1 %v8221_v60 }
 0x344   :  { %7074 = vmatprep.subr.bf16.mxu1 %v8222_v12 }
 0x347   :  { %7075 = vmatpush3.bf16.msra.mxu1 %v8223_v56 }
 0x348   :  { %7136 = vmatprep.subr.bf16.mxu1 %v8292_v15 }
 0x34a   :  { %5678 = vmatmul.mubr.bf16.vlgmr.msra.gmra.mrb[32].mxu1 %v10398_v45  ;;  %v8228_v45 = vld [vmem:[%s10740_s5] sm:$0xff]  }
 0x34b   :  { %7137 = vmatpush3.bf16.msra.mxu1 %v8224_v57  ;;  %7140 = vmatprep.mubr.msk.bf16.mxu1 %vm8293_vm1, %v8292_v15 }
 0x34c   :  { %7138 = vmatprep.subr.bf16.mxu1 %v8292_v15 }
 0x34f   :  { %7139 = vmatpush3.bf16.msra.mxu1 %v8225_v34 }
 0x350   :  { %7085 = vmatprep.subr.bf16.mxu1 %v8226_v58 }
 0x352   :  { %7141 = vmatmul.mubr.msk.bf16.vlgmr.msra.gmra.mrb[36].mxu1 %vm5233_vm0, %v10426_v54  ;;  %v8238_v54 = vld [vmem:[%s10740_s5 + $0x58] sm:$0xff]  }
 0x353   :  { %7086 = vmatpush3.bf16.msra.mxu1 %v8228_v45 }
 0x354   :  { %7087 = vmatprep.subr.bf16.mxu1 %v8230_v59 }
 0x357   :  { %7088 = vmatpush3.bf16.msra.mxu1 %v8232_v61 }
 0x358   :  { %7089 = vmatprep.subr.bf16.mxu1 %v8234_v22 }
 0x35b   :  { %7090 = vmatpush3.bf16.msra.mxu1 %v8236_v62 }
 0x35c   :  { %7091 = vmatprep.subr.bf16.mxu1 %v8238_v54 }
 0x35f   :  { %7092 = vmatpush3.bf16.msra.mxu1 %v8240_v63 }
 0x360   :  { %7093 = vmatprep.subr.bf16.mxu1 %v8242_v21 }
 0x363   :  { %7094 = vmatpush3.bf16.msra.mxu1 %v8244_v0 }
 0x364   :  { %7095 = vmatprep.subr.bf16.mxu1 %v8246_v37 }
 0x367   :  { %7096 = vmatpush3.bf16.msra.mxu1 %v8248_v2 }
 0x368   :  { %7097 = vmatprep.subr.bf16.mxu1 %v8250_v5  ;;  %v6888_v5 = vld [vmem:[%s10741_s6] ss:$0 sm:$0xff]  ;;  %s8266_s6 = scalar_lea.vmem %s6180_s24, 32 }
 0x369   :  { %p8267_p0 = scmp.ne.s32.totalorder %s6180_s24, %s8266_s6  ;;  %p8272_p2 = scmp.lt.s32.totalorder %s8266_s6, %s8266_s6 }
 0x36b   :  { %7098 = vmatpush3.bf16.msra.mxu1 %v8252_v6  ;;  %p8273_p3 = por %p8272_p2, %p8271_p1 }
 0x36c   :  { %7099 = vmatprep.subr.bf16.mxu1 %v8254_v7 }
 0x36d   :  { %p8274_p4 = pnand %p8273_p3, %p8267_p0 }
 0x36f   :  { %7100 = vmatpush3.bf16.msra.mxu1 %v8256_v8 }
 0x370   :  { %7144 = vmatprep.subr.bf16.mxu1 %v8292_v15 }
 0x3bd   :  { %v5394_v16 = vpop.f32.mrb[20].mxu1  ;;  %v5558_v17 = vpop.f32.mrb[8].mxu0 }
 0x3be   :  { %v7166_v18 = vadd.f32 %v5394_v16, %v3911_v10  ;;  %v7168_v24 = vadd.f32 %v5558_v17, %v3919_v11  ;;  %v5396_v38 = vpop.f32.mrb[21].mxu1  ;;  %v5560_v41 = vpop.f32.mrb[9].mxu0 }
 0x3bf   :  { %v7167_v43 = vadd.f32 %v5396_v38, %v3915_v13  ;;  %v7169_v25 = vadd.f32 %v5560_v41, %v3923_v14  ;;  %v5398_v27 = vpop.f32.mrb[22].mxu1  ;;  %v5562_v28 = vpop.f32.mrb[10].mxu0 }
 0x3c0   :  { %v5725_v1 = vmax.f32 %v7166_v18, 0.0  ;;  %v5727_v29 = vmax.f32 %v7168_v24, 0.0  ;;  %v5399_v30 = vpop.f32.mrb[23].mxu1  ;;  %v5563_v32 = vpop.f32.mrb[11].mxu0 }
 0x3c1   :  { %v5726_v31 = vmax.f32 %v7167_v43, 0.0  ;;  %v5728_v33 = vmax.f32 %v7169_v25, 0.0 }
 0x3c2   :  { %v5730_v36 = vpack.c.bf16 %v5725_v1, %v5725_v1  ;;  %v5732_v40 = vpack.c.bf16 %v5727_v29, %v5727_v29 }
 0x3c3   :  { %v5731_v3 = vpack.c.bf16 %v5726_v31, %v5726_v31  ;;  %v5733_v35 = vpack.c.bf16 %v5728_v33, %v5728_v33 }
 0x3c5   :  { %6082 = vmatprep.mubr.bf16.mxu1 %v5731_v3  ;;  %6122 = vmatprep.mubr.bf16.mxu0 %v5733_v35 }
 0x3c6   :  { %6083 = vmatmul.mubr.bf16.vlgmr.msra.gmra.mrb[40].mxu1 %v5730_v36  ;;  %6123 = vmatmul.mubr.bf16.vlgmr.msra.gmra.mrb[12].mxu0 %v5732_v40 }
 0x3c7   :  { %7145 = vmatpush3.bf16.msra.mxu1 %v8258_v4  ;;  %7156 = vmatprep.mubr.msk.bf16.mxu1 %vm8293_vm1, %v8292_v15 }
 0x3c8   :  { %7146 = vmatprep.subr.bf16.mxu1 %v8292_v15 }
 0x3cb   :  { %7147 = vmatpush3.bf16.msra.mxu1 %v8259_v44 }
 0x3cc   :  { %7148 = vmatprep.subr.bf16.mxu1 %v8292_v15 }
 0x3cf   :  { %7149 = vmatpush3.bf16.msra.mxu1 %v8260_v20 }
 0x3d0   :  { %7150 = vmatprep.subr.bf16.mxu1 %v8292_v15 }
 0x3d3   :  { %7151 = vmatpush3.bf16.msra.mxu1 %v8261_v46 }
 0x3d4   :  { %7152 = vmatprep.subr.bf16.mxu1 %v8292_v15 }
 0x3d7   :  { %7153 = vmatpush3.bf16.msra.mxu1 %v8262_v26 }
 0x3d8   :  { %7154 = vmatprep.subr.bf16.mxu1 %v8292_v15 }
 0x3db   :  { %7155 = vmatpush3.bf16.msra.mxu1 %v6048_v47 }
 0x3dd   :  { %v7032_v48 = vpop.f32.mrb[24].mxu1 }
 0x3de   :  { %v7033_v49 = vpop.f32.mrb[25].mxu1 }
 0x3df   :  { %v7034_v50 = vadd.f32 %v7033_v49, %v7032_v48  ;;  %v7035_v51 = vpop.f32.mrb[26].mxu1 }
 0x3e0   :  { %v7036_v52 = vpop.f32.mrb[27].mxu1 }
 0x3e1   :  { %v5600_v19 = vadd.f32 %v7034_v50, %v3927_v53 }
 0x3fd   :  { %v7054_v60 = vpop.f32.mrb[28].mxu1 }
 0x3fe   :  { %v7055_v12 = vpop.f32.mrb[29].mxu1 }
 0x3ff   :  { %v7056_v55 = vadd.f32 %v7055_v12, %v7054_v60  ;;  %v7057_v56 = vpop.f32.mrb[30].mxu1 }
 0x400   :  { %v7058_v57 = vpop.f32.mrb[31].mxu1 }
 0x401   :  { %v5640_v34 = vadd.f32 %v7056_v55, %v5600_v19 }
 0x41d   :  { %v7076_v58 = vpop.f32.mrb[32].mxu1 }
 0x41e   :  { %v7077_v45 = vpop.f32.mrb[33].mxu1 }
 0x41f   :  { %v7078_v15 = vadd.f32 %v7077_v45, %v7076_v58  ;;  %v7079_v59 = vpop.f32.mrb[34].mxu1 }
 0x420   :  { %v7080_v61 = vpop.f32.mrb[35].mxu1 }
 0x421   :  { %v5680_v22 = vadd.f32 %v7078_v15, %v5640_v34 }
 0x425   :  { %v5719_v62 = vpop.f32.mrb[36].mxu1 }
 0x426   :  { %v5720_v54 = vadd.f32 %v5719_v62, %v5680_v22  ;;  %v7142_v63 = vpop.f32.mrb[37].mxu1 }
 0x427   :  { %v5722_v21 = vpop.f32.mrb[38].mxu1 }
 0x428   :  { %v5729_v0 = vmax.f32 %v5720_v54, 0.0  ;;  %v7143_v42 = vpop.f32.mrb[39].mxu1 }
 0x42a   :  { %v5734_v23 = vpack.c.bf16 %v5729_v0, %v5729_v0 }
 0x42c   :  { %7157 = vmatmul.mubr.msk.bf16.vlgmr.msra.gmra.mrb[44].mxu1 %vm6042_vm3, %v5734_v23 }
 0x499   :  { %v7101_v37 = vpop.f32.mrb[40].mxu1  ;;  %v7123_v2 = vpop.f32.mrb[12].mxu0 }
 0x49a   :  { %v7102_v6 = vpop.f32.mrb[41].mxu1  ;;  %v7124_v7 = vpop.f32.mrb[13].mxu0 }
 0x49b   :  { %v7103_v8 = vadd.f32 %v7102_v6, %v7101_v37  ;;  %v7125_v9 = vadd.f32 %v7124_v7, %v7123_v2  ;;  %v7104_v10 = vpop.f32.mrb[42].mxu1  ;;  %v7126_v11 = vpop.f32.mrb[14].mxu0 }
 0x49c   :  { %v7105_v13 = vpop.f32.mrb[43].mxu1  ;;  %v7127_v14 = vpop.f32.mrb[15].mxu0 }
 0x49d   :  { %v6085_v16 = vadd.f32 %v7103_v8, %v6888_v5 }
 0x49f   :  { %v6125_v17 = vadd.f32 %v7125_v9, %v6085_v16 }
 0x4ff   :  { %v6164_v18 = vpop.f32.mrb[44].mxu1 }
 0x500   :  { %v6165_v24 = vadd.f32 %v6164_v18, %v6125_v17  ;;  %v7158_v38 = vpop.f32.mrb[45].mxu1 }
 0x501   :  { %v6167_v41 = vpop.f32.mrb[46].mxu1 }
 0x502   :  { %8264 = vtanh.f32 %v6165_v24  ;;  %v7159_v43 = vpop.f32.mrb[47].mxu1 }
 0x50c   :  { %v8265_v25 = vpop.eup %8264 }
 0x50d   :  { %6172 = vst.msk [vmem:[#allocation2] sm:$0x3] %vm6171_vm4, %v8265_v25 }
 0x50e   :  { %8277 = shalt.err (!%p8274_p4)
}
 0x50f   :  { %s8278_s27 = scalar_lea.hbm %s10742_s7, 32 }
 0x510   :  { %p8279_p5 = scmp.ne.s32.totalorder %s10742_s7, %s8278_s27  ;;  %p8282_p6 = scmp.lt.u32.totalorder %s8278_s27, %s10742_s7 }
 0x512   :  { %p8284_p7 = pnand %p8282_p6, %p8279_p5 }
 0x514   :  { %8287 = shalt.err (!%p8284_p7)
}
 0x515   :  { %6182 = dma.vmem_to_hbm [thread:$0]  %s6180_s24, 32, %s10742_s7, [#allocation3]  }
 0x516   :  { %8288 = dma.done.wait [#allocation3], 32  }
 0x517   :  { %8289 = vsyncadd [#allocation3], 4294967264 }
 0x518   :  { %6186 = vsyncpa [#allocation3], 1 }

</bundles_post_ra>
